<compile_context>
chip_gen: v6e
topology: v6e:2x2x1
jax: 0.10.0
libtpu: 0.0.40
codegen_flags: <defaults>
</compile_context>

<pallas_src>
import functools

import jax
import jax.numpy as jnp
from jax.experimental import pallas as pl
from jax.experimental.pallas import tpu as pltpu

LEAKY_SLOPE = 0.2
BN_EPS = 1e-5
KSIZE = 4
PAD = 1

TM_MAX = 512   # M-tile cap (multiple of 16 -> clean bf16 sublane packing)
TK_MAX = 512   # K-tile cap


def _round_up(x, m):
    return (x + m - 1) // m * m


# --------------------------- Pallas kernels ---------------------------------
def _conv_kernel(p_ref, w_ref, scale_ref, shift_ref, o_ref, acc_ref, *,
                 apply_act, tk):
    """K-tiled MXU matmul, fp32 accumulator, fused affine + LeakyReLU epilogue.

    p_ref:     (tm, tk) bf16 patch tile, (i, k)-indexed
    w_ref:     (Kp, N)  bf16 full weight, resident in VMEM (constant index_map)
    scale_ref: (1, N)   f32
    shift_ref: (1, N)   f32
    o_ref:     (tm, N)  bf16 output tile, (i,)-indexed
    acc_ref:   (tm, N)  f32 VMEM accumulator (persists across the K grid axis)
    """
    k = pl.program_id(1)

    @pl.when(k == 0)
    def _():
        acc_ref[...] = jnp.zeros_like(acc_ref)

    k0 = pl.multiple_of(k * tk, tk)
    acc_ref[...] += jnp.dot(p_ref[...], w_ref[pl.ds(k0, tk), :],
                            preferred_element_type=jnp.float32)

    @pl.when(k == pl.num_programs(1) - 1)
    def _():
        y = acc_ref[...] * scale_ref[...] + shift_ref[...]
        if apply_act:
            y = jnp.where(y >= 0.0, y, LEAKY_SLOPE * y)
        o_ref[...] = y.astype(o_ref.dtype)


def _head_kernel(p_ref, w_ref, b_ref, o_ref, acc_ref, *, tk):
    """Cout==1 head: VPU lane-partial accumulation, one XLU reduce in epilogue.

    p_ref:   (tm, tk) bf16 patches (widened to f32 in-kernel)
    w_ref:   (1, Kp)  f32 full weight row (resident)
    b_ref:   (1, 1)   f32 bias
    o_ref:   (tm, 1)  f32
    acc_ref: (tm,128) f32 lane-partial accumulator
    """
    k = pl.program_id(1)

    @pl.when(k == 0)
    def _():
        acc_ref[...] = jnp.zeros_like(acc_ref)

    for c in range(tk // 128):
        off = pl.multiple_of(k * tk + c * 128, 128)
        pc = p_ref[:, c * 128:(c + 1) * 128].astype(jnp.float32)
        acc_ref[...] += pc * w_ref[:, pl.ds(off, 128)]

    @pl.when(k == pl.num_programs(1) - 1)
    def _():
        o_ref[...] = jnp.sum(acc_ref[...], axis=-1, keepdims=True) + b_ref[...]


# ------------------------------ wrappers -------------------------------------
def conv_matmul_fused(cols, layer):
    """(M,K) bf16 patches x resident (K,N) bf16 weight -> (M,N) bf16 fused conv."""
    M, K = cols.shape
    w = layer["w_pad"]                        # (Kp, N) bf16
    Kp, N = w.shape
    tk = layer["tk"]

    if M <= TM_MAX:
        tm, Mp = M, M                         # full-dim block: no pad, no slice
    else:
        tm, Mp = TM_MAX, _round_up(M, TM_MAX)
    p = cols
    if Mp != M or Kp != K:
        p = jnp.pad(p, ((0, Mp - M), (0, Kp - K)))

    grid = (Mp // tm, Kp // tk)
    out = pl.pallas_call(
        functools.partial(_conv_kernel, apply_act=layer["act"], tk=tk),
        out_shape=jax.ShapeDtypeStruct((Mp, N), jnp.bfloat16),
        grid=grid,
        in_specs=[
            pl.BlockSpec((tm, tk), lambda i, k: (i, k)),
            pl.BlockSpec((Kp, N), lambda i, k: (0, 0)),   # weight DMA'd once
            pl.BlockSpec((1, N), lambda i, k: (0, 0)),
            pl.BlockSpec((1, N), lambda i, k: (0, 0)),
        ],
        out_specs=pl.BlockSpec((tm, N), lambda i, k: (i, 0)),
        scratch_shapes=[pltpu.VMEM((tm, N), jnp.float32)],
        compiler_params=pltpu.CompilerParams(
            dimension_semantics=("parallel", "arbitrary")),
        cost_estimate=pl.CostEstimate(
            flops=2 * Mp * Kp * N, transcendentals=0,
            bytes_accessed=Mp * Kp * 2 + Kp * N * 2 + Mp * N * 2),
    )(p, w, layer["scale_row"], layer["shift_row"])

    return out if Mp == M else out[:M]


def final_conv(cols, layer):
    """(M,K) bf16 x (K,1) conv head as a VPU reduction; returns (M,1) f32."""
    M, K = cols.shape
    w = layer["w_row"]                        # (1, Kp) f32
    Kp = w.shape[1]
    tk = layer["tk"]

    if M <= TM_MAX:
        tm, Mp = M, M
    else:
        tm, Mp = TM_MAX, _round_up(M, TM_MAX)
    p = cols
    if Mp != M or Kp != K:
        p = jnp.pad(p, ((0, Mp - M), (0, Kp - K)))

    grid = (Mp // tm, Kp // tk)
    out = pl.pallas_call(
        functools.partial(_head_kernel, tk=tk),
        out_shape=jax.ShapeDtypeStruct((Mp, 1), jnp.float32),
        grid=grid,
        in_specs=[
            pl.BlockSpec((tm, tk), lambda i, k: (i, k)),
            pl.BlockSpec((1, Kp), lambda i, k: (0, 0)),
            pl.BlockSpec((1, 1), lambda i, k: (0, 0)),
        ],
        out_specs=pl.BlockSpec((tm, 1), lambda i, k: (i, 0)),
        scratch_shapes=[pltpu.VMEM((tm, 128), jnp.float32)],
        compiler_params=pltpu.CompilerParams(
            dimension_semantics=("parallel", "arbitrary")),
        cost_estimate=pl.CostEstimate(
            flops=2 * Mp * Kp, transcendentals=0,
            bytes_accessed=Mp * Kp * 2 + Kp * 4 + Mp * 4),
    )(p, w, layer["bias11"])
    return out if Mp == M else out[:M]


# ------------------------------- JAX glue ------------------------------------
def patches_stride2(x):
    """4x4/stride2/pad1 conv patches via space-to-depth (4x dup instead of 16x).

    x: (B,H,W,C) bf16, H/W even.  Returns bf16 (B*Ho*Wo, 16*C) with K ordered
    (qh, qw, dh, dw, cin), plus Ho, Wo.
    """
    B, H, W, C = x.shape
    assert H % 2 == 0 and W % 2 == 0, "stride-2 path assumes even spatial dims"
    xp = jnp.pad(x, ((0, 0), (PAD, PAD), (PAD, PAD), (0, 0)))
    Hp, Wp = H + 2 * PAD, W + 2 * PAD
    y = xp.reshape(B, Hp // 2, 2, Wp // 2, 2, C)
    y = y.transpose(0, 1, 3, 2, 4, 5).reshape(B, Hp // 2, Wp // 2, 4 * C)
    Ho, Wo = Hp // 2 - 1, Wp // 2 - 1
    taps = [y[:, qh:qh + Ho, qw:qw + Wo, :] for qh in range(2) for qw in range(2)]
    cols = jnp.concatenate(taps, axis=-1)
    return cols.reshape(B * Ho * Wo, 16 * C), Ho, Wo


def patches_stride1(x):
    """4x4/stride1/pad1 conv patches.  K ordered (kh, kw, cin)."""
    B, H, W, C = x.shape
    xp = jnp.pad(x, ((0, 0), (PAD, PAD), (PAD, PAD), (0, 0)))
    Ho, Wo = H - 1, W - 1
    taps = [xp[:, kh:kh + Ho, kw:kw + Wo, :] for kh in range(4) for kw in range(4)]
    cols = jnp.concatenate(taps, axis=-1)
    return cols.reshape(B * Ho * Wo, 16 * C), Ho, Wo


def make_params(key, c_i, num_filters=64):
    cfgs = [
        dict(cin=c_i,             cout=num_filters,     stride=2, norm=False, act=True),
        dict(cin=num_filters,     cout=num_filters * 2, stride=2, norm=True,  act=True),
        dict(cin=num_filters * 2, cout=num_filters * 4, stride=2, norm=True,  act=True),
        dict(cin=num_filters * 4, cout=num_filters * 8, stride=1, norm=True,  act=True),
        dict(cin=num_filters * 8, cout=1,               stride=1, norm=False, act=False),
    ]
    params = []
    for li, cfg in enumerate(cfgs):
        key, kw, kb, kg, kbe, km, kv = jax.random.split(key, 7)
        cin, cout, stride = cfg["cin"], cfg["cout"], cfg["stride"]
        K = cin * KSIZE * KSIZE
        # PyTorch Conv2d weight layout is OIHW; keep it for the reference path.
        w_oihw = jax.random.normal(kw, (cout, cin, KSIZE, KSIZE), jnp.float32)
        w_oihw = w_oihw * (1.0 / jnp.sqrt(jnp.float32(K)))

        if stride == 2:
            # Match patches_stride2's K order (qh, qw, dh, dw, cin):
            # kh = 2*qh + dh, kw = 2*qw + dw.
            w6 = w_oihw.reshape(cout, cin, 2, 2, 2, 2)      # (co, ci, qh, dh, qw, dw)
            w_mat = jnp.transpose(w6, (2, 4, 3, 5, 1, 0)).reshape(K, cout)
        else:
            # Match patches_stride1's K order (kh, kw, cin).
            w_mat = jnp.transpose(w_oihw, (2, 3, 1, 0)).reshape(K, cout)

        if cfg["norm"]:
            gamma = 1.0 + 0.1 * jax.random.normal(kg, (cout,), jnp.float32)
            beta = 0.1 * jax.random.normal(kbe, (cout,), jnp.float32)
            mean = 0.05 * jax.random.normal(km, (cout,), jnp.float32)
            var = jax.random.uniform(kv, (cout,), jnp.float32, minval=0.5, maxval=1.5)
            inv = gamma / jnp.sqrt(var + BN_EPS)
            scale, shift = inv, beta - mean * inv
        else:
            bias = 0.1 * jax.random.normal(kb, (cout,), jnp.float32)
            scale, shift = jnp.ones((cout,), jnp.float32), bias

        final = (li == len(cfgs) - 1)
        tk = K if K <= TK_MAX else TK_MAX          # layer 1: tk = K = 48 (no pad)
        Kp = _round_up(K, tk)
        layer = dict(w_oihw=w_oihw, scale=scale, shift=shift,
                     stride=stride, act=cfg["act"], final=final, tk=tk)
        if final:
            layer["w_row"] = jnp.pad(w_mat.reshape(1, K), ((0, 0), (0, Kp - K)))
            layer["bias11"] = shift.reshape(1, 1)
        else:
            layer["w_pad"] = jnp.pad(w_mat, ((0, Kp - K), (0, 0))).astype(jnp.bfloat16)
            layer["scale_row"] = scale.reshape(1, cout)
            layer["shift_row"] = shift.reshape(1, cout)
        params.append(layer)
    return params


def discriminator_forward(x_nchw, params):
    # NCHW <-> NHWC conversion only at the API boundary; bf16 NHWC inside.
    x = jnp.transpose(x_nchw, (0, 2, 3, 1)).astype(jnp.bfloat16)
    for layer in params:
        B = x.shape[0]
        if layer["stride"] == 2:
            cols, Ho, Wo = patches_stride2(x)
        else:
            cols, Ho, Wo = patches_stride1(x)
        if layer["final"]:
            out = final_conv(cols, layer)
        else:
            out = conv_matmul_fused(cols, layer)
        x = out.reshape(B, Ho, Wo, -1)
    return jnp.transpose(x, (0, 3, 1, 2)).astype(jnp.float32)


def reference_forward(x_nchw, params):
    """Pure-JAX reference (lax.conv) mirroring the bf16-input / fp32-accum math."""
    x = jnp.transpose(x_nchw, (0, 2, 3, 1))
    for layer in params:
        w_hwio = jnp.transpose(layer["w_oihw"], (2, 3, 1, 0))
        if layer["final"]:
            x_in = x.astype(jnp.bfloat16).astype(jnp.float32)   # weight stays f32
        else:
            x_in = x.astype(jnp.bfloat16)
            w_hwio = w_hwio.astype(jnp.bfloat16)
        y = jax.lax.conv_general_dilated(
            x_in, w_hwio,
            window_strides=(layer["stride"], layer["stride"]),
            padding=((PAD, PAD), (PAD, PAD)),
            dimension_numbers=("NHWC", "HWIO", "NHWC"),
            preferred_element_type=jnp.float32)
        y = y * layer["scale"] + layer["shift"]
        if layer["act"]:
            y = jnp.where(y >= 0.0, y, LEAKY_SLOPE * y)
        x = y
    return jnp.transpose(x, (0, 3, 1, 2))


if __name__ == "__main__":
    key = jax.random.PRNGKey(0)
    kx, kp = jax.random.split(key)

    B, C, S = 2, 3, 32  # spatial: 32 -> 16 -> 8 -> 4 -> 3 -> 2
    x = jax.random.normal(kx, (B, C, S, S), jnp.float32)
    params = make_params(kp, C, num_filters=64)

    fwd = jax.jit(lambda xx: discriminator_forward(xx, params))
    out = jax.block_until_ready(fwd(x))
    assert out.shape == (B, 1, 2, 2), out.shape

    ref = reference_forward(x, params)
    assert bool(jnp.allclose(out, ref, atol=2e-2, rtol=2e-2)), "mismatch vs JAX reference"

    print("KERNEL_OK")
</pallas_src>

<mosaic_0001>
module attributes {stable_mosaic.version = 11 : i64} {
  func.func @_conv_kernel(%arg0: i32, %arg1: i32, %arg2: memref<512x48xbf16, #tpu.memory_space<vmem>>, %arg3: memref<48x64xbf16, #tpu.memory_space<vmem>>, %arg4: memref<1x64xf32, #tpu.memory_space<vmem>>, %arg5: memref<1x64xf32, #tpu.memory_space<vmem>>, %arg6: memref<512x64xbf16, #tpu.memory_space<vmem>>, %arg7: memref<512x64xf32, #tpu.memory_space<vmem>>) attributes {dimension_semantics = [#tpu.dimension_semantics<parallel>, #tpu.dimension_semantics<arbitrary>], iteration_bounds = array<i64: 1, 1>, scalar_prefetch = 0 : i64, scratch_operands = 1 : i64, tpu.core_type = #tpu.core_type<tc>, window_params = [{transform_indices = @transform_0, window_bounds = array<i64: 512, 48>}, {pipeline_mode = #tpu.pipeline_mode<synchronous>, transform_indices = @transform_1, window_bounds = array<i64: 48, 64>}, {pipeline_mode = #tpu.pipeline_mode<synchronous>, transform_indices = @transform_2, window_bounds = array<i64: 1, 64>}, {pipeline_mode = #tpu.pipeline_mode<synchronous>, transform_indices = @transform_3, window_bounds = array<i64: 1, 64>}, {transform_indices = @transform_4, window_bounds = array<i64: 512, 64>}]} {
    %c0_i32 = arith.constant 0 : i32
    %0 = arith.cmpi eq, %arg1, %c0_i32 : i32
    %1 = arith.extui %0 : i1 to i32
    %c0_i32_0 = arith.constant 0 : i32
    %2 = arith.cmpi ne, %1, %c0_i32_0 : i32
    scf.if %2 {
      %cst_9 = arith.constant 0.000000e+00 : f32
      %15 = vector.broadcast %cst_9 : f32 to vector<512x64xf32>
      %c0_10 = arith.constant 0 : index
      %c0_11 = arith.constant 0 : index
      %16 = vector.load %arg7[%c0_10, %c0_11] : memref<512x64xf32, #tpu.memory_space<vmem>>, vector<512x64xf32>
      tpu.vector_store %arg7[%c0_10, %c0_11], %15 {strides = array<i32>} : memref<512x64xf32, #tpu.memory_space<vmem>>, vector<512x64xf32>,
    } else {
    }
    %c48_i32 = arith.constant 48 : i32
    %3 = arith.muli %arg1, %c48_i32 : i32
    %4 = tpu.assume_multiple %3, 48 : i32
    %c0 = arith.constant 0 : index
    %c0_1 = arith.constant 0 : index
    %5 = vector.load %arg7[%c0, %c0_1] : memref<512x64xf32, #tpu.memory_space<vmem>>, vector<512x64xf32>
    %c0_2 = arith.constant 0 : index
    %c0_3 = arith.constant 0 : index
    %6 = vector.load %arg2[%c0_2, %c0_3] : memref<512x48xbf16, #tpu.memory_space<vmem>>, vector<512x48xbf16>
    %7 = arith.index_cast %4 : i32 to index
    %c0_4 = arith.constant 0 : index
    %8 = vector.load %arg3[%7, %c0_4] : memref<48x64xbf16, #tpu.memory_space<vmem>>, vector<48x64xbf16>
    %cst = arith.constant dense<0.000000e+00> : vector<512x64xf32>
    %9 = tpu.matmul %6, %8, %cst {dimension_numbers = #tpu.dot_dimension_numbers<[1], [0], [0], [1], [0, 0, 1, 1], [], []>} : vector<512x48xbf16>, vector<48x64xbf16>, vector<512x64xf32> -> vector<512x64xf32>
    %10 = arith.addf %5, %9 : vector<512x64xf32>
    %c0_5 = arith.constant 0 : index
    %c0_6 = arith.constant 0 : index
    %11 = vector.load %arg7[%c0_5, %c0_6] : memref<512x64xf32, #tpu.memory_space<vmem>>, vector<512x64xf32>
    tpu.vector_store %arg7[%c0_5, %c0_6], %10 {strides = array<i32>} : memref<512x64xf32, #tpu.memory_space<vmem>>, vector<512x64xf32>,
    %c0_i32_7 = arith.constant 0 : i32
    %12 = arith.cmpi eq, %arg1, %c0_i32_7 : i32
    %13 = arith.extui %12 : i1 to i32
    %c0_i32_8 = arith.constant 0 : i32
    %14 = arith.cmpi ne, %13, %c0_i32_8 : i32
    scf.if %14 {
      %c0_9 = arith.constant 0 : index
      %c0_10 = arith.constant 0 : index
      %15 = vector.load %arg7[%c0_9, %c0_10] : memref<512x64xf32, #tpu.memory_space<vmem>>, vector<512x64xf32>
      %c0_11 = arith.constant 0 : index
      %c0_12 = arith.constant 0 : index
      %16 = vector.load %arg4[%c0_11, %c0_12] : memref<1x64xf32, #tpu.memory_space<vmem>>, vector<1x64xf32>
      %17 = vector.broadcast %16 : vector<1x64xf32> to vector<512x64xf32>
      %18 = arith.mulf %15, %17 : vector<512x64xf32>
      %c0_13 = arith.constant 0 : index
      %c0_14 = arith.constant 0 : index
      %19 = vector.load %arg5[%c0_13, %c0_14] : memref<1x64xf32, #tpu.memory_space<vmem>>, vector<1x64xf32>
      %20 = vector.broadcast %19 : vector<1x64xf32> to vector<512x64xf32>
      %21 = arith.addf %18, %20 : vector<512x64xf32>
      %cst_15 = arith.constant 0.000000e+00 : f32
      %22 = vector.broadcast %cst_15 : f32 to vector<512x64xf32>
      %23 = arith.cmpf oge, %21, %22 : vector<512x64xf32>
      %cst_16 = arith.constant 2.000000e-01 : f32
      %24 = vector.broadcast %cst_16 : f32 to vector<512x64xf32>
      %25 = arith.mulf %24, %21 : vector<512x64xf32>
      %26 = arith.select %23, %21, %25 : vector<512x64xi1>, vector<512x64xf32>
      %27 = arith.truncf %26 : vector<512x64xf32> to vector<512x64xbf16>
      %c0_17 = arith.constant 0 : index
      %c0_18 = arith.constant 0 : index
      %28 = vector.load %arg6[%c0_17, %c0_18] : memref<512x64xbf16, #tpu.memory_space<vmem>>, vector<512x64xbf16>
      tpu.vector_store %arg6[%c0_17, %c0_18], %27 {strides = array<i32>} : memref<512x64xbf16, #tpu.memory_space<vmem>>, vector<512x64xbf16>,
    } else {
    }
    return
  }
  func.func @transform_0(%arg0: i32, %arg1: i32) -> (i32, i32) {
    %c0_i32 = arith.constant 0 : i32
    return %arg0, %arg1 : i32, i32
  }
  func.func @transform_1(%arg0: i32, %arg1: i32) -> (i32, i32) {
    %c0_i32 = arith.constant 0 : i32
    %c0_i32_0 = arith.constant 0 : i32
    %c0_i32_1 = arith.constant 0 : i32
    return %c0_i32, %c0_i32_0 : i32, i32
  }
  func.func @transform_2(%arg0: i32, %arg1: i32) -> (i32, i32) {
    %c0_i32 = arith.constant 0 : i32
    %c0_i32_0 = arith.constant 0 : i32
    %c0_i32_1 = arith.constant 0 : i32
    return %c0_i32, %c0_i32_0 : i32, i32
  }
  func.func @transform_3(%arg0: i32, %arg1: i32) -> (i32, i32) {
    %c0_i32 = arith.constant 0 : i32
    %c0_i32_0 = arith.constant 0 : i32
    %c0_i32_1 = arith.constant 0 : i32
    return %c0_i32, %c0_i32_0 : i32, i32
  }
  func.func @transform_4(%arg0: i32, %arg1: i32) -> (i32, i32) {
    %c0_i32 = arith.constant 0 : i32
    %c0_i32_0 = arith.constant 0 : i32
    return %arg0, %c0_i32 : i32, i32
  }
}

module attributes {stable_mosaic.version = 11 : i64} {
  func.func @_conv_kernel(%arg0: i32, %arg1: i32, %arg2: memref<128x512xbf16, #tpu.memory_space<vmem>>, %arg3: memref<1024x128xbf16, #tpu.memory_space<vmem>>, %arg4: memref<1x128xf32, #tpu.memory_space<vmem>>, %arg5: memref<1x128xf32, #tpu.memory_space<vmem>>, %arg6: memref<128x128xbf16, #tpu.memory_space<vmem>>, %arg7: memref<128x128xf32, #tpu.memory_space<vmem>>) attributes {dimension_semantics = [#tpu.dimension_semantics<parallel>, #tpu.dimension_semantics<arbitrary>], iteration_bounds = array<i64: 1, 2>, scalar_prefetch = 0 : i64, scratch_operands = 1 : i64, tpu.core_type = #tpu.core_type<tc>, window_params = [{transform_indices = @transform_0, window_bounds = array<i64: 128, 512>}, {pipeline_mode = #tpu.pipeline_mode<synchronous>, transform_indices = @transform_1, window_bounds = array<i64: 1024, 128>}, {pipeline_mode = #tpu.pipeline_mode<synchronous>, transform_indices = @transform_2, window_bounds = array<i64: 1, 128>}, {pipeline_mode = #tpu.pipeline_mode<synchronous>, transform_indices = @transform_3, window_bounds = array<i64: 1, 128>}, {transform_indices = @transform_4, window_bounds = array<i64: 128, 128>}]} {
    %c0_i32 = arith.constant 0 : i32
    %0 = arith.cmpi eq, %arg1, %c0_i32 : i32
    %1 = arith.extui %0 : i1 to i32
    %c0_i32_0 = arith.constant 0 : i32
    %2 = arith.cmpi ne, %1, %c0_i32_0 : i32
    scf.if %2 {
      %cst_8 = arith.constant 0.000000e+00 : f32
      %15 = vector.broadcast %cst_8 : f32 to vector<128x128xf32>
      %c0_9 = arith.constant 0 : index
      %c0_10 = arith.constant 0 : index
      %16 = vector.load %arg7[%c0_9, %c0_10] : memref<128x128xf32, #tpu.memory_space<vmem>>, vector<128x128xf32>
      tpu.vector_store %arg7[%c0_9, %c0_10], %15 {strides = array<i32>} : memref<128x128xf32, #tpu.memory_space<vmem>>, vector<128x128xf32>,
    } else {
    }
    %c512_i32 = arith.constant 512 : i32
    %3 = arith.muli %arg1, %c512_i32 : i32
    %4 = tpu.assume_multiple %3, 512 : i32
    %c0 = arith.constant 0 : index
    %c0_1 = arith.constant 0 : index
    %5 = vector.load %arg7[%c0, %c0_1] : memref<128x128xf32, #tpu.memory_space<vmem>>, vector<128x128xf32>
    %c0_2 = arith.constant 0 : index
    %c0_3 = arith.constant 0 : index
    %6 = vector.load %arg2[%c0_2, %c0_3] : memref<128x512xbf16, #tpu.memory_space<vmem>>, vector<128x512xbf16>
    %7 = arith.index_cast %4 : i32 to index
    %c0_4 = arith.constant 0 : index
    %8 = vector.load %arg3[%7, %c0_4] : memref<1024x128xbf16, #tpu.memory_space<vmem>>, vector<512x128xbf16>
    %cst = arith.constant dense<0.000000e+00> : vector<128x128xf32>
    %9 = tpu.matmul %6, %8, %cst {dimension_numbers = #tpu.dot_dimension_numbers<[1], [0], [0], [1], [0, 0, 1, 1], [], []>} : vector<128x512xbf16>, vector<512x128xbf16>, vector<128x128xf32> -> vector<128x128xf32>
    %10 = arith.addf %5, %9 : vector<128x128xf32>
    %c0_5 = arith.constant 0 : index
    %c0_6 = arith.constant 0 : index
    %11 = vector.load %arg7[%c0_5, %c0_6] : memref<128x128xf32, #tpu.memory_space<vmem>>, vector<128x128xf32>
    tpu.vector_store %arg7[%c0_5, %c0_6], %10 {strides = array<i32>} : memref<128x128xf32, #tpu.memory_space<vmem>>, vector<128x128xf32>,
    %c1_i32 = arith.constant 1 : i32
    %12 = arith.cmpi eq, %arg1, %c1_i32 : i32
    %13 = arith.extui %12 : i1 to i32
    %c0_i32_7 = arith.constant 0 : i32
    %14 = arith.cmpi ne, %13, %c0_i32_7 : i32
    scf.if %14 {
      %c0_8 = arith.constant 0 : index
      %c0_9 = arith.constant 0 : index
      %15 = vector.load %arg7[%c0_8, %c0_9] : memref<128x128xf32, #tpu.memory_space<vmem>>, vector<128x128xf32>
      %c0_10 = arith.constant 0 : index
      %c0_11 = arith.constant 0 : index
      %16 = vector.load %arg4[%c0_10, %c0_11] : memref<1x128xf32, #tpu.memory_space<vmem>>, vector<1x128xf32>
      %17 = vector.broadcast %16 : vector<1x128xf32> to vector<128x128xf32>
      %18 = arith.mulf %15, %17 : vector<128x128xf32>
      %c0_12 = arith.constant 0 : index
      %c0_13 = arith.constant 0 : index
      %19 = vector.load %arg5[%c0_12, %c0_13] : memref<1x128xf32, #tpu.memory_space<vmem>>, vector<1x128xf32>
      %20 = vector.broadcast %19 : vector<1x128xf32> to vector<128x128xf32>
      %21 = arith.addf %18, %20 : vector<128x128xf32>
      %cst_14 = arith.constant 0.000000e+00 : f32
      %22 = vector.broadcast %cst_14 : f32 to vector<128x128xf32>
      %23 = arith.cmpf oge, %21, %22 : vector<128x128xf32>
      %cst_15 = arith.constant 2.000000e-01 : f32
      %24 = vector.broadcast %cst_15 : f32 to vector<128x128xf32>
      %25 = arith.mulf %24, %21 : vector<128x128xf32>
      %26 = arith.select %23, %21, %25 : vector<128x128xi1>, vector<128x128xf32>
      %27 = arith.truncf %26 : vector<128x128xf32> to vector<128x128xbf16>
      %c0_16 = arith.constant 0 : index
      %c0_17 = arith.constant 0 : index
      %28 = vector.load %arg6[%c0_16, %c0_17] : memref<128x128xbf16, #tpu.memory_space<vmem>>, vector<128x128xbf16>
      tpu.vector_store %arg6[%c0_16, %c0_17], %27 {strides = array<i32>} : memref<128x128xbf16, #tpu.memory_space<vmem>>, vector<128x128xbf16>,
    } else {
    }
    return
  }
  func.func @transform_0(%arg0: i32, %arg1: i32) -> (i32, i32) {
    %c0_i32 = arith.constant 0 : i32
    return %arg0, %arg1 : i32, i32
  }
  func.func @transform_1(%arg0: i32, %arg1: i32) -> (i32, i32) {
    %c0_i32 = arith.constant 0 : i32
    %c0_i32_0 = arith.constant 0 : i32
    %c0_i32_1 = arith.constant 0 : i32
    return %c0_i32, %c0_i32_0 : i32, i32
  }
  func.func @transform_2(%arg0: i32, %arg1: i32) -> (i32, i32) {
    %c0_i32 = arith.constant 0 : i32
    %c0_i32_0 = arith.constant 0 : i32
    %c0_i32_1 = arith.constant 0 : i32
    return %c0_i32, %c0_i32_0 : i32, i32
  }
  func.func @transform_3(%arg0: i32, %arg1: i32) -> (i32, i32) {
    %c0_i32 = arith.constant 0 : i32
    %c0_i32_0 = arith.constant 0 : i32
    %c0_i32_1 = arith.constant 0 : i32
    return %c0_i32, %c0_i32_0 : i32, i32
  }
  func.func @transform_4(%arg0: i32, %arg1: i32) -> (i32, i32) {
    %c0_i32 = arith.constant 0 : i32
    %c0_i32_0 = arith.constant 0 : i32
    return %arg0, %c0_i32 : i32, i32
  }
}

module attributes {stable_mosaic.version = 11 : i64} {
  func.func @_conv_kernel(%arg0: i32, %arg1: i32, %arg2: memref<32x512xbf16, #tpu.memory_space<vmem>>, %arg3: memref<2048x256xbf16, #tpu.memory_space<vmem>>, %arg4: memref<1x256xf32, #tpu.memory_space<vmem>>, %arg5: memref<1x256xf32, #tpu.memory_space<vmem>>, %arg6: memref<32x256xbf16, #tpu.memory_space<vmem>>, %arg7: memref<32x256xf32, #tpu.memory_space<vmem>>) attributes {dimension_semantics = [#tpu.dimension_semantics<parallel>, #tpu.dimension_semantics<arbitrary>], iteration_bounds = array<i64: 1, 4>, scalar_prefetch = 0 : i64, scratch_operands = 1 : i64, tpu.core_type = #tpu.core_type<tc>, window_params = [{transform_indices = @transform_0, window_bounds = array<i64: 32, 512>}, {pipeline_mode = #tpu.pipeline_mode<synchronous>, transform_indices = @transform_1, window_bounds = array<i64: 2048, 256>}, {pipeline_mode = #tpu.pipeline_mode<synchronous>, transform_indices = @transform_2, window_bounds = array<i64: 1, 256>}, {pipeline_mode = #tpu.pipeline_mode<synchronous>, transform_indices = @transform_3, window_bounds = array<i64: 1, 256>}, {transform_indices = @transform_4, window_bounds = array<i64: 32, 256>}]} {
    %c0_i32 = arith.constant 0 : i32
    %0 = arith.cmpi eq, %arg1, %c0_i32 : i32
    %1 = arith.extui %0 : i1 to i32
    %c0_i32_0 = arith.constant 0 : i32
    %2 = arith.cmpi ne, %1, %c0_i32_0 : i32
    scf.if %2 {
      %cst_8 = arith.constant 0.000000e+00 : f32
      %15 = vector.broadcast %cst_8 : f32 to vector<32x256xf32>
      %c0_9 = arith.constant 0 : index
      %c0_10 = arith.constant 0 : index
      %16 = vector.load %arg7[%c0_9, %c0_10] : memref<32x256xf32, #tpu.memory_space<vmem>>, vector<32x256xf32>
      tpu.vector_store %arg7[%c0_9, %c0_10], %15 {strides = array<i32>} : memref<32x256xf32, #tpu.memory_space<vmem>>, vector<32x256xf32>,
    } else {
    }
    %c512_i32 = arith.constant 512 : i32
    %3 = arith.muli %arg1, %c512_i32 : i32
    %4 = tpu.assume_multiple %3, 512 : i32
    %c0 = arith.constant 0 : index
    %c0_1 = arith.constant 0 : index
    %5 = vector.load %arg7[%c0, %c0_1] : memref<32x256xf32, #tpu.memory_space<vmem>>, vector<32x256xf32>
    %c0_2 = arith.constant 0 : index
    %c0_3 = arith.constant 0 : index
    %6 = vector.load %arg2[%c0_2, %c0_3] : memref<32x512xbf16, #tpu.memory_space<vmem>>, vector<32x512xbf16>
    %7 = arith.index_cast %4 : i32 to index
    %c0_4 = arith.constant 0 : index
    %8 = vector.load %arg3[%7, %c0_4] : memref<2048x256xbf16, #tpu.memory_space<vmem>>, vector<512x256xbf16>
    %cst = arith.constant dense<0.000000e+00> : vector<32x256xf32>
    %9 = tpu.matmul %6, %8, %cst {dimension_numbers = #tpu.dot_dimension_numbers<[1], [0], [0], [1], [0, 0, 1, 1], [], []>} : vector<32x512xbf16>, vector<512x256xbf16>, vector<32x256xf32> -> vector<32x256xf32>
    %10 = arith.addf %5, %9 : vector<32x256xf32>
    %c0_5 = arith.constant 0 : index
    %c0_6 = arith.constant 0 : index
    %11 = vector.load %arg7[%c0_5, %c0_6] : memref<32x256xf32, #tpu.memory_space<vmem>>, vector<32x256xf32>
    tpu.vector_store %arg7[%c0_5, %c0_6], %10 {strides = array<i32>} : memref<32x256xf32, #tpu.memory_space<vmem>>, vector<32x256xf32>,
    %c3_i32 = arith.constant 3 : i32
    %12 = arith.cmpi eq, %arg1, %c3_i32 : i32
    %13 = arith.extui %12 : i1 to i32
    %c0_i32_7 = arith.constant 0 : i32
    %14 = arith.cmpi ne, %13, %c0_i32_7 : i32
    scf.if %14 {
      %c0_8 = arith.constant 0 : index
      %c0_9 = arith.constant 0 : index
      %15 = vector.load %arg7[%c0_8, %c0_9] : memref<32x256xf32, #tpu.memory_space<vmem>>, vector<32x256xf32>
      %c0_10 = arith.constant 0 : index
      %c0_11 = arith.constant 0 : index
      %16 = vector.load %arg4[%c0_10, %c0_11] : memref<1x256xf32, #tpu.memory_space<vmem>>, vector<1x256xf32>
      %17 = vector.broadcast %16 : vector<1x256xf32> to vector<32x256xf32>
      %18 = arith.mulf %15, %17 : vector<32x256xf32>
      %c0_12 = arith.constant 0 : index
      %c0_13 = arith.constant 0 : index
      %19 = vector.load %arg5[%c0_12, %c0_13] : memref<1x256xf32, #tpu.memory_space<vmem>>, vector<1x256xf32>
      %20 = vector.broadcast %19 : vector<1x256xf32> to vector<32x256xf32>
      %21 = arith.addf %18, %20 : vector<32x256xf32>
      %cst_14 = arith.constant 0.000000e+00 : f32
      %22 = vector.broadcast %cst_14 : f32 to vector<32x256xf32>
      %23 = arith.cmpf oge, %21, %22 : vector<32x256xf32>
      %cst_15 = arith.constant 2.000000e-01 : f32
      %24 = vector.broadcast %cst_15 : f32 to vector<32x256xf32>
      %25 = arith.mulf %24, %21 : vector<32x256xf32>
      %26 = arith.select %23, %21, %25 : vector<32x256xi1>, vector<32x256xf32>
      %27 = arith.truncf %26 : vector<32x256xf32> to vector<32x256xbf16>
      %c0_16 = arith.constant 0 : index
      %c0_17 = arith.constant 0 : index
      %28 = vector.load %arg6[%c0_16, %c0_17] : memref<32x256xbf16, #tpu.memory_space<vmem>>, vector<32x256xbf16>
      tpu.vector_store %arg6[%c0_16, %c0_17], %27 {strides = array<i32>} : memref<32x256xbf16, #tpu.memory_space<vmem>>, vector<32x256xbf16>,
    } else {
    }
    return
  }
  func.func @transform_0(%arg0: i32, %arg1: i32) -> (i32, i32) {
    %c0_i32 = arith.constant 0 : i32
    return %arg0, %arg1 : i32, i32
  }
  func.func @transform_1(%arg0: i32, %arg1: i32) -> (i32, i32) {
    %c0_i32 = arith.constant 0 : i32
    %c0_i32_0 = arith.constant 0 : i32
    %c0_i32_1 = arith.constant 0 : i32
    return %c0_i32, %c0_i32_0 : i32, i32
  }
  func.func @transform_2(%arg0: i32, %arg1: i32) -> (i32, i32) {
    %c0_i32 = arith.constant 0 : i32
    %c0_i32_0 = arith.constant 0 : i32
    %c0_i32_1 = arith.constant 0 : i32
    return %c0_i32, %c0_i32_0 : i32, i32
  }
  func.func @transform_3(%arg0: i32, %arg1: i32) -> (i32, i32) {
    %c0_i32 = arith.constant 0 : i32
    %c0_i32_0 = arith.constant 0 : i32
    %c0_i32_1 = arith.constant 0 : i32
    return %c0_i32, %c0_i32_0 : i32, i32
  }
  func.func @transform_4(%arg0: i32, %arg1: i32) -> (i32, i32) {
    %c0_i32 = arith.constant 0 : i32
    %c0_i32_0 = arith.constant 0 : i32
    return %arg0, %c0_i32 : i32, i32
  }
}

module attributes {stable_mosaic.version = 11 : i64} {
  func.func @_conv_kernel(%arg0: i32, %arg1: i32, %arg2: memref<18x512xbf16, #tpu.memory_space<vmem>>, %arg3: memref<4096x512xbf16, #tpu.memory_space<vmem>>, %arg4: memref<1x512xf32, #tpu.memory_space<vmem>>, %arg5: memref<1x512xf32, #tpu.memory_space<vmem>>, %arg6: memref<18x512xbf16, #tpu.memory_space<vmem>>, %arg7: memref<18x512xf32, #tpu.memory_space<vmem>>) attributes {dimension_semantics = [#tpu.dimension_semantics<parallel>, #tpu.dimension_semantics<arbitrary>], iteration_bounds = array<i64: 1, 8>, scalar_prefetch = 0 : i64, scratch_operands = 1 : i64, tpu.core_type = #tpu.core_type<tc>, window_params = [{transform_indices = @transform_0, window_bounds = array<i64: 18, 512>}, {pipeline_mode = #tpu.pipeline_mode<synchronous>, transform_indices = @transform_1, window_bounds = array<i64: 4096, 512>}, {pipeline_mode = #tpu.pipeline_mode<synchronous>, transform_indices = @transform_2, window_bounds = array<i64: 1, 512>}, {pipeline_mode = #tpu.pipeline_mode<synchronous>, transform_indices = @transform_3, window_bounds = array<i64: 1, 512>}, {transform_indices = @transform_4, window_bounds = array<i64: 18, 512>}]} {
    %c0_i32 = arith.constant 0 : i32
    %0 = arith.cmpi eq, %arg1, %c0_i32 : i32
    %1 = arith.extui %0 : i1 to i32
    %c0_i32_0 = arith.constant 0 : i32
    %2 = arith.cmpi ne, %1, %c0_i32_0 : i32
    scf.if %2 {
      %cst_8 = arith.constant 0.000000e+00 : f32
      %15 = vector.broadcast %cst_8 : f32 to vector<18x512xf32>
      %c0_9 = arith.constant 0 : index
      %c0_10 = arith.constant 0 : index
      %16 = vector.load %arg7[%c0_9, %c0_10] : memref<18x512xf32, #tpu.memory_space<vmem>>, vector<18x512xf32>
      tpu.vector_store %arg7[%c0_9, %c0_10], %15 {strides = array<i32>} : memref<18x512xf32, #tpu.memory_space<vmem>>, vector<18x512xf32>,
    } else {
    }
    %c512_i32 = arith.constant 512 : i32
    %3 = arith.muli %arg1, %c512_i32 : i32
    %4 = tpu.assume_multiple %3, 512 : i32
    %c0 = arith.constant 0 : index
    %c0_1 = arith.constant 0 : index
    %5 = vector.load %arg7[%c0, %c0_1] : memref<18x512xf32, #tpu.memory_space<vmem>>, vector<18x512xf32>
    %c0_2 = arith.constant 0 : index
    %c0_3 = arith.constant 0 : index
    %6 = vector.load %arg2[%c0_2, %c0_3] : memref<18x512xbf16, #tpu.memory_space<vmem>>, vector<18x512xbf16>
    %7 = arith.index_cast %4 : i32 to index
    %c0_4 = arith.constant 0 : index
    %8 = vector.load %arg3[%7, %c0_4] : memref<4096x512xbf16, #tpu.memory_space<vmem>>, vector<512x512xbf16>
    %cst = arith.constant dense<0.000000e+00> : vector<18x512xf32>
    %9 = tpu.matmul %6, %8, %cst {dimension_numbers = #tpu.dot_dimension_numbers<[1], [0], [0], [1], [0, 0, 1, 1], [], []>} : vector<18x512xbf16>, vector<512x512xbf16>, vector<18x512xf32> -> vector<18x512xf32>
    %10 = arith.addf %5, %9 : vector<18x512xf32>
    %c0_5 = arith.constant 0 : index
    %c0_6 = arith.constant 0 : index
    %11 = vector.load %arg7[%c0_5, %c0_6] : memref<18x512xf32, #tpu.memory_space<vmem>>, vector<18x512xf32>
    tpu.vector_store %arg7[%c0_5, %c0_6], %10 {strides = array<i32>} : memref<18x512xf32, #tpu.memory_space<vmem>>, vector<18x512xf32>,
    %c7_i32 = arith.constant 7 : i32
    %12 = arith.cmpi eq, %arg1, %c7_i32 : i32
    %13 = arith.extui %12 : i1 to i32
    %c0_i32_7 = arith.constant 0 : i32
    %14 = arith.cmpi ne, %13, %c0_i32_7 : i32
    scf.if %14 {
      %c0_8 = arith.constant 0 : index
      %c0_9 = arith.constant 0 : index
      %15 = vector.load %arg7[%c0_8, %c0_9] : memref<18x512xf32, #tpu.memory_space<vmem>>, vector<18x512xf32>
      %c0_10 = arith.constant 0 : index
      %c0_11 = arith.constant 0 : index
      %16 = vector.load %arg4[%c0_10, %c0_11] : memref<1x512xf32, #tpu.memory_space<vmem>>, vector<1x512xf32>
      %17 = vector.broadcast %16 : vector<1x512xf32> to vector<18x512xf32>
      %18 = arith.mulf %15, %17 : vector<18x512xf32>
      %c0_12 = arith.constant 0 : index
      %c0_13 = arith.constant 0 : index
      %19 = vector.load %arg5[%c0_12, %c0_13] : memref<1x512xf32, #tpu.memory_space<vmem>>, vector<1x512xf32>
      %20 = vector.broadcast %19 : vector<1x512xf32> to vector<18x512xf32>
      %21 = arith.addf %18, %20 : vector<18x512xf32>
      %cst_14 = arith.constant 0.000000e+00 : f32
      %22 = vector.broadcast %cst_14 : f32 to vector<18x512xf32>
      %23 = arith.cmpf oge, %21, %22 : vector<18x512xf32>
      %cst_15 = arith.constant 2.000000e-01 : f32
      %24 = vector.broadcast %cst_15 : f32 to vector<18x512xf32>
      %25 = arith.mulf %24, %21 : vector<18x512xf32>
      %26 = arith.select %23, %21, %25 : vector<18x512xi1>, vector<18x512xf32>
      %27 = arith.truncf %26 : vector<18x512xf32> to vector<18x512xbf16>
      %c0_16 = arith.constant 0 : index
      %c0_17 = arith.constant 0 : index
      %28 = vector.load %arg6[%c0_16, %c0_17] : memref<18x512xbf16, #tpu.memory_space<vmem>>, vector<18x512xbf16>
      tpu.vector_store %arg6[%c0_16, %c0_17], %27 {strides = array<i32>} : memref<18x512xbf16, #tpu.memory_space<vmem>>, vector<18x512xbf16>,
    } else {
    }
    return
  }
  func.func @transform_0(%arg0: i32, %arg1: i32) -> (i32, i32) {
    %c0_i32 = arith.constant 0 : i32
    return %arg0, %arg1 : i32, i32
  }
  func.func @transform_1(%arg0: i32, %arg1: i32) -> (i32, i32) {
    %c0_i32 = arith.constant 0 : i32
    %c0_i32_0 = arith.constant 0 : i32
    %c0_i32_1 = arith.constant 0 : i32
    return %c0_i32, %c0_i32_0 : i32, i32
  }
  func.func @transform_2(%arg0: i32, %arg1: i32) -> (i32, i32) {
    %c0_i32 = arith.constant 0 : i32
    %c0_i32_0 = arith.constant 0 : i32
    %c0_i32_1 = arith.constant 0 : i32
    return %c0_i32, %c0_i32_0 : i32, i32
  }
  func.func @transform_3(%arg0: i32, %arg1: i32) -> (i32, i32) {
    %c0_i32 = arith.constant 0 : i32
    %c0_i32_0 = arith.constant 0 : i32
    %c0_i32_1 = arith.constant 0 : i32
    return %c0_i32, %c0_i32_0 : i32, i32
  }
  func.func @transform_4(%arg0: i32, %arg1: i32) -> (i32, i32) {
    %c0_i32 = arith.constant 0 : i32
    %c0_i32_0 = arith.constant 0 : i32
    return %arg0, %c0_i32 : i32, i32
  }
}

module attributes {stable_mosaic.version = 11 : i64} {
  func.func @_head_kernel(%arg0: i32, %arg1: i32, %arg2: memref<8x512xbf16, #tpu.memory_space<vmem>>, %arg3: memref<1x8192xf32, #tpu.memory_space<vmem>>, %arg4: memref<1x1xf32, #tpu.memory_space<vmem>>, %arg5: memref<8x1xf32, #tpu.memory_space<vmem>>, %arg6: memref<8x128xf32, #tpu.memory_space<vmem>>) attributes {dimension_semantics = [#tpu.dimension_semantics<parallel>, #tpu.dimension_semantics<arbitrary>], iteration_bounds = array<i64: 1, 16>, scalar_prefetch = 0 : i64, scratch_operands = 1 : i64, tpu.core_type = #tpu.core_type<tc>, window_params = [{transform_indices = @transform_0, window_bounds = array<i64: 8, 512>}, {pipeline_mode = #tpu.pipeline_mode<synchronous>, transform_indices = @transform_1, window_bounds = array<i64: 1, 8192>}, {pipeline_mode = #tpu.pipeline_mode<synchronous>, transform_indices = @transform_2, window_bounds = array<i64: 1, 1>}, {transform_indices = @transform_3, window_bounds = array<i64: 8, 1>}]} {
    %c0_i32 = arith.constant 0 : i32
    %0 = arith.cmpi eq, %arg1, %c0_i32 : i32
    %1 = arith.extui %0 : i1 to i32
    %c0_i32_0 = arith.constant 0 : i32
    %2 = arith.cmpi ne, %1, %c0_i32_0 : i32
    scf.if %2 {
      %cst = arith.constant 0.000000e+00 : f32
      %54 = vector.broadcast %cst : f32 to vector<8x128xf32>
      %c0_30 = arith.constant 0 : index
      %c0_31 = arith.constant 0 : index
      %55 = vector.load %arg6[%c0_30, %c0_31] : memref<8x128xf32, #tpu.memory_space<vmem>>, vector<8x128xf32>
      tpu.vector_store %arg6[%c0_30, %c0_31], %54 {strides = array<i32>} : memref<8x128xf32, #tpu.memory_space<vmem>>, vector<8x128xf32>,
    } else {
    }
    %c512_i32 = arith.constant 512 : i32
    %3 = arith.muli %arg1, %c512_i32 : i32
    %c0_i32_1 = arith.constant 0 : i32
    %4 = arith.addi %3, %c0_i32_1 : i32
    %5 = tpu.assume_multiple %4, 128 : i32
    %c0 = arith.constant 0 : index
    %c0_2 = arith.constant 0 : index
    %6 = vector.load %arg2[%c0, %c0_2] : memref<8x512xbf16, #tpu.memory_space<vmem>>, vector<8x128xbf16>
    %7 = arith.extf %6 : vector<8x128xbf16> to vector<8x128xf32>
    %c0_3 = arith.constant 0 : index
    %c0_4 = arith.constant 0 : index
    %8 = vector.load %arg6[%c0_3, %c0_4] : memref<8x128xf32, #tpu.memory_space<vmem>>, vector<8x128xf32>
    %c0_5 = arith.constant 0 : index
    %9 = arith.index_cast %5 : i32 to index
    %10 = vector.load %arg3[%c0_5, %9] : memref<1x8192xf32, #tpu.memory_space<vmem>>, vector<1x128xf32>
    %11 = vector.broadcast %10 : vector<1x128xf32> to vector<8x128xf32>
    %12 = arith.mulf %7, %11 : vector<8x128xf32>
    %13 = arith.addf %8, %12 : vector<8x128xf32>
    %c0_6 = arith.constant 0 : index
    %c0_7 = arith.constant 0 : index
    %14 = vector.load %arg6[%c0_6, %c0_7] : memref<8x128xf32, #tpu.memory_space<vmem>>, vector<8x128xf32>
    tpu.vector_store %arg6[%c0_6, %c0_7], %13 {strides = array<i32>} : memref<8x128xf32, #tpu.memory_space<vmem>>, vector<8x128xf32>,
    %c512_i32_8 = arith.constant 512 : i32
    %15 = arith.muli %arg1, %c512_i32_8 : i32
    %c128_i32 = arith.constant 128 : i32
    %16 = arith.addi %15, %c128_i32 : i32
    %17 = tpu.assume_multiple %16, 128 : i32
    %c0_9 = arith.constant 0 : index
    %c128 = arith.constant 128 : index
    %18 = vector.load %arg2[%c0_9, %c128] : memref<8x512xbf16, #tpu.memory_space<vmem>>, vector<8x128xbf16>
    %19 = arith.extf %18 : vector<8x128xbf16> to vector<8x128xf32>
    %c0_10 = arith.constant 0 : index
    %c0_11 = arith.constant 0 : index
    %20 = vector.load %arg6[%c0_10, %c0_11] : memref<8x128xf32, #tpu.memory_space<vmem>>, vector<8x128xf32>
    %c0_12 = arith.constant 0 : index
    %21 = arith.index_cast %17 : i32 to index
    %22 = vector.load %arg3[%c0_12, %21] : memref<1x8192xf32, #tpu.memory_space<vmem>>, vector<1x128xf32>
    %23 = vector.broadcast %22 : vector<1x128xf32> to vector<8x128xf32>
    %24 = arith.mulf %19, %23 : vector<8x128xf32>
    %25 = arith.addf %20, %24 : vector<8x128xf32>
    %c0_13 = arith.constant 0 : index
    %c0_14 = arith.constant 0 : index
    %26 = vector.load %arg6[%c0_13, %c0_14] : memref<8x128xf32, #tpu.memory_space<vmem>>, vector<8x128xf32>
    tpu.vector_store %arg6[%c0_13, %c0_14], %25 {strides = array<i32>} : memref<8x128xf32, #tpu.memory_space<vmem>>, vector<8x128xf32>,
    %c512_i32_15 = arith.constant 512 : i32
    %27 = arith.muli %arg1, %c512_i32_15 : i32
    %c256_i32 = arith.constant 256 : i32
    %28 = arith.addi %27, %c256_i32 : i32
    %29 = tpu.assume_multiple %28, 128 : i32
    %c0_16 = arith.constant 0 : index
    %c256 = arith.constant 256 : index
    %30 = vector.load %arg2[%c0_16, %c256] : memref<8x512xbf16, #tpu.memory_space<vmem>>, vector<8x128xbf16>
    %31 = arith.extf %30 : vector<8x128xbf16> to vector<8x128xf32>
    %c0_17 = arith.constant 0 : index
    %c0_18 = arith.constant 0 : index
    %32 = vector.load %arg6[%c0_17, %c0_18] : memref<8x128xf32, #tpu.memory_space<vmem>>, vector<8x128xf32>
    %c0_19 = arith.constant 0 : index
    %33 = arith.index_cast %29 : i32 to index
    %34 = vector.load %arg3[%c0_19, %33] : memref<1x8192xf32, #tpu.memory_space<vmem>>, vector<1x128xf32>
    %35 = vector.broadcast %34 : vector<1x128xf32> to vector<8x128xf32>
    %36 = arith.mulf %31, %35 : vector<8x128xf32>
    %37 = arith.addf %32, %36 : vector<8x128xf32>
    %c0_20 = arith.constant 0 : index
    %c0_21 = arith.constant 0 : index
    %38 = vector.load %arg6[%c0_20, %c0_21] : memref<8x128xf32, #tpu.memory_space<vmem>>, vector<8x128xf32>
    tpu.vector_store %arg6[%c0_20, %c0_21], %37 {strides = array<i32>} : memref<8x128xf32, #tpu.memory_space<vmem>>, vector<8x128xf32>,
    %c512_i32_22 = arith.constant 512 : i32
    %39 = arith.muli %arg1, %c512_i32_22 : i32
    %c384_i32 = arith.constant 384 : i32
    %40 = arith.addi %39, %c384_i32 : i32
    %41 = tpu.assume_multiple %40, 128 : i32
    %c0_23 = arith.constant 0 : index
    %c384 = arith.constant 384 : index
    %42 = vector.load %arg2[%c0_23, %c384] : memref<8x512xbf16, #tpu.memory_space<vmem>>, vector<8x128xbf16>
    %43 = arith.extf %42 : vector<8x128xbf16> to vector<8x128xf32>
    %c0_24 = arith.constant 0 : index
    %c0_25 = arith.constant 0 : index
    %44 = vector.load %arg6[%c0_24, %c0_25] : memref<8x128xf32, #tpu.memory_space<vmem>>, vector<8x128xf32>
    %c0_26 = arith.constant 0 : index
    %45 = arith.index_cast %41 : i32 to index
    %46 = vector.load %arg3[%c0_26, %45] : memref<1x8192xf32, #tpu.memory_space<vmem>>, vector<1x128xf32>
    %47 = vector.broadcast %46 : vector<1x128xf32> to vector<8x128xf32>
    %48 = arith.mulf %43, %47 : vector<8x128xf32>
    %49 = arith.addf %44, %48 : vector<8x128xf32>
    %c0_27 = arith.constant 0 : index
    %c0_28 = arith.constant 0 : index
    %50 = vector.load %arg6[%c0_27, %c0_28] : memref<8x128xf32, #tpu.memory_space<vmem>>, vector<8x128xf32>
    tpu.vector_store %arg6[%c0_27, %c0_28], %49 {strides = array<i32>} : memref<8x128xf32, #tpu.memory_space<vmem>>, vector<8x128xf32>,
    %c15_i32 = arith.constant 15 : i32
    %51 = arith.cmpi eq, %arg1, %c15_i32 : i32
    %52 = arith.extui %51 : i1 to i32
    %c0_i32_29 = arith.constant 0 : i32
    %53 = arith.cmpi ne, %52, %c0_i32_29 : i32
    scf.if %53 {
      %c0_30 = arith.constant 0 : index
      %c0_31 = arith.constant 0 : index
      %54 = vector.load %arg6[%c0_30, %c0_31] : memref<8x128xf32, #tpu.memory_space<vmem>>, vector<8x128xf32>
      %cst = arith.constant dense<0.000000e+00> : vector<8xf32>
      %55 = vector.multi_reduction <add>, %54, %cst [1] : vector<8x128xf32> to vector<8xf32>
      %56 = vector.shape_cast %55 : vector<8xf32> to vector<8x1xf32>
      %c0_32 = arith.constant 0 : index
      %c0_33 = arith.constant 0 : index
      %57 = vector.load %arg4[%c0_32, %c0_33] : memref<1x1xf32, #tpu.memory_space<vmem>>, vector<1x1xf32>
      %58 = vector.broadcast %57 : vector<1x1xf32> to vector<8x1xf32>
      %59 = arith.addf %56, %58 : vector<8x1xf32>
      %c0_34 = arith.constant 0 : index
      %c0_35 = arith.constant 0 : index
      %60 = vector.load %arg5[%c0_34, %c0_35] : memref<8x1xf32, #tpu.memory_space<vmem>>, vector<8x1xf32>
      tpu.vector_store %arg5[%c0_34, %c0_35], %59 {strides = array<i32>} : memref<8x1xf32, #tpu.memory_space<vmem>>, vector<8x1xf32>,
    } else {
    }
    return
  }
  func.func @transform_0(%arg0: i32, %arg1: i32) -> (i32, i32) {
    %c0_i32 = arith.constant 0 : i32
    return %arg0, %arg1 : i32, i32
  }
  func.func @transform_1(%arg0: i32, %arg1: i32) -> (i32, i32) {
    %c0_i32 = arith.constant 0 : i32
    %c0_i32_0 = arith.constant 0 : i32
    %c0_i32_1 = arith.constant 0 : i32
    return %c0_i32, %c0_i32_0 : i32, i32
  }
  func.func @transform_2(%arg0: i32, %arg1: i32) -> (i32, i32) {
    %c0_i32 = arith.constant 0 : i32
    %c0_i32_0 = arith.constant 0 : i32
    %c0_i32_1 = arith.constant 0 : i32
    return %c0_i32, %c0_i32_0 : i32, i32
  }
  func.func @transform_3(%arg0: i32, %arg1: i32) -> (i32, i32) {
    %c0_i32 = arith.constant 0 : i32
    %c0_i32_0 = arith.constant 0 : i32
    return %arg0, %c0_i32 : i32, i32
  }
}

</mosaic_0001>

<bundles_post_ra>
// kernel: _lambda_.5
= control target key start
LH: loop header
LB: loop body
LE: loop exit
PB: predicated region body
PF: predicated region fallthrough
CT: control target
= control target key end

     0   :  { %vm22_vm0 = vcmask 523264   ;;  %v1993_v1 = vmov 0.0   ;;  %vm404_vm1 = vcmask 392192   ;;  %vm1576_vm2 = vcmask 519168   ;;  %s2896_s1 = inlined_call_operand.vmem [shape: bf16[48,64], index: 1, kind: input, shape index: {}]   ;;  %s2897_s0 = inlined_call_operand.vmem [shape: bf16[512,48], index: 0, kind: input, shape index: {}]   ;;  %s2898_s2 = inlined_call_operand.vmem [shape: f32[1,64], index: 2, kind: input, shape index: {}]   ;;  %s2899_s3 = inlined_call_operand.vmem [shape: f32[1,64], index: 3, kind: input, shape index: {}]   ;;  %s2900_s4 = inlined_call_operand.vmem [shape: bf16[512,64], index: 4, kind: output, shape index: {}]  }
   0x1   :  { %v2022_v0 = vld [vmem:[%s2896_s1 + $0x10] sm:$0xff]   ;;  %25 = vst.msk [vmem:[#allocation2 + $0x10] sm:$0xff] %vm22_vm0, %v1993_v1  ;;  %23 = vst.msk [vmem:[#allocation2] sm:$0xff] %vm22_vm0, %v1993_v1  ;;  %v1957_v2 = vld [vmem:[%s2896_s1 + $0x8] sm:$0xff]  }
   0x2   :  { %24 = vst.msk [vmem:[#allocation2 + $0x8] sm:$0xff] %vm22_vm0, %v1993_v1  ;;  %26 = vst.msk [vmem:[#allocation2 + $0x18] sm:$0xff] %vm22_vm0, %v1993_v1  ;;  %1879 = vmatprep.subr.bf16.mxu0 %v2022_v0  ;;  %1949 = vmatprep.subr.bf16.mxu1 %v2022_v0  ;;  %v1958_v3 = vld [vmem:[%s2896_s1] sm:$0xff]   ;;  %v1961_v6 = vld [vmem:[%s2897_s0 + $0x8] sm:$0xff]  }
   0x3   :  { %27 = vst.msk [vmem:[#allocation2 + $0x20] sm:$0xff] %vm22_vm0, %v1993_v1  ;;  %28 = vst.msk [vmem:[#allocation2 + $0x28] sm:$0xff] %vm22_vm0, %v1993_v1  ;;  %1880 = vmatpush3.bf16.msra.mxu0 %v2022_v0  ;;  %1952 = vmatpush3.bf16.msra.mxu1 %v2022_v0  ;;  %v1959_v4 = vld [vmem:[%s2897_s0] sm:$0xff]   ;;  %v1962_v7 = vld [vmem:[%s2897_s0 + $0x88] sm:$0xff]  }
   0x4   :  { %29 = vst.msk [vmem:[#allocation2 + $0x30] sm:$0xff] %vm22_vm0, %v1993_v1  ;;  %30 = vst.msk [vmem:[#allocation2 + $0x38] sm:$0xff] %vm22_vm0, %v1993_v1  ;;  %1881 = vmatprep.subr.bf16.mxu0 %v1957_v2  ;;  %1950 = vmatprep.subr.bf16.mxu1 %v1957_v2  ;;  %v1960_v5 = vld [vmem:[%s2897_s0 + $0x80] sm:$0xff]   ;;  %v1963_v8 = vld [vmem:[%s2897_s0 + $0x10] sm:$0xff]  }
   0x5   :  { %31 = vst.msk [vmem:[#allocation2 + $0x40] sm:$0xff] %vm22_vm0, %v1993_v1  ;;  %32 = vst.msk [vmem:[#allocation2 + $0x48] sm:$0xff] %vm22_vm0, %v1993_v1  ;;  %1885 = vmatprep.mubr.msk.bf16.mxu0 %vm404_vm1, %v1959_v4  ;;  %1917 = vmatprep.mubr.msk.bf16.mxu1 %vm404_vm1, %v1960_v5  ;;  %v1964_v9 = vld [vmem:[%s2897_s0 + $0x90] sm:$0xff]   ;;  %v1965_v10 = vld [vmem:[%s2897_s0 + $0x18] sm:$0xff]  }
   0x6   :  { %33 = vst.msk [vmem:[#allocation2 + $0x50] sm:$0xff] %vm22_vm0, %v1993_v1  ;;  %34 = vst.msk [vmem:[#allocation2 + $0x58] sm:$0xff] %vm22_vm0, %v1993_v1  ;;  %v1966_v11 = vld [vmem:[%s2897_s0 + $0x98] sm:$0xff]   ;;  %v1967_v12 = vld [vmem:[%s2897_s0 + $0x20] sm:$0xff]  }
   0x7   :  { %35 = vst.msk [vmem:[#allocation2 + $0x60] sm:$0xff] %vm22_vm0, %v1993_v1  ;;  %36 = vst.msk [vmem:[#allocation2 + $0x68] sm:$0xff] %vm22_vm0, %v1993_v1  ;;  %1882 = vmatpush3.bf16.msra.mxu0 %v1957_v2  ;;  %1953 = vmatpush3.bf16.msra.mxu1 %v1957_v2  ;;  %v1968_v13 = vld [vmem:[%s2897_s0 + $0xa0] sm:$0xff]   ;;  %v1969_v14 = vld [vmem:[%s2897_s0 + $0x28] sm:$0xff]  }
   0x8   :  { %37 = vst.msk [vmem:[#allocation2 + $0x70] sm:$0xff] %vm22_vm0, %v1993_v1  ;;  %38 = vst.msk [vmem:[#allocation2 + $0x78] sm:$0xff] %vm22_vm0, %v1993_v1  ;;  %1883 = vmatprep.subr.bf16.mxu0 %v1958_v3  ;;  %1951 = vmatprep.subr.bf16.mxu1 %v1958_v3  ;;  %v1970_v15 = vld [vmem:[%s2897_s0 + $0xa8] sm:$0xff]   ;;  %v1971_v16 = vld [vmem:[%s2897_s0 + $0x30] sm:$0xff]  }
   0x9   :  { %39 = vst.msk [vmem:[#allocation2 + $0x80] sm:$0xff] %vm22_vm0, %v1993_v1  ;;  %40 = vst.msk [vmem:[#allocation2 + $0x88] sm:$0xff] %vm22_vm0, %v1993_v1  ;;  %v1972_v17 = vld [vmem:[%s2897_s0 + $0xb0] sm:$0xff]   ;;  %v1973_v18 = vld [vmem:[%s2897_s0 + $0x38] sm:$0xff]  }
   0xa   :  { %41 = vst.msk [vmem:[#allocation2 + $0x90] sm:$0xff] %vm22_vm0, %v1993_v1  ;;  %42 = vst.msk [vmem:[#allocation2 + $0x98] sm:$0xff] %vm22_vm0, %v1993_v1  ;;  %v1974_v19 = vld [vmem:[%s2897_s0 + $0xb8] sm:$0xff]   ;;  %v1975_v20 = vld [vmem:[%s2897_s0 + $0x40] sm:$0xff]  }
   0xb   :  { %43 = vst.msk [vmem:[#allocation2 + $0xa0] sm:$0xff] %vm22_vm0, %v1993_v1  ;;  %44 = vst.msk [vmem:[#allocation2 + $0xa8] sm:$0xff] %vm22_vm0, %v1993_v1  ;;  %1884 = vmatpush3.bf16.msra.mxu0 %v1958_v3  ;;  %1954 = vmatpush3.bf16.msra.mxu1 %v1958_v3  ;;  %v1976_v21 = vld [vmem:[%s2897_s0 + $0xc0] sm:$0xff]   ;;  %v1977_v22 = vld [vmem:[%s2897_s0 + $0x48] sm:$0xff]  }
   0xc   :  { %45 = vst.msk [vmem:[#allocation2 + $0xb0] sm:$0xff] %vm22_vm0, %v1993_v1  ;;  %46 = vst.msk [vmem:[#allocation2 + $0xb8] sm:$0xff] %vm22_vm0, %v1993_v1  ;;  %v1978_v23 = vld [vmem:[%s2897_s0 + $0xc8] sm:$0xff]   ;;  %v1979_v24 = vld [vmem:[%s2897_s0 + $0x50] sm:$0xff]  }
   0xd   :  { %47 = vst.msk [vmem:[#allocation2 + $0xc0] sm:$0xff] %vm22_vm0, %v1993_v1  ;;  %48 = vst.msk [vmem:[#allocation2 + $0xc8] sm:$0xff] %vm22_vm0, %v1993_v1  ;;  %v1980_v25 = vld [vmem:[%s2897_s0 + $0xd0] sm:$0xff]   ;;  %v1981_v26 = vld [vmem:[%s2897_s0 + $0x58] sm:$0xff]  }
   0xe   :  { %49 = vst.msk [vmem:[#allocation2 + $0xd0] sm:$0xff] %vm22_vm0, %v1993_v1  ;;  %50 = vst.msk [vmem:[#allocation2 + $0xd8] sm:$0xff] %vm22_vm0, %v1993_v1  ;;  %1886 = vmatmul.mubr.msk.bf16.vlgmr.msra.gmra.mxu0 %vm404_vm1, %v1961_v6  ;;  %1918 = vmatmul.mubr.msk.bf16.vlgmr.msra.gmra.mxu1 %vm404_vm1, %v1962_v7  ;;  %v1982_v27 = vld [vmem:[%s2897_s0 + $0xd8] sm:$0xff]   ;;  %v1983_v28 = vld [vmem:[%s2897_s0 + $0x60] sm:$0xff]  }
   0xf   :  { %51 = vst.msk [vmem:[#allocation2 + $0xe0] sm:$0xff] %vm22_vm0, %v1993_v1  ;;  %52 = vst.msk [vmem:[#allocation2 + $0xe8] sm:$0xff] %vm22_vm0, %v1993_v1  ;;  %1889 = vmatprep.mubr.msk.bf16.mxu0 %vm404_vm1, %v1963_v8  ;;  %1921 = vmatprep.mubr.msk.bf16.mxu1 %vm404_vm1, %v1964_v9  ;;  %v1984_v29 = vld [vmem:[%s2897_s0 + $0xe0] sm:$0xff]   ;;  %v1985_v30 = vld [vmem:[%s2897_s0 + $0x68] sm:$0xff]  }
  0x10   :  { %53 = vst.msk [vmem:[#allocation2 + $0xf0] sm:$0xff] %vm22_vm0, %v1993_v1  ;;  %54 = vst.msk [vmem:[#allocation2 + $0xf8] sm:$0xff] %vm22_vm0, %v1993_v1  ;;  %v1986_v31 = vld [vmem:[%s2897_s0 + $0xe8] sm:$0xff]   ;;  %v1987_v32 = vld [vmem:[%s2897_s0 + $0x70] sm:$0xff]  }
  0x11   :  { %55 = vst.msk [vmem:[#allocation2 + $0x100] sm:$0xff] %vm22_vm0, %v1993_v1  ;;  %56 = vst.msk [vmem:[#allocation2 + $0x108] sm:$0xff] %vm22_vm0, %v1993_v1  ;;  %v1988_v33 = vld [vmem:[%s2897_s0 + $0xf0] sm:$0xff]   ;;  %v1989_v34 = vld [vmem:[%s2897_s0 + $0x78] sm:$0xff]  }
  0x12   :  { %57 = vst.msk [vmem:[#allocation2 + $0x110] sm:$0xff] %vm22_vm0, %v1993_v1  ;;  %58 = vst.msk [vmem:[#allocation2 + $0x118] sm:$0xff] %vm22_vm0, %v1993_v1  ;;  %v1990_v35 = vld [vmem:[%s2897_s0 + $0xf8] sm:$0xff]   ;;  %v90_v36 = vld [vmem:[#allocation2 + $0x10] sm:$0xff] }
  0x13   :  { %59 = vst.msk [vmem:[#allocation2 + $0x120] sm:$0xff] %vm22_vm0, %v1993_v1  ;;  %60 = vst.msk [vmem:[#allocation2 + $0x128] sm:$0xff] %vm22_vm0, %v1993_v1  ;;  %v88_v40 = vld [vmem:[#allocation2] sm:$0xff]  ;;  %v91_v46 = vld [vmem:[#allocation2 + $0x18] sm:$0xff] }
  0x14   :  { %61 = vst.msk [vmem:[#allocation2 + $0x130] sm:$0xff] %vm22_vm0, %v1993_v1  ;;  %62 = vst.msk [vmem:[#allocation2 + $0x138] sm:$0xff] %vm22_vm0, %v1993_v1  ;;  %v89_v52 = vld [vmem:[#allocation2 + $0x8] sm:$0xff]  ;;  %v94_v58 = vld [vmem:[#allocation2 + $0x30] sm:$0xff] }
  0x15   :  { %63 = vst.msk [vmem:[#allocation2 + $0x140] sm:$0xff] %vm22_vm0, %v1993_v1  ;;  %64 = vst.msk [vmem:[#allocation2 + $0x148] sm:$0xff] %vm22_vm0, %v1993_v1  ;;  %v2299_v62 = vld [vmem:[%s2898_s2] ss:$0 sm:$0xff] }
  0x16   :  { %65 = vst.msk [vmem:[#allocation2 + $0x150] sm:$0xff] %vm22_vm0, %v1993_v1  ;;  %66 = vst.msk [vmem:[#allocation2 + $0x158] sm:$0xff] %vm22_vm0, %v1993_v1  ;;  %1890 = vmatmul.mubr.msk.bf16.gmra.mxu0 %vm404_vm1, %v1965_v10  ;;  %1922 = vmatmul.mubr.msk.bf16.gmra.mxu1 %vm404_vm1, %v1966_v11  ;;  %v2306_v6 = vld [vmem:[%s2899_s3] ss:$0 sm:$0xff] }
  0x17   :  { %67 = vst.msk [vmem:[#allocation2 + $0x160] sm:$0xff] %vm22_vm0, %v1993_v1  ;;  %68 = vst.msk [vmem:[#allocation2 + $0x168] sm:$0xff] %vm22_vm0, %v1993_v1  ;;  %1893 = vmatprep.mubr.msk.bf16.mxu0 %vm404_vm1, %v1967_v12  ;;  %1925 = vmatprep.mubr.msk.bf16.mxu1 %vm404_vm1, %v1968_v13 }
  0x18   :  { %69 = vst.msk [vmem:[#allocation2 + $0x170] sm:$0xff] %vm22_vm0, %v1993_v1  ;;  %70 = vst.msk [vmem:[#allocation2 + $0x178] sm:$0xff] %vm22_vm0, %v1993_v1  ;;  %v120_v41 = vld [vmem:[#allocation2 + $0x100] sm:$0xff]  ;;  %v121_v53 = vld [vmem:[#allocation2 + $0x108] sm:$0xff] }
  0x19   :  { %71 = vst.msk [vmem:[#allocation2 + $0x180] sm:$0xff] %vm22_vm0, %v1993_v1  ;;  %72 = vst.msk [vmem:[#allocation2 + $0x188] sm:$0xff] %vm22_vm0, %v1993_v1  ;;  %v122_v37 = vld [vmem:[#allocation2 + $0x110] sm:$0xff]  ;;  %v123_v47 = vld [vmem:[#allocation2 + $0x118] sm:$0xff] }
  0x1a   :  { %73 = vst.msk [vmem:[#allocation2 + $0x190] sm:$0xff] %vm22_vm0, %v1993_v1  ;;  %74 = vst.msk [vmem:[#allocation2 + $0x198] sm:$0xff] %vm22_vm0, %v1993_v1  ;;  %v124_v2 = vld [vmem:[#allocation2 + $0x120] sm:$0xff] }
  0x1b   :  { %75 = vst.msk [vmem:[#allocation2 + $0x1a0] sm:$0xff] %vm22_vm0, %v1993_v1  ;;  %76 = vst.msk [vmem:[#allocation2 + $0x1a8] sm:$0xff] %vm22_vm0, %v1993_v1  ;;  %v126_v59 = vld [vmem:[#allocation2 + $0x130] sm:$0xff] }
  0x1c   :  { %77 = vst.msk [vmem:[#allocation2 + $0x1b0] sm:$0xff] %vm22_vm0, %v1993_v1  ;;  %78 = vst.msk [vmem:[#allocation2 + $0x1b8] sm:$0xff] %vm22_vm0, %v1993_v1 }
  0x1d   :  { %79 = vst.msk [vmem:[#allocation2 + $0x1c0] sm:$0xff] %vm22_vm0, %v1993_v1  ;;  %80 = vst.msk [vmem:[#allocation2 + $0x1c8] sm:$0xff] %vm22_vm0, %v1993_v1 }
  0x1e   :  { %81 = vst.msk [vmem:[#allocation2 + $0x1d0] sm:$0xff] %vm22_vm0, %v1993_v1  ;;  %82 = vst.msk [vmem:[#allocation2 + $0x1d8] sm:$0xff] %vm22_vm0, %v1993_v1  ;;  %1894 = vmatmul.mubr.msk.bf16.gmra.mxu0 %vm404_vm1, %v1969_v14  ;;  %1926 = vmatmul.mubr.msk.bf16.gmra.mxu1 %vm404_vm1, %v1970_v15  ;;  %v95_v14 = vld [vmem:[#allocation2 + $0x38] sm:$0xff] }
  0x1f   :  { %83 = vst.msk [vmem:[#allocation2 + $0x1e0] sm:$0xff] %vm22_vm0, %v1993_v1  ;;  %84 = vst.msk [vmem:[#allocation2 + $0x1e8] sm:$0xff] %vm22_vm0, %v1993_v1  ;;  %1897 = vmatprep.mubr.msk.bf16.mxu0 %vm404_vm1, %v1971_v16  ;;  %1929 = vmatprep.mubr.msk.bf16.mxu1 %vm404_vm1, %v1972_v17  ;;  %v127_v15 = vld [vmem:[#allocation2 + $0x138] sm:$0xff] }
  0x20   :  { %85 = vst.msk [vmem:[#allocation2 + $0x1f0] sm:$0xff] %vm22_vm0, %v1993_v1  ;;  %86 = vst.msk [vmem:[#allocation2 + $0x1f8] sm:$0xff] %vm22_vm0, %v1993_v1  ;;  %v92_v1 = vld [vmem:[#allocation2 + $0x20] sm:$0xff] }
  0x26   :  { %1898 = vmatmul.mubr.msk.bf16.gmra.mxu0 %vm404_vm1, %v1973_v18  ;;  %1930 = vmatmul.mubr.msk.bf16.gmra.mxu1 %vm404_vm1, %v1974_v19 }
  0x27   :  { %1901 = vmatprep.mubr.msk.bf16.mxu0 %vm404_vm1, %v1975_v20  ;;  %1933 = vmatprep.mubr.msk.bf16.mxu1 %vm404_vm1, %v1976_v21 }
  0x2e   :  { %1902 = vmatmul.mubr.msk.bf16.gmra.mxu0 %vm404_vm1, %v1977_v22  ;;  %1934 = vmatmul.mubr.msk.bf16.gmra.mxu1 %vm404_vm1, %v1978_v23 }
  0x2f   :  { %1905 = vmatprep.mubr.msk.bf16.mxu0 %vm404_vm1, %v1979_v24  ;;  %1937 = vmatprep.mubr.msk.bf16.mxu1 %vm404_vm1, %v1980_v25 }
  0x36   :  { %1906 = vmatmul.mubr.msk.bf16.gmra.mxu0 %vm404_vm1, %v1981_v26  ;;  %1938 = vmatmul.mubr.msk.bf16.gmra.mxu1 %vm404_vm1, %v1982_v27 }
  0x37   :  { %1909 = vmatprep.mubr.msk.bf16.mxu0 %vm404_vm1, %v1983_v28  ;;  %1941 = vmatprep.mubr.msk.bf16.mxu1 %vm404_vm1, %v1984_v29 }
  0x3e   :  { %1910 = vmatmul.mubr.msk.bf16.gmra.mxu0 %vm404_vm1, %v1985_v30  ;;  %1942 = vmatmul.mubr.msk.bf16.gmra.mxu1 %vm404_vm1, %v1986_v31 }
  0x3f   :  { %1913 = vmatprep.mubr.msk.bf16.mxu0 %vm404_vm1, %v1987_v32  ;;  %1945 = vmatprep.mubr.msk.bf16.mxu1 %vm404_vm1, %v1988_v33 }
  0x46   :  { %1914 = vmatmul.mubr.msk.bf16.gmra.mxu0 %vm404_vm1, %v1989_v34  ;;  %1946 = vmatmul.mubr.msk.bf16.gmra.mxu1 %vm404_vm1, %v1990_v35 }
  0xce   :  { %v1887_v38 = vpop.f32.mrf.mxu0  ;;  %v1919_v39 = vpop.f32.mrf.mxu1 }
  0xcf   :  { %v792_v42 = vadd.f32 %v1887_v38, %v90_v36  ;;  %v824_v43 = vadd.f32 %v1919_v39, %v122_v37 }
  0xd0   :  { %v535_v44 = vpop.f32.mrf.mxu0  ;;  %v663_v45 = vpop.f32.mrf.mxu1 }
  0xd1   :  { %857 = vst.msk [vmem:[#allocation2 + $0x10] sm:$0xff] %vm22_vm0, %v792_v42  ;;  %889 = vst.msk [vmem:[#allocation2 + $0x110] sm:$0xff] %vm22_vm0, %v824_v43  ;;  %v790_v48 = vadd.f32 %v535_v44, %v88_v40  ;;  %v822_v49 = vadd.f32 %v663_v45, %v120_v41 }
  0xd2   :  { %v1888_v50 = vpop.f32.mrf.mxu0  ;;  %v1920_v51 = vpop.f32.mrf.mxu1 }
  0xd3   :  { %855 = vst.msk [vmem:[#allocation2] sm:$0xff] %vm22_vm0, %v790_v48  ;;  %887 = vst.msk [vmem:[#allocation2 + $0x100] sm:$0xff] %vm22_vm0, %v822_v49  ;;  %v793_v54 = vadd.f32 %v1888_v50, %v91_v46  ;;  %v825_v55 = vadd.f32 %v1920_v51, %v123_v47 }
  0xd4   :  { %v538_v56 = vpop.f32.mrf.mxu0  ;;  %v666_v57 = vpop.f32.mrf.mxu1 }
  0xd5   :  { %858 = vst.msk [vmem:[#allocation2 + $0x18] sm:$0xff] %vm22_vm0, %v793_v54  ;;  %890 = vst.msk [vmem:[#allocation2 + $0x118] sm:$0xff] %vm22_vm0, %v825_v55  ;;  %v791_v60 = vadd.f32 %v538_v56, %v89_v52  ;;  %v823_v61 = vadd.f32 %v666_v57, %v121_v53 }
  0xd6   :  { %v1891_v63 = vpop.f32.mrf.mxu0  ;;  %v1923_v0 = vpop.f32.mrf.mxu1 }
  0xd7   :  { %856 = vst.msk [vmem:[#allocation2 + $0x8] sm:$0xff] %vm22_vm0, %v791_v60  ;;  %888 = vst.msk [vmem:[#allocation2 + $0x108] sm:$0xff] %vm22_vm0, %v823_v61  ;;  %v796_v3 = vadd.f32 %v1891_v63, %v94_v58  ;;  %v828_v4 = vadd.f32 %v1923_v0, %v126_v59 }
  0xd8   :  { %v924_v5 = vld [vmem:[#allocation2 + $0x10] sm:$0xff]  ;;  %v551_v8 = vpop.f32.mrf.mxu0  ;;  %v679_v9 = vpop.f32.mrf.mxu1 }
  0xd9   :  { %v956_v7 = vld [vmem:[#allocation2 + $0x110] sm:$0xff]  ;;  %v995_v10 = vmul.f32 %v2299_v62, %v924_v5  ;;  %861 = vst.msk [vmem:[#allocation2 + $0x30] sm:$0xff] %vm22_vm0, %v796_v3  ;;  %893 = vst.msk [vmem:[#allocation2 + $0x130] sm:$0xff] %vm22_vm0, %v828_v4  ;;  %v794_v12 = vadd.f32 %v551_v8, %v92_v1  ;;  %v826_v13 = vadd.f32 %v679_v9, %v124_v2 }
  0xda   :  { %v1027_v11 = vmul.f32 %v2299_v62, %v956_v7  ;;  %v922_v16 = vld [vmem:[#allocation2] sm:$0xff]  ;;  %v1892_v18 = vpop.f32.mrf.mxu0  ;;  %v1924_v19 = vpop.f32.mrf.mxu1 }
  0xdb   :  { %v954_v17 = vld [vmem:[#allocation2 + $0x100] sm:$0xff]  ;;  %v1066_v20 = vadd.f32 %v2306_v6, %v995_v10  ;;  %v993_v22 = vmul.f32 %v2299_v62, %v922_v16  ;;  %859 = vst.msk [vmem:[#allocation2 + $0x20] sm:$0xff] %vm22_vm0, %v794_v12  ;;  %891 = vst.msk [vmem:[#allocation2 + $0x120] sm:$0xff] %vm22_vm0, %v826_v13  ;;  %v797_v26 = vadd.f32 %v1892_v18, %v95_v14 }
  0xdc   :  { %v1098_v21 = vadd.f32 %v2306_v6, %v1027_v11  ;;  %v1025_v23 = vmul.f32 %v2299_v62, %v954_v17  ;;  %v925_v24 = vld [vmem:[#allocation2 + $0x18] sm:$0xff]  ;;  %v829_v27 = vadd.f32 %v1924_v19, %v127_v15  ;;  %v2318_v28 = vpop.f32.mrf.mxu0  ;;  %v2320_v29 = vpop.f32.mrf.mxu1 }
  0xdd   :  { %v957_v25 = vld [vmem:[#allocation2 + $0x118] sm:$0xff]  ;;  %vm1130_vm3 = vcmp.ge.f32.partialorder %v1066_v20, 0.0  ;;  %v1194_v30 = vmul.f32 0.2, %v1066_v20  ;;  %v1064_v32 = vadd.f32 %v2306_v6, %v993_v22  ;;  %v996_v34 = vmul.f32 %v2299_v62, %v925_v24  ;;  %862 = vst.msk [vmem:[#allocation2 + $0x38] sm:$0xff] %vm22_vm0, %v797_v26  ;;  %v93_v22 = vld [vmem:[#allocation2 + $0x28] sm:$0xff] }
  0xde   :  { %vm1162_vm4 = vcmp.ge.f32.partialorder %v1098_v21, 0.0  ;;  %v1226_v31 = vmul.f32 0.2, %v1098_v21  ;;  %v1096_v33 = vadd.f32 %v2306_v6, %v1025_v23  ;;  %v1028_v35 = vmul.f32 %v2299_v62, %v957_v25  ;;  %v923_v36 = vld [vmem:[#allocation2 + $0x8] sm:$0xff]  ;;  %894 = vst.msk [vmem:[#allocation2 + $0x138] sm:$0xff] %vm22_vm0, %v829_v27  ;;  %v2328_v38 = vpop.f32.mrf.mxu0  ;;  %v2330_v39 = vpop.f32.mrf.mxu1 }
  0xdf   :  { %v955_v37 = vld [vmem:[#allocation2 + $0x108] sm:$0xff]  ;;  %v1258_v40 = vsel %vm1130_vm3, %v1066_v20, %v1194_v30  ;;  %v994_v42 = vmul.f32 %v2299_v62, %v923_v36  ;;  %vm1128_vm5 = vcmp.ge.f32.partialorder %v1064_v32, 0.0  ;;  %v1192_v46 = vmul.f32 0.2, %v1064_v32 }
  0xe0   :  { %v1290_v41 = vsel %vm1162_vm4, %v1098_v21, %v1226_v31  ;;  %v1026_v43 = vmul.f32 %v2299_v62, %v955_v37  ;;  %v1782_v44 = vpack.c.bf16 %v1258_v40, %v1258_v40  ;;  %v928_v47 = vld [vmem:[#allocation2 + $0x30] sm:$0xff]  ;;  %v2334_v48 = vpop.f32.mrf.mxu0  ;;  %v2336_v49 = vpop.f32.mrf.mxu1  ;;  %vm1160_vm6 = vcmp.ge.f32.partialorder %v1096_v33, 0.0  ;;  %v125_v23 = vld [vmem:[#allocation2 + $0x128] sm:$0xff] }
  0xe1   :  { %v1814_v45 = vpack.c.bf16 %v1290_v41, %v1290_v41  ;;  %v1224_v50 = vmul.f32 0.2, %v1096_v33  ;;  %v1067_v51 = vadd.f32 %v2306_v6, %v996_v34  ;;  %v1099_v52 = vadd.f32 %v2306_v6, %v1028_v35  ;;  %v960_v63 = vld [vmem:[#allocation2 + $0x130] sm:$0xff] }
  0xe2   :  { %1579 = vst.msk [vmem:[%s2900_s4 + $0x8] sm:$0xf] %vm1576_vm2, %v1782_v44  ;;  %v1256_v53 = vsel %vm1128_vm5, %v1064_v32, %v1192_v46  ;;  %v1065_v54 = vadd.f32 %v2306_v6, %v994_v42  ;;  %v1097_v55 = vadd.f32 %v2306_v6, %v1026_v43  ;;  %v999_v56 = vmul.f32 %v2299_v62, %v928_v47  ;;  %v2351_v57 = vpop.f32.mrf.mxu0  ;;  %v2353_v58 = vpop.f32.mrf.mxu1  ;;  %v926_v2 = vld [vmem:[#allocation2 + $0x20] sm:$0xff]  ;;  %v98_v41 = vld [vmem:[#allocation2 + $0x50] sm:$0xff] }
  0xe3   :  { %1611 = vst.msk [vmem:[%s2900_s4 + $0x88] sm:$0xf] %vm1576_vm2, %v1814_v45  ;;  %v1780_v59 = vpack.c.bf16 %v1256_v53, %v1256_v53  ;;  %v1288_v60 = vsel %vm1160_vm6, %v1096_v33, %v1224_v50  ;;  %vm1131_vm7 = vcmp.ge.f32.partialorder %v1067_v51, 0.0  ;;  %v1195_v61 = vmul.f32 0.2, %v1067_v51  ;;  %v958_v13 = vld [vmem:[#allocation2 + $0x120] sm:$0xff] }
  0xe4   :  { %v1812_v0 = vpack.c.bf16 %v1288_v60, %v1288_v60  ;;  %vm1163_vm8 = vcmp.ge.f32.partialorder %v1099_v52, 0.0  ;;  %v1227_v1 = vmul.f32 0.2, %v1099_v52  ;;  %vm1129_vm9 = vcmp.ge.f32.partialorder %v1065_v54, 0.0  ;;  %v2355_v3 = vpop.f32.mrf.mxu0  ;;  %v2357_v4 = vpop.f32.mrf.mxu1  ;;  %v929_v14 = vld [vmem:[#allocation2 + $0x38] sm:$0xff]  ;;  %v130_v42 = vld [vmem:[#allocation2 + $0x150] sm:$0xff] }
  0xe5   :  { %1577 = vst.msk [vmem:[%s2900_s4] sm:$0xf] %vm1576_vm2, %v1780_v59  ;;  %v1259_v5 = vsel %vm1131_vm7, %v1067_v51, %v1195_v61  ;;  %v1193_v7 = vmul.f32 0.2, %v1065_v54  ;;  %vm1161_vm10 = vcmp.ge.f32.partialorder %v1097_v55, 0.0  ;;  %v1070_v11 = vadd.f32 %v2306_v6, %v999_v56  ;;  %v961_v21 = vld [vmem:[#allocation2 + $0x138] sm:$0xff] }
  0xe6   :  { %v1225_v8 = vmul.f32 0.2, %v1097_v55  ;;  %1609 = vst.msk [vmem:[%s2900_s4 + $0x80] sm:$0xf] %vm1576_vm2, %v1812_v0  ;;  %v1783_v9 = vpack.c.bf16 %v1259_v5, %v1259_v5  ;;  %v1291_v10 = vsel %vm1163_vm8, %v1099_v52, %v1227_v1  ;;  %v1031_v12 = vmul.f32 %v2299_v62, %v960_v63  ;;  %v2369_v15 = vpop.f32.mrf.mxu0  ;;  %v2371_v16 = vpop.f32.mrf.mxu1  ;;  %v96_v43 = vld [vmem:[#allocation2 + $0x40] sm:$0xff]  ;;  %v99_v61 = vld [vmem:[#allocation2 + $0x58] sm:$0xff] }
  0xe7   :  { %v1815_v17 = vpack.c.bf16 %v1291_v10, %v1291_v10  ;;  %v1257_v18 = vsel %vm1129_vm9, %v1065_v54, %v1193_v7  ;;  %v997_v20 = vmul.f32 %v2299_v62, %v926_v2  ;;  %vm1134_vm11 = vcmp.ge.f32.partialorder %v1070_v11, 0.0  ;;  %v128_v60 = vld [vmem:[#allocation2 + $0x140] sm:$0xff]  ;;  %v131_v2 = vld [vmem:[#allocation2 + $0x158] sm:$0xff]  ;;  %v97_v5 = vld [vmem:[#allocation2 + $0x48] sm:$0xff] }
  0xe8   :  { %v1289_v19 = vsel %vm1161_vm10, %v1097_v55, %v1225_v8  ;;  %1580 = vst.msk [vmem:[%s2900_s4 + $0xc] sm:$0xf] %vm1576_vm2, %v1783_v9  ;;  %v1781_v24 = vpack.c.bf16 %v1257_v18, %v1257_v18  ;;  %v1198_v26 = vmul.f32 0.2, %v1070_v11  ;;  %v2379_v27 = vpop.f32.mrf.mxu0  ;;  %v2381_v30 = vpop.f32.mrf.mxu1  ;;  %v1102_v31 = vadd.f32 %v2306_v6, %v1031_v12  ;;  %v129_v7 = vld [vmem:[#allocation2 + $0x148] sm:$0xff]  ;;  %v132_v18 = vld [vmem:[#allocation2 + $0x160] sm:$0xff] }
  0xe9   :  { %v1813_v25 = vpack.c.bf16 %v1289_v19, %v1289_v19  ;;  %1612 = vst.msk [vmem:[%s2900_s4 + $0x8c] sm:$0xf] %vm1576_vm2, %v1815_v17  ;;  %v1068_v32 = vadd.f32 %v2306_v6, %v997_v20  ;;  %v1029_v33 = vmul.f32 %v2299_v62, %v958_v13  ;;  %v1000_v34 = vmul.f32 %v2299_v62, %v929_v14  ;;  %v100_v17 = vld [vmem:[#allocation2 + $0x60] sm:$0xff]  ;;  %v103_v19 = vld [vmem:[#allocation2 + $0x78] sm:$0xff] }
  0xea   :  { %1578 = vst.msk [vmem:[%s2900_s4 + $0x4] sm:$0xf] %vm1576_vm2, %v1781_v24  ;;  %v1262_v35 = vsel %vm1134_vm11, %v1070_v11, %v1198_v26  ;;  %v1032_v36 = vmul.f32 %v2299_v62, %v961_v21  ;;  %v795_v37 = vadd.f32 %v2318_v28, %v93_v22  ;;  %v827_v40 = vadd.f32 %v2320_v29, %v125_v23  ;;  %v2402_v44 = vpop.f32.mrf.mxu0  ;;  %v2404_v45 = vpop.f32.mrf.mxu1  ;;  %v101_v26 = vld [vmem:[#allocation2 + $0x68] sm:$0xff] }
  0xeb   :  { %1610 = vst.msk [vmem:[%s2900_s4 + $0x84] sm:$0xf] %vm1576_vm2, %v1813_v25  ;;  %v1786_v46 = vpack.c.bf16 %v1262_v35, %v1262_v35  ;;  %vm1166_vm12 = vcmp.ge.f32.partialorder %v1102_v31, 0.0  ;;  %v1230_v47 = vmul.f32 0.2, %v1102_v31  ;;  %vm1132_vm13 = vcmp.ge.f32.partialorder %v1068_v32, 0.0 }
  0xec   :  { %v1196_v50 = vmul.f32 0.2, %v1068_v32  ;;  %v1100_v51 = vadd.f32 %v2306_v6, %v1029_v33  ;;  %v1071_v52 = vadd.f32 %v2306_v6, %v1000_v34  ;;  %v1103_v28 = vadd.f32 %v2306_v6, %v1032_v36  ;;  %860 = vst.msk [vmem:[#allocation2 + $0x28] sm:$0xff] %vm22_vm0, %v795_v37  ;;  %892 = vst.msk [vmem:[#allocation2 + $0x128] sm:$0xff] %vm22_vm0, %v827_v40  ;;  %v2411_v29 = vpop.f32.mrf.mxu0  ;;  %v2413_v53 = vpop.f32.mrf.mxu1  ;;  %v106_v35 = vld [vmem:[#allocation2 + $0x90] sm:$0xff]  ;;  %v104_v37 = vld [vmem:[#allocation2 + $0x80] sm:$0xff] }
  0xed   :  { %1583 = vst.msk [vmem:[%s2900_s4 + $0x18] sm:$0xf] %vm1576_vm2, %v1786_v46  ;;  %v1294_v54 = vsel %vm1166_vm12, %v1102_v31, %v1230_v47  ;;  %v800_v55 = vadd.f32 %v2328_v38, %v98_v41  ;;  %v832_v56 = vadd.f32 %v2330_v39, %v130_v42  ;;  %v798_v59 = vadd.f32 %v2334_v48, %v96_v43  ;;  %v102_v39 = vld [vmem:[#allocation2 + $0x70] sm:$0xff]  ;;  %v136_v46 = vld [vmem:[#allocation2 + $0x180] sm:$0xff] }
  0xee   :  { %v1818_v63 = vpack.c.bf16 %v1294_v54, %v1294_v54  ;;  %v1260_v0 = vsel %vm1132_vm13, %v1068_v32, %v1196_v50  ;;  %vm1164_vm14 = vcmp.ge.f32.partialorder %v1100_v51, 0.0  ;;  %v1228_v1 = vmul.f32 0.2, %v1100_v51  ;;  %v2423_v8 = vpop.f32.mrf.mxu0  ;;  %v2425_v9 = vpop.f32.mrf.mxu1  ;;  %v134_v48 = vld [vmem:[#allocation2 + $0x170] sm:$0xff] }
  0xef   :  { %v1784_v10 = vpack.c.bf16 %v1260_v0, %v1260_v0  ;;  %vm1135_vm15 = vcmp.ge.f32.partialorder %v1071_v52, 0.0  ;;  %v1199_v38 = vmul.f32 0.2, %v1071_v52  ;;  %vm1167_vm1 = vcmp.ge.f32.partialorder %v1103_v28, 0.0  ;;  %865 = vst.msk [vmem:[#allocation2 + $0x50] sm:$0xff] %vm22_vm0, %v800_v55  ;;  %897 = vst.msk [vmem:[#allocation2 + $0x150] sm:$0xff] %vm22_vm0, %v832_v56 }
  0xf0   :  { %863 = vst.msk [vmem:[#allocation2 + $0x40] sm:$0xff] %vm22_vm0, %v798_v59  ;;  %v1292_v11 = vsel %vm1164_vm14, %v1100_v51, %v1228_v1  ;;  %v1231_v12 = vmul.f32 0.2, %v1103_v28  ;;  %v830_v13 = vadd.f32 %v2336_v49, %v128_v60  ;;  %v801_v14 = vadd.f32 %v2351_v57, %v99_v61  ;;  %v599_v20 = vpop.f32.mrf.mxu0  ;;  %v727_v21 = vpop.f32.mrf.mxu1  ;;  %v135_v49 = vld [vmem:[#allocation2 + $0x178] sm:$0xff]  ;;  %v133_v57 = vld [vmem:[#allocation2 + $0x168] sm:$0xff]  ;;  %v138_v36 = vld [vmem:[#allocation2 + $0x190] sm:$0xff] }
  0xf1   :  { %1615 = vst.msk [vmem:[%s2900_s4 + $0x98] sm:$0xf] %vm1576_vm2, %v1818_v63  ;;  %1581 = vst.msk [vmem:[%s2900_s4 + $0x10] sm:$0xf] %vm1576_vm2, %v1784_v10  ;;  %v1816_v22 = vpack.c.bf16 %v1292_v11, %v1292_v11  ;;  %v1263_v23 = vsel %vm1135_vm15, %v1071_v52, %v1199_v38  ;;  %v833_v24 = vadd.f32 %v2353_v58, %v131_v2  ;;  %v107_v51 = vld [vmem:[#allocation2 + $0x98] sm:$0xff] }
  0xf2   :  { %v799_v25 = vadd.f32 %v2355_v3, %v97_v5  ;;  %v1787_v31 = vpack.c.bf16 %v1263_v23, %v1263_v23  ;;  %v1295_v32 = vsel %vm1167_vm1, %v1103_v28, %v1231_v12  ;;  %895 = vst.msk [vmem:[#allocation2 + $0x140] sm:$0xff] %vm22_vm0, %v830_v13  ;;  %866 = vst.msk [vmem:[#allocation2 + $0x58] sm:$0xff] %vm22_vm0, %v801_v14  ;;  %v1904_v58 = vpop.f32.mrf.mxu0  ;;  %v2449_v40 = vpop.f32.mrf.mxu1  ;;  %v139_v55 = vld [vmem:[#allocation2 + $0x198] sm:$0xff] }
  0xf3   :  { %v831_v33 = vadd.f32 %v2357_v4, %v129_v7  ;;  %v804_v34 = vadd.f32 %v2369_v15, %v102_v39  ;;  %1613 = vst.msk [vmem:[%s2900_s4 + $0x90] sm:$0xf] %vm1576_vm2, %v1816_v22  ;;  %v1819_v3 = vpack.c.bf16 %v1295_v32, %v1295_v32  ;;  %v927_v41 = vld [vmem:[#allocation2 + $0x28] sm:$0xff]  ;;  %v836_v4 = vadd.f32 %v2371_v16, %v134_v48 }
  0xf4   :  { %v959_v42 = vld [vmem:[#allocation2 + $0x128] sm:$0xff]  ;;  %898 = vst.msk [vmem:[#allocation2 + $0x158] sm:$0xff] %vm22_vm0, %v833_v24  ;;  %864 = vst.msk [vmem:[#allocation2 + $0x48] sm:$0xff] %vm22_vm0, %v799_v25  ;;  %v802_v15 = vadd.f32 %v2379_v27, %v100_v17  ;;  %v834_v43 = vadd.f32 %v2381_v30, %v132_v18  ;;  %v998_v47 = vmul.f32 %v2299_v62, %v927_v41  ;;  %v2470_v30 = vpop.f32.mrf.mxu0  ;;  %v2472_v52 = vpop.f32.mrf.mxu1 }
  0xf5   :  { %1584 = vst.msk [vmem:[%s2900_s4 + $0x1c] sm:$0xf] %vm1576_vm2, %v1787_v31  ;;  %v1030_v50 = vmul.f32 %v2299_v62, %v959_v42  ;;  %v805_v16 = vadd.f32 %v2402_v44, %v103_v19  ;;  %v837_v27 = vadd.f32 %v2404_v45, %v135_v49  ;;  %1616 = vst.msk [vmem:[%s2900_s4 + $0x9c] sm:$0xf] %vm1576_vm2, %v1819_v3 }
  0xf6   :  { %896 = vst.msk [vmem:[#allocation2 + $0x148] sm:$0xff] %vm22_vm0, %v831_v33  ;;  %869 = vst.msk [vmem:[#allocation2 + $0x70] sm:$0xff] %vm22_vm0, %v804_v34  ;;  %v803_v44 = vadd.f32 %v2411_v29, %v101_v26  ;;  %v835_v45 = vadd.f32 %v2413_v53, %v133_v57  ;;  %v808_v28 = vadd.f32 %v2423_v8, %v106_v35  ;;  %v932_v60 = vld [vmem:[#allocation2 + $0x50] sm:$0xff]  ;;  %v2489_v1 = vpop.f32.mrf.mxu0  ;;  %v2491_v53 = vpop.f32.mrf.mxu1 }
  0xf7   :  { %901 = vst.msk [vmem:[#allocation2 + $0x170] sm:$0xff] %vm22_vm0, %v836_v4  ;;  %867 = vst.msk [vmem:[#allocation2 + $0x60] sm:$0xff] %vm22_vm0, %v802_v15  ;;  %v840_v54 = vadd.f32 %v2425_v9, %v138_v36  ;;  %v1069_v56 = vadd.f32 %v2306_v6, %v998_v47  ;;  %v1101_v59 = vadd.f32 %v2306_v6, %v1030_v50  ;;  %v964_v61 = vld [vmem:[#allocation2 + $0x150] sm:$0xff]  ;;  %v930_v63 = vld [vmem:[#allocation2 + $0x40] sm:$0xff] }
  0xf8   :  { %899 = vst.msk [vmem:[#allocation2 + $0x160] sm:$0xff] %vm22_vm0, %v834_v43  ;;  %870 = vst.msk [vmem:[#allocation2 + $0x78] sm:$0xff] %vm22_vm0, %v805_v16  ;;  %v806_v0 = vadd.f32 %v599_v20, %v104_v37  ;;  %v838_v29 = vadd.f32 %v727_v21, %v136_v46  ;;  %v1003_v2 = vmul.f32 %v2299_v62, %v932_v60  ;;  %v2502_v38 = vpop.f32.mrf.mxu0  ;;  %v2504_v39 = vpop.f32.mrf.mxu1 }
  0xf9   :  { %902 = vst.msk [vmem:[#allocation2 + $0x178] sm:$0xff] %vm22_vm0, %v837_v27  ;;  %v1035_v5 = vmul.f32 %v2299_v62, %v964_v61  ;;  %v1001_v7 = vmul.f32 %v2299_v62, %v930_v63  ;;  %868 = vst.msk [vmem:[#allocation2 + $0x68] sm:$0xff] %vm22_vm0, %v803_v44  ;;  %v809_v8 = vadd.f32 %v1904_v58, %v107_v51  ;;  %vm1133_vm3 = vcmp.ge.f32.partialorder %v1069_v56, 0.0  ;;  %v962_v13 = vld [vmem:[#allocation2 + $0x140] sm:$0xff]  ;;  %v933_v14 = vld [vmem:[#allocation2 + $0x58] sm:$0xff] }
  0xfa   :  { %900 = vst.msk [vmem:[#allocation2 + $0x168] sm:$0xff] %vm22_vm0, %v835_v45  ;;  %873 = vst.msk [vmem:[#allocation2 + $0x90] sm:$0xff] %vm22_vm0, %v808_v28  ;;  %v1197_v9 = vmul.f32 0.2, %v1069_v56  ;;  %vm1165_vm4 = vcmp.ge.f32.partialorder %v1101_v59, 0.0  ;;  %v1074_v48 = vadd.f32 %v2306_v6, %v1003_v2  ;;  %v841_v17 = vadd.f32 %v2449_v40, %v139_v55  ;;  %v2513_v23 = vpop.f32.mrf.mxu0  ;;  %v2515_v24 = vpop.f32.mrf.mxu1 }
  0xfb   :  { %905 = vst.msk [vmem:[#allocation2 + $0x190] sm:$0xff] %vm22_vm0, %v840_v54  ;;  %v1229_v10 = vmul.f32 0.2, %v1101_v59  ;;  %871 = vst.msk [vmem:[#allocation2 + $0x80] sm:$0xff] %vm22_vm0, %v806_v0  ;;  %v1106_v11 = vadd.f32 %v2306_v6, %v1035_v5  ;;  %v1072_v12 = vadd.f32 %v2306_v6, %v1001_v7  ;;  %v1033_v20 = vmul.f32 %v2299_v62, %v962_v13  ;;  %v965_v22 = vld [vmem:[#allocation2 + $0x158] sm:$0xff]  ;;  %v931_v57 = vld [vmem:[#allocation2 + $0x48] sm:$0xff] }
  0xfc   :  { %903 = vst.msk [vmem:[#allocation2 + $0x180] sm:$0xff] %vm22_vm0, %v838_v29  ;;  %874 = vst.msk [vmem:[#allocation2 + $0x98] sm:$0xff] %vm22_vm0, %v809_v8  ;;  %v1261_v18 = vsel %vm1133_vm3, %v1069_v56, %v1197_v9  ;;  %v1004_v21 = vmul.f32 %v2299_v62, %v933_v14  ;;  %vm1138_vm5 = vcmp.ge.f32.partialorder %v1074_v48, 0.0  ;;  %v1202_v26 = vmul.f32 0.2, %v1074_v48  ;;  %v2530_v15 = vpop.f32.mrf.mxu0  ;;  %v2532_v43 = vpop.f32.mrf.mxu1 }
  0xfd   :  { %v1293_v19 = vsel %vm1165_vm4, %v1101_v59, %v1229_v10  ;;  %v1785_v25 = vpack.c.bf16 %v1261_v18, %v1261_v18  ;;  %906 = vst.msk [vmem:[#allocation2 + $0x198] sm:$0xff] %vm22_vm0, %v841_v17  ;;  %vm1170_vm6 = vcmp.ge.f32.partialorder %v1106_v11, 0.0  ;;  %v1234_v31 = vmul.f32 0.2, %v1106_v11  ;;  %v963_v41 = vld [vmem:[#allocation2 + $0x148] sm:$0xff]  ;;  %v936_v42 = vld [vmem:[#allocation2 + $0x70] sm:$0xff] }
  0xfe   :  { %v1817_v49 = vpack.c.bf16 %v1293_v19, %v1293_v19  ;;  %vm1136_vm7 = vcmp.ge.f32.partialorder %v1072_v12, 0.0  ;;  %v1200_v32 = vmul.f32 0.2, %v1072_v12  ;;  %v1266_v33 = vsel %vm1138_vm5, %v1074_v48, %v1202_v26  ;;  %v968_v4 = vld [vmem:[#allocation2 + $0x170] sm:$0xff]  ;;  %v934_v55 = vld [vmem:[#allocation2 + $0x60] sm:$0xff]  ;;  %v2551_v61 = vpop.f32.mrf.mxu0  ;;  %v2553_v63 = vpop.f32.mrf.mxu1 }
  0xff   :  { %1582 = vst.msk [vmem:[%s2900_s4 + $0x14] sm:$0xf] %vm1576_vm2, %v1785_v25  ;;  %v1104_v34 = vadd.f32 %v2306_v6, %v1033_v20  ;;  %v1075_v35 = vadd.f32 %v2306_v6, %v1004_v21  ;;  %v1036_v36 = vmul.f32 %v2299_v62, %v965_v22  ;;  %v1790_v37 = vpack.c.bf16 %v1266_v33, %v1266_v33  ;;  %v966_v10 = vld [vmem:[#allocation2 + $0x160] sm:$0xff]  ;;  %v937_v13 = vld [vmem:[#allocation2 + $0x78] sm:$0xff] }
 0x100   :  { %1614 = vst.msk [vmem:[%s2900_s4 + $0x94] sm:$0xf] %vm1576_vm2, %v1817_v49  ;;  %v1298_v58 = vsel %vm1170_vm6, %v1106_v11, %v1234_v31  ;;  %v1264_v40 = vsel %vm1136_vm7, %v1072_v12, %v1200_v32  ;;  %v1002_v3 = vmul.f32 %v2299_v62, %v931_v57  ;;  %v1034_v45 = vmul.f32 %v2299_v62, %v963_v41  ;;  %v969_v14 = vld [vmem:[#allocation2 + $0x178] sm:$0xff]  ;;  %v2567_v19 = vpop.f32.mrf.mxu0  ;;  %v2569_v20 = vpop.f32.mrf.mxu1  ;;  %v935_v33 = vld [vmem:[#allocation2 + $0x68] sm:$0xff] }
 0x101   :  { %v1822_v46 = vpack.c.bf16 %v1298_v58, %v1298_v58  ;;  %v1788_v47 = vpack.c.bf16 %v1264_v40, %v1264_v40  ;;  %vm1168_vm8 = vcmp.ge.f32.partialorder %v1104_v34, 0.0  ;;  %v1232_v50 = vmul.f32 0.2, %v1104_v34  ;;  %1587 = vst.msk [vmem:[%s2900_s4 + $0x28] sm:$0xf] %vm1576_vm2, %v1790_v37 }
 0x102   :  { %vm1139_vm9 = vcmp.ge.f32.partialorder %v1075_v35, 0.0  ;;  %v1203_v16 = vmul.f32 0.2, %v1075_v35  ;;  %v1107_v27 = vadd.f32 %v2306_v6, %v1036_v36  ;;  %v1073_v51 = vadd.f32 %v2306_v6, %v1002_v3 }
 0x103   :  { %1619 = vst.msk [vmem:[%s2900_s4 + $0xa8] sm:$0xf] %vm1576_vm2, %v1822_v46  ;;  %1585 = vst.msk [vmem:[%s2900_s4 + $0x20] sm:$0xf] %vm1576_vm2, %v1788_v47  ;;  %v1296_v44 = vsel %vm1168_vm8, %v1104_v34, %v1232_v50  ;;  %v1007_v28 = vmul.f32 %v2299_v62, %v936_v42  ;;  %v1039_v54 = vmul.f32 %v2299_v62, %v968_v4  ;;  %v967_v34 = vld [vmem:[#allocation2 + $0x168] sm:$0xff]  ;;  %v2591_v4 = vpop.f32.mrf.mxu0  ;;  %v2593_v46 = vpop.f32.mrf.mxu1 }
 0x104   :  { %v1820_v56 = vpack.c.bf16 %v1296_v44, %v1296_v44  ;;  %v1267_v59 = vsel %vm1139_vm9, %v1075_v35, %v1203_v16  ;;  %vm1171_vm10 = vcmp.ge.f32.partialorder %v1107_v27, 0.0  ;;  %v1235_v60 = vmul.f32 0.2, %v1107_v27  ;;  %v940_v35 = vld [vmem:[#allocation2 + $0x90] sm:$0xff] }
 0x105   :  { %v1791_v0 = vpack.c.bf16 %v1267_v59, %v1267_v59  ;;  %vm1137_vm11 = vcmp.ge.f32.partialorder %v1073_v51, 0.0  ;;  %v1201_v29 = vmul.f32 0.2, %v1073_v51  ;;  %v1105_v2 = vadd.f32 %v2306_v6, %v1034_v45 }
 0x106   :  { %1617 = vst.msk [vmem:[%s2900_s4 + $0xa0] sm:$0xf] %vm1576_vm2, %v1820_v56  ;;  %v1299_v5 = vsel %vm1171_vm10, %v1107_v27, %v1235_v60  ;;  %v1078_v7 = vadd.f32 %v2306_v6, %v1007_v28  ;;  %v1110_v8 = vadd.f32 %v2306_v6, %v1039_v54  ;;  %v1005_v9 = vmul.f32 %v2299_v62, %v934_v55 }
 0x107   :  { %1588 = vst.msk [vmem:[%s2900_s4 + $0x2c] sm:$0xf] %vm1576_vm2, %v1791_v0  ;;  %v1823_v48 = vpack.c.bf16 %v1299_v5, %v1299_v5  ;;  %v1265_v11 = vsel %vm1137_vm11, %v1073_v51, %v1201_v29  ;;  %vm1169_vm12 = vcmp.ge.f32.partialorder %v1105_v2, 0.0  ;;  %v1233_v12 = vmul.f32 0.2, %v1105_v2  ;;  %v972_v51 = vld [vmem:[#allocation2 + $0x190] sm:$0xff]  ;;  %v2614_v29 = vpop.f32.mrf.mxu0 }
 0x108   :  { %v1789_v17 = vpack.c.bf16 %v1265_v11, %v1265_v11  ;;  %vm1142_vm13 = vcmp.ge.f32.partialorder %v1078_v7, 0.0  ;;  %v1206_v18 = vmul.f32 0.2, %v1078_v7  ;;  %vm1174_vm14 = vcmp.ge.f32.partialorder %v1110_v8, 0.0 }
 0x109   :  { %1620 = vst.msk [vmem:[%s2900_s4 + $0xac] sm:$0xf] %vm1576_vm2, %v1823_v48  ;;  %v1297_v21 = vsel %vm1169_vm12, %v1105_v2, %v1233_v12  ;;  %v1238_v22 = vmul.f32 0.2, %v1110_v8  ;;  %v1076_v25 = vadd.f32 %v2306_v6, %v1005_v9  ;;  %v1037_v49 = vmul.f32 %v2299_v62, %v966_v10  ;;  %v2616_v2 = vpop.f32.mrf.mxu1  ;;  %v938_v9 = vld [vmem:[#allocation2 + $0x80] sm:$0xff]  ;;  %v941_v48 = vld [vmem:[#allocation2 + $0x98] sm:$0xff] }
 0x10a   :  { %1586 = vst.msk [vmem:[%s2900_s4 + $0x24] sm:$0xf] %vm1576_vm2, %v1789_v17  ;;  %v1821_v26 = vpack.c.bf16 %v1297_v21, %v1297_v21  ;;  %v1270_v57 = vsel %vm1142_vm13, %v1078_v7, %v1206_v18  ;;  %v1008_v31 = vmul.f32 %v2299_v62, %v937_v13  ;;  %v1040_v32 = vmul.f32 %v2299_v62, %v969_v14  ;;  %v970_v10 = vld [vmem:[#allocation2 + $0x180] sm:$0xff] }
 0x10b   :  { %v1794_v36 = vpack.c.bf16 %v1270_v57, %v1270_v57  ;;  %v1302_v37 = vsel %vm1174_vm14, %v1110_v8, %v1238_v22  ;;  %vm1140_vm15 = vcmp.ge.f32.partialorder %v1076_v25, 0.0  ;;  %v1204_v58 = vmul.f32 0.2, %v1076_v25  ;;  %v105_v57 = vld [vmem:[#allocation2 + $0x88] sm:$0xff] }
 0x10c   :  { %1618 = vst.msk [vmem:[%s2900_s4 + $0xa4] sm:$0xf] %vm1576_vm2, %v1821_v26  ;;  %v1826_v40 = vpack.c.bf16 %v1302_v37, %v1302_v37  ;;  %v1108_v3 = vadd.f32 %v2306_v6, %v1037_v49  ;;  %v1079_v41 = vadd.f32 %v2306_v6, %v1008_v31  ;;  %v1111_v42 = vadd.f32 %v2306_v6, %v1040_v32  ;;  %v973_v26 = vld [vmem:[#allocation2 + $0x198] sm:$0xff]  ;;  %v2634_v31 = vpop.f32.mrf.mxu0  ;;  %v2636_v32 = vpop.f32.mrf.mxu1 }
 0x10d   :  { %1591 = vst.msk [vmem:[%s2900_s4 + $0x38] sm:$0xf] %vm1576_vm2, %v1794_v36  ;;  %v1268_v47 = vsel %vm1140_vm15, %v1076_v25, %v1204_v58  ;;  %v1006_v50 = vmul.f32 %v2299_v62, %v935_v33  ;;  %v1038_v16 = vmul.f32 %v2299_v62, %v967_v34  ;;  %v1011_v27 = vmul.f32 %v2299_v62, %v940_v35  ;;  %v137_v36 = vld [vmem:[#allocation2 + $0x188] sm:$0xff] }
 0x10e   :  { %1623 = vst.msk [vmem:[%s2900_s4 + $0xb8] sm:$0xf] %vm1576_vm2, %v1826_v40  ;;  %v1792_v44 = vpack.c.bf16 %v1268_v47, %v1268_v47  ;;  %vm1172_vm1 = vcmp.ge.f32.partialorder %v1108_v3, 0.0  ;;  %v1236_v45 = vmul.f32 0.2, %v1108_v3  ;;  %vm1143_vm3 = vcmp.ge.f32.partialorder %v1079_v41, 0.0 }
 0x10f   :  { %v1207_v28 = vmul.f32 0.2, %v1079_v41  ;;  %vm1175_vm4 = vcmp.ge.f32.partialorder %v1111_v42, 0.0  ;;  %v1239_v54 = vmul.f32 0.2, %v1111_v42  ;;  %v1077_v55 = vadd.f32 %v2306_v6, %v1006_v50 }
 0x110   :  { %1589 = vst.msk [vmem:[%s2900_s4 + $0x30] sm:$0xf] %vm1576_vm2, %v1792_v44  ;;  %v1300_v56 = vsel %vm1172_vm1, %v1108_v3, %v1236_v45  ;;  %v1109_v59 = vadd.f32 %v2306_v6, %v1038_v16  ;;  %v1082_v60 = vadd.f32 %v2306_v6, %v1011_v27  ;;  %v1043_v0 = vmul.f32 %v2299_v62, %v972_v51  ;;  %v110_v16 = vld [vmem:[#allocation2 + $0xb0] sm:$0xff] }
 0x111   :  { %v1824_v5 = vpack.c.bf16 %v1300_v56, %v1300_v56  ;;  %v1271_v7 = vsel %vm1143_vm3, %v1079_v41, %v1207_v28  ;;  %v1303_v8 = vsel %vm1175_vm4, %v1111_v42, %v1239_v54  ;;  %vm1141_vm5 = vcmp.ge.f32.partialorder %v1077_v55, 0.0  ;;  %v142_v45 = vld [vmem:[#allocation2 + $0x1b0] sm:$0xff]  ;;  %v108_v28 = vld [vmem:[#allocation2 + $0xa0] sm:$0xff]  ;;  %v2657_v54 = vpop.f32.mrf.mxu0 }
 0x112   :  { %v1795_v11 = vpack.c.bf16 %v1271_v7, %v1271_v7  ;;  %v1827_v12 = vpack.c.bf16 %v1303_v8, %v1303_v8  ;;  %v1205_v13 = vmul.f32 0.2, %v1077_v55  ;;  %vm1173_vm6 = vcmp.ge.f32.partialorder %v1109_v59, 0.0  ;;  %v111_v7 = vld [vmem:[#allocation2 + $0xb8] sm:$0xff] }
 0x113   :  { %1621 = vst.msk [vmem:[%s2900_s4 + $0xb0] sm:$0xf] %vm1576_vm2, %v1824_v5  ;;  %v1237_v14 = vmul.f32 0.2, %v1109_v59  ;;  %vm1146_vm7 = vcmp.ge.f32.partialorder %v1082_v60, 0.0  ;;  %v1114_v18 = vadd.f32 %v2306_v6, %v1043_v0  ;;  %v1009_v22 = vmul.f32 %v2299_v62, %v938_v9  ;;  %v143_v8 = vld [vmem:[#allocation2 + $0x1b8] sm:$0xff] }
 0x114   :  { %v1210_v17 = vmul.f32 0.2, %v1082_v60  ;;  %1592 = vst.msk [vmem:[%s2900_s4 + $0x3c] sm:$0xf] %vm1576_vm2, %v1795_v11  ;;  %1624 = vst.msk [vmem:[%s2900_s4 + $0xbc] sm:$0xf] %vm1576_vm2, %v1827_v12  ;;  %v1269_v21 = vsel %vm1141_vm5, %v1077_v55, %v1205_v13  ;;  %v1041_v25 = vmul.f32 %v2299_v62, %v970_v10  ;;  %v1012_v49 = vmul.f32 %v2299_v62, %v941_v48 }
 0x115   :  { %v1793_v33 = vpack.c.bf16 %v1269_v21, %v1269_v21  ;;  %v1301_v34 = vsel %vm1173_vm6, %v1109_v59, %v1237_v14  ;;  %vm1178_vm8 = vcmp.ge.f32.partialorder %v1114_v18, 0.0  ;;  %v1242_v40 = vmul.f32 0.2, %v1114_v18  ;;  %v140_v59 = vld [vmem:[#allocation2 + $0x1a0] sm:$0xff]  ;;  %v109_v9 = vld [vmem:[#allocation2 + $0xa8] sm:$0xff]  ;;  %v146_v14 = vld [vmem:[#allocation2 + $0x1d0] sm:$0xff] }
 0x116   :  { %v1274_v35 = vsel %vm1146_vm7, %v1082_v60, %v1210_v17  ;;  %v1825_v37 = vpack.c.bf16 %v1301_v34, %v1301_v34  ;;  %v1080_v3 = vadd.f32 %v2306_v6, %v1009_v22  ;;  %v1112_v41 = vadd.f32 %v2306_v6, %v1041_v25  ;;  %v141_v13 = vld [vmem:[#allocation2 + $0x1a8] sm:$0xff]  ;;  %v112_v21 = vld [vmem:[#allocation2 + $0xc0] sm:$0xff]  ;;  %v115_v25 = vld [vmem:[#allocation2 + $0xd8] sm:$0xff] }
 0x117   :  { %v1798_v58 = vpack.c.bf16 %v1274_v35, %v1274_v35  ;;  %1590 = vst.msk [vmem:[%s2900_s4 + $0x34] sm:$0xf] %vm1576_vm2, %v1793_v33  ;;  %v1083_v42 = vadd.f32 %v2306_v6, %v1012_v49  ;;  %v1044_v47 = vmul.f32 %v2299_v62, %v973_v26  ;;  %v807_v50 = vadd.f32 %v2470_v30, %v105_v57  ;;  %v2659_v30 = vpop.f32.mrf.mxu1  ;;  %v144_v22 = vld [vmem:[#allocation2 + $0x1c0] sm:$0xff]  ;;  %v1916_v49 = vpop.f32.mrf.mxu0  ;;  %v147_v34 = vld [vmem:[#allocation2 + $0x1d8] sm:$0xff]  ;;  %v113_v35 = vld [vmem:[#allocation2 + $0xc8] sm:$0xff] }
 0x118   :  { %1622 = vst.msk [vmem:[%s2900_s4 + $0xb4] sm:$0xf] %vm1576_vm2, %v1825_v37  ;;  %v1306_v27 = vsel %vm1178_vm8, %v1114_v18, %v1242_v40  ;;  %vm1144_vm9 = vcmp.ge.f32.partialorder %v1080_v3, 0.0  ;;  %v1208_v51 = vmul.f32 0.2, %v1080_v3  ;;  %v839_v44 = vadd.f32 %v2472_v52, %v137_v36  ;;  %v145_v36 = vld [vmem:[#allocation2 + $0x1c8] sm:$0xff] }
 0x119   :  { %1595 = vst.msk [vmem:[%s2900_s4 + $0x48] sm:$0xf] %vm1576_vm2, %v1798_v58  ;;  %v1830_v55 = vpack.c.bf16 %v1306_v27, %v1306_v27  ;;  %vm1176_vm10 = vcmp.ge.f32.partialorder %v1112_v41, 0.0  ;;  %v1240_v56 = vmul.f32 0.2, %v1112_v41  ;;  %vm1147_vm11 = vcmp.ge.f32.partialorder %v1083_v42, 0.0  ;;  %v1948_v26 = vpop.f32.mrf.mxu1 }
 0x11a   :  { %872 = vst.msk [vmem:[#allocation2 + $0x88] sm:$0xff] %vm22_vm0, %v807_v50  ;;  %v1272_v60 = vsel %vm1144_vm9, %v1080_v3, %v1208_v51  ;;  %v1211_v0 = vmul.f32 0.2, %v1083_v42  ;;  %v1115_v5 = vadd.f32 %v2306_v6, %v1044_v47  ;;  %904 = vst.msk [vmem:[#allocation2 + $0x188] sm:$0xff] %vm22_vm0, %v839_v44  ;;  %v812_v52 = vadd.f32 %v2489_v1, %v110_v16  ;;  %v114_v6 = vld [vmem:[#allocation2 + $0xd0] sm:$0xff]  ;;  %v119_v47 = vld [vmem:[#allocation2 + $0xf8] sm:$0xff] }
 0x11b   :  { %1627 = vst.msk [vmem:[%s2900_s4 + $0xc8] sm:$0xf] %vm1576_vm2, %v1830_v55  ;;  %v1796_v10 = vpack.c.bf16 %v1272_v60, %v1272_v60  ;;  %v1304_v48 = vsel %vm1176_vm10, %v1112_v41, %v1240_v56  ;;  %v844_v11 = vadd.f32 %v2491_v53, %v142_v45  ;;  %v810_v12 = vadd.f32 %v2502_v38, %v108_v28  ;;  %v118_v3 = vld [vmem:[#allocation2 + $0xf0] sm:$0xff]  ;;  %v116_v41 = vld [vmem:[#allocation2 + $0xe0] sm:$0xff]  ;;  %v151_v50 = vld [vmem:[#allocation2 + $0x1f8] sm:$0xff]  ;;  %v778_v28 = vpop.f32.mrf.mxu1 }
 0x11c   :  { %v1828_v17 = vpack.c.bf16 %v1304_v48, %v1304_v48  ;;  %v1275_v1 = vsel %vm1147_vm11, %v1083_v42, %v1211_v0  ;;  %vm1179_vm12 = vcmp.ge.f32.partialorder %v1115_v5, 0.0  ;;  %v1243_v18 = vmul.f32 0.2, %v1115_v5  ;;  %877 = vst.msk [vmem:[#allocation2 + $0xb0] sm:$0xff] %vm22_vm0, %v812_v52  ;;  %v148_v42 = vld [vmem:[#allocation2 + $0x1e0] sm:$0xff]  ;;  %v117_v44 = vld [vmem:[#allocation2 + $0xe8] sm:$0xff] }
 0x11d   :  { %1593 = vst.msk [vmem:[%s2900_s4 + $0x40] sm:$0xf] %vm1576_vm2, %v1796_v10  ;;  %v1799_v53 = vpack.c.bf16 %v1275_v1, %v1275_v1  ;;  %v842_v38 = vadd.f32 %v2504_v39, %v140_v59  ;;  %v813_v57 = vadd.f32 %v2513_v23, %v111_v7  ;;  %v845_v33 = vadd.f32 %v2515_v24, %v143_v8  ;;  %v150_v23 = vld [vmem:[#allocation2 + $0x1f0] sm:$0xff]  ;;  %v149_v45 = vld [vmem:[#allocation2 + $0x1e8] sm:$0xff] }
 0x11e   :  { %909 = vst.msk [vmem:[#allocation2 + $0x1b0] sm:$0xff] %vm22_vm0, %v844_v11  ;;  %875 = vst.msk [vmem:[#allocation2 + $0xa0] sm:$0xff] %vm22_vm0, %v810_v12  ;;  %v1307_v37 = vsel %vm1179_vm12, %v1115_v5, %v1243_v18  ;;  %v811_v58 = vadd.f32 %v2530_v15, %v109_v9  ;;  %v843_v40 = vadd.f32 %v2532_v43, %v141_v13 }
 0x11f   :  { %1625 = vst.msk [vmem:[%s2900_s4 + $0xc0] sm:$0xf] %vm1576_vm2, %v1828_v17  ;;  %v816_v39 = vadd.f32 %v2551_v61, %v114_v6  ;;  %1596 = vst.msk [vmem:[%s2900_s4 + $0x4c] sm:$0xf] %vm1576_vm2, %v1799_v53  ;;  %v1831_v24 = vpack.c.bf16 %v1307_v37, %v1307_v37  ;;  %v848_v15 = vadd.f32 %v2553_v63, %v146_v14 }
 0x120   :  { %907 = vst.msk [vmem:[#allocation2 + $0x1a0] sm:$0xff] %vm22_vm0, %v842_v38  ;;  %878 = vst.msk [vmem:[#allocation2 + $0xb8] sm:$0xff] %vm22_vm0, %v813_v57  ;;  %v814_v43 = vadd.f32 %v2567_v19, %v112_v21  ;;  %v846_v61 = vadd.f32 %v2569_v20, %v144_v22  ;;  %v817_v27 = vadd.f32 %v2591_v4, %v115_v25  ;;  %v650_v20 = vpop.f32.mrf.mxu0 }
 0x121   :  { %910 = vst.msk [vmem:[#allocation2 + $0x1b8] sm:$0xff] %vm22_vm0, %v845_v33  ;;  %v939_v16 = vld [vmem:[#allocation2 + $0x88] sm:$0xff]  ;;  %876 = vst.msk [vmem:[#allocation2 + $0xa8] sm:$0xff] %vm22_vm0, %v811_v58  ;;  %v849_v51 = vadd.f32 %v2593_v46, %v147_v34  ;;  %v815_v63 = vadd.f32 %v2614_v29, %v113_v35  ;;  %v847_v19 = vadd.f32 %v2616_v2, %v145_v36  ;;  %v2721_v2 = vld [vmem:[%s2898_s2] ss:$0 sm:$0xff] }
 0x122   :  { %908 = vst.msk [vmem:[#allocation2 + $0x1a8] sm:$0xff] %vm22_vm0, %v843_v40  ;;  %881 = vst.msk [vmem:[#allocation2 + $0xd0] sm:$0xff] %vm22_vm0, %v816_v39  ;;  %v1010_v55 = vmul.f32 %v2299_v62, %v939_v16  ;;  %v971_v56 = vld [vmem:[#allocation2 + $0x188] sm:$0xff]  ;;  %v820_v4 = vadd.f32 %v2634_v31, %v118_v3  ;;  %v852_v46 = vadd.f32 %v2636_v32, %v150_v23 }
 0x123   :  { %1628 = vst.msk [vmem:[%s2900_s4 + $0xcc] sm:$0xf] %vm1576_vm2, %v1831_v24  ;;  %v818_v29 = vadd.f32 %v2657_v54, %v116_v41  ;;  %v1042_v62 = vmul.f32 %v2721_v2, %v971_v56  ;;  %v850_v31 = vadd.f32 %v2659_v30, %v148_v42  ;;  %v821_v32 = vadd.f32 %v1916_v49, %v119_v47  ;;  %v2732_v54 = vld [vmem:[%s2899_s3] ss:$0 sm:$0xff]  ;;  %v944_v0 = vld [vmem:[#allocation2 + $0xb0] sm:$0xff] }
 0x124   :  { %913 = vst.msk [vmem:[#allocation2 + $0x1d0] sm:$0xff] %vm22_vm0, %v848_v15  ;;  %879 = vst.msk [vmem:[#allocation2 + $0xc0] sm:$0xff] %vm22_vm0, %v814_v43  ;;  %v853_v59 = vadd.f32 %v1948_v26, %v151_v50  ;;  %v1081_v60 = vadd.f32 %v2732_v54, %v1010_v55  ;;  %v819_v5 = vadd.f32 %v650_v20, %v117_v44 }
 0x125   :  { %911 = vst.msk [vmem:[#allocation2 + $0x1c0] sm:$0xff] %vm22_vm0, %v846_v61  ;;  %882 = vst.msk [vmem:[#allocation2 + $0xd8] sm:$0xff] %vm22_vm0, %v817_v27  ;;  %v851_v52 = vadd.f32 %v778_v28, %v149_v45  ;;  %v1113_v30 = vadd.f32 %v2732_v54, %v1042_v62  ;;  %v1015_v7 = vmul.f32 %v2721_v2, %v944_v0  ;;  %v976_v8 = vld [vmem:[#allocation2 + $0x1b0] sm:$0xff]  ;;  %v942_v9 = vld [vmem:[#allocation2 + $0xa0] sm:$0xff] }
 0x126   :  { %914 = vst.msk [vmem:[#allocation2 + $0x1d8] sm:$0xff] %vm22_vm0, %v849_v51  ;;  %880 = vst.msk [vmem:[#allocation2 + $0xc8] sm:$0xff] %vm22_vm0, %v815_v63  ;;  %vm1145_vm13 = vcmp.ge.f32.partialorder %v1081_v60, 0.0  ;;  %v1209_v10 = vmul.f32 0.2, %v1081_v60  ;;  %v1047_v48 = vmul.f32 %v2721_v2, %v976_v8  ;;  %v1013_v11 = vmul.f32 %v2721_v2, %v942_v9 }
 0x127   :  { %912 = vst.msk [vmem:[#allocation2 + $0x1c8] sm:$0xff] %vm22_vm0, %v847_v19  ;;  %885 = vst.msk [vmem:[#allocation2 + $0xf0] sm:$0xff] %vm22_vm0, %v820_v4  ;;  %vm1177_vm14 = vcmp.ge.f32.partialorder %v1113_v30, 0.0  ;;  %v1241_v12 = vmul.f32 0.2, %v1113_v30  ;;  %v1086_v13 = vadd.f32 %v2732_v54, %v1015_v7  ;;  %v974_v6 = vld [vmem:[#allocation2 + $0x1a0] sm:$0xff] }
 0x128   :  { %917 = vst.msk [vmem:[#allocation2 + $0x1f0] sm:$0xff] %vm22_vm0, %v852_v46  ;;  %883 = vst.msk [vmem:[#allocation2 + $0xe0] sm:$0xff] %vm22_vm0, %v818_v29  ;;  %v1273_v14 = vsel %vm1145_vm13, %v1081_v60, %v1209_v10  ;;  %v1118_v17 = vadd.f32 %v2732_v54, %v1047_v48  ;;  %v1084_v1 = vadd.f32 %v2732_v54, %v1013_v11  ;;  %v945_v21 = vld [vmem:[#allocation2 + $0xb8] sm:$0xff]  ;;  %v943_v53 = vld [vmem:[#allocation2 + $0xa8] sm:$0xff] }
 0x129   :  { %915 = vst.msk [vmem:[#allocation2 + $0x1e0] sm:$0xff] %vm22_vm0, %v850_v31  ;;  %886 = vst.msk [vmem:[#allocation2 + $0xf8] sm:$0xff] %vm22_vm0, %v821_v32  ;;  %v1045_v18 = vmul.f32 %v2721_v2, %v974_v6  ;;  %v1797_v22 = vpack.c.bf16 %v1273_v14, %v1273_v14  ;;  %v1305_v25 = vsel %vm1177_vm14, %v1113_v30, %v1241_v12  ;;  %vm1150_vm15 = vcmp.ge.f32.partialorder %v1086_v13, 0.0  ;;  %v977_v26 = vld [vmem:[#allocation2 + $0x1b8] sm:$0xff]  ;;  %v975_v3 = vld [vmem:[#allocation2 + $0x1a8] sm:$0xff] }
 0x12a   :  { %918 = vst.msk [vmem:[#allocation2 + $0x1f8] sm:$0xff] %vm22_vm0, %v853_v59  ;;  %884 = vst.msk [vmem:[#allocation2 + $0xe8] sm:$0xff] %vm22_vm0, %v819_v5  ;;  %v1214_v49 = vmul.f32 0.2, %v1086_v13  ;;  %v1829_v38 = vpack.c.bf16 %v1305_v25, %v1305_v25  ;;  %v1246_v57 = vmul.f32 0.2, %v1118_v17  ;;  %v1016_v36 = vmul.f32 %v2721_v2, %v945_v21 }
 0x12b   :  { %916 = vst.msk [vmem:[#allocation2 + $0x1e8] sm:$0xff] %vm22_vm0, %v851_v52  ;;  %vm1182_vm0 = vcmp.ge.f32.partialorder %v1118_v17, 0.0  ;;  %vm1148_vm1 = vcmp.ge.f32.partialorder %v1084_v1, 0.0  ;;  %v1212_v34 = vmul.f32 0.2, %v1084_v1  ;;  %v1116_v35 = vadd.f32 %v2732_v54, %v1045_v18  ;;  %v948_v23 = vld [vmem:[#allocation2 + $0xd0] sm:$0xff] }
 0x12c   :  { %1594 = vst.msk [vmem:[%s2900_s4 + $0x44] sm:$0xf] %vm1576_vm2, %v1797_v22  ;;  %v1278_v33 = vsel %vm1150_vm15, %v1086_v13, %v1214_v49  ;;  %1626 = vst.msk [vmem:[%s2900_s4 + $0xc4] sm:$0xf] %vm1576_vm2, %v1829_v38  ;;  %v1310_v58 = vsel %vm1182_vm0, %v1118_v17, %v1246_v57  ;;  %v1048_v40 = vmul.f32 %v2721_v2, %v977_v26  ;;  %v980_v41 = vld [vmem:[#allocation2 + $0x1d0] sm:$0xff]  ;;  %v946_v19 = vld [vmem:[#allocation2 + $0xc0] sm:$0xff] }
 0x12d   :  { %v1802_v37 = vpack.c.bf16 %v1278_v33, %v1278_v33  ;;  %v1014_v39 = vmul.f32 %v2721_v2, %v943_v53  ;;  %v1834_v24 = vpack.c.bf16 %v1310_v58, %v1310_v58  ;;  %v1276_v15 = vsel %vm1148_vm1, %v1084_v1, %v1212_v34  ;;  %v978_v59 = vld [vmem:[#allocation2 + $0x1c0] sm:$0xff]  ;;  %v949_v60 = vld [vmem:[#allocation2 + $0xd8] sm:$0xff]  ;;  %v947_v13 = vld [vmem:[#allocation2 + $0xc8] sm:$0xff] }
 0x12e   :  { %vm1180_vm3 = vcmp.ge.f32.partialorder %v1116_v35, 0.0  ;;  %v1244_v43 = vmul.f32 0.2, %v1116_v35  ;;  %v1800_v61 = vpack.c.bf16 %v1276_v15, %v1276_v15  ;;  %v1087_v42 = vadd.f32 %v2732_v54, %v1016_v36  ;;  %v981_v0 = vld [vmem:[#allocation2 + $0x1d8] sm:$0xff]  ;;  %v979_v6 = vld [vmem:[#allocation2 + $0x1c8] sm:$0xff]  ;;  %v952_v18 = vld [vmem:[#allocation2 + $0xf0] sm:$0xff] }
 0x12f   :  { %1599 = vst.msk [vmem:[%s2900_s4 + $0x58] sm:$0xf] %vm1576_vm2, %v1802_v37  ;;  %v1119_v47 = vadd.f32 %v2732_v54, %v1048_v40  ;;  %v1085_v50 = vadd.f32 %v2732_v54, %v1014_v39  ;;  %1631 = vst.msk [vmem:[%s2900_s4 + $0xd8] sm:$0xf] %vm1576_vm2, %v1834_v24  ;;  %v1046_v27 = vmul.f32 %v2721_v2, %v975_v3  ;;  %v984_v36 = vld [vmem:[#allocation2 + $0x1f0] sm:$0xff] }
 0x130   :  { %v1308_v16 = vsel %vm1180_vm3, %v1116_v35, %v1244_v43  ;;  %v1019_v51 = vmul.f32 %v2721_v2, %v948_v23  ;;  %v1051_v63 = vmul.f32 %v2721_v2, %v980_v41  ;;  %1597 = vst.msk [vmem:[%s2900_s4 + $0x50] sm:$0xf] %vm1576_vm2, %v1800_v61  ;;  %vm1151_vm4 = vcmp.ge.f32.partialorder %v1087_v42, 0.0  ;;  %v950_v61 = vld [vmem:[#allocation2 + $0xe0] sm:$0xff] }
 0x131   :  { %v1832_v44 = vpack.c.bf16 %v1308_v16, %v1308_v16  ;;  %v1215_v20 = vmul.f32 0.2, %v1087_v42  ;;  %vm1183_vm5 = vcmp.ge.f32.partialorder %v1119_v47, 0.0  ;;  %v1247_v45 = vmul.f32 0.2, %v1119_v47  ;;  %v982_v16 = vld [vmem:[#allocation2 + $0x1e0] sm:$0xff] }
 0x132   :  { %vm1149_vm6 = vcmp.ge.f32.partialorder %v1085_v50, 0.0  ;;  %v1213_v28 = vmul.f32 0.2, %v1085_v50  ;;  %v1117_v55 = vadd.f32 %v2732_v54, %v1046_v27  ;;  %v1090_v4 = vadd.f32 %v2732_v54, %v1019_v51  ;;  %v953_v27 = vld [vmem:[#allocation2 + $0xf8] sm:$0xff] }
 0x133   :  { %1629 = vst.msk [vmem:[%s2900_s4 + $0xd0] sm:$0xf] %vm1576_vm2, %v1832_v44  ;;  %v1279_v56 = vsel %vm1151_vm4, %v1087_v42, %v1215_v20  ;;  %v1122_v46 = vadd.f32 %v2732_v54, %v1051_v63  ;;  %v1017_v29 = vmul.f32 %v2721_v2, %v946_v19  ;;  %v1311_v31 = vsel %vm1183_vm5, %v1119_v47, %v1247_v45 }
 0x134   :  { %v1803_v62 = vpack.c.bf16 %v1279_v56, %v1279_v56  ;;  %v1277_v32 = vsel %vm1149_vm6, %v1085_v50, %v1213_v28  ;;  %vm1181_vm7 = vcmp.ge.f32.partialorder %v1117_v55, 0.0  ;;  %v1835_v5 = vpack.c.bf16 %v1311_v31, %v1311_v31 }
 0x135   :  { %v1801_v52 = vpack.c.bf16 %v1277_v32, %v1277_v32  ;;  %v1245_v30 = vmul.f32 0.2, %v1117_v55  ;;  %vm1154_vm8 = vcmp.ge.f32.partialorder %v1090_v4, 0.0  ;;  %v1218_v7 = vmul.f32 0.2, %v1090_v4 }
 0x136   :  { %1600 = vst.msk [vmem:[%s2900_s4 + $0x5c] sm:$0xf] %vm1576_vm2, %v1803_v62  ;;  %vm1186_vm9 = vcmp.ge.f32.partialorder %v1122_v46, 0.0  ;;  %v1250_v8 = vmul.f32 0.2, %v1122_v46  ;;  %v1088_v9 = vadd.f32 %v2732_v54, %v1017_v29  ;;  %v1049_v48 = vmul.f32 %v2721_v2, %v978_v59  ;;  %v951_v29 = vld [vmem:[#allocation2 + $0xe8] sm:$0xff] }
 0x137   :  { %1632 = vst.msk [vmem:[%s2900_s4 + $0xdc] sm:$0xf] %vm1576_vm2, %v1835_v5  ;;  %1598 = vst.msk [vmem:[%s2900_s4 + $0x54] sm:$0xf] %vm1576_vm2, %v1801_v52  ;;  %v1309_v10 = vsel %vm1181_vm7, %v1117_v55, %v1245_v30  ;;  %v1020_v11 = vmul.f32 %v2721_v2, %v949_v60  ;;  %v1052_v12 = vmul.f32 %v2721_v2, %v981_v0  ;;  %v983_v62 = vld [vmem:[#allocation2 + $0x1e8] sm:$0xff] }
 0x138   :  { %v1833_v14 = vpack.c.bf16 %v1309_v10, %v1309_v10  ;;  %v1282_v17 = vsel %vm1154_vm8, %v1090_v4, %v1218_v7  ;;  %v1314_v1 = vsel %vm1186_vm9, %v1122_v46, %v1250_v8  ;;  %vm1152_vm10 = vcmp.ge.f32.partialorder %v1088_v9, 0.0  ;;  %v985_v46 = vld [vmem:[#allocation2 + $0x1f8] sm:$0xff] }
 0x139   :  { %v1806_v21 = vpack.c.bf16 %v1282_v17, %v1282_v17  ;;  %v1838_v22 = vpack.c.bf16 %v1314_v1, %v1314_v1  ;;  %v1216_v25 = vmul.f32 0.2, %v1088_v9  ;;  %v1120_v49 = vadd.f32 %v2732_v54, %v1049_v48 }
 0x13a   :  { %1630 = vst.msk [vmem:[%s2900_s4 + $0xd4] sm:$0xf] %vm1576_vm2, %v1833_v14  ;;  %v1091_v26 = vadd.f32 %v2732_v54, %v1020_v11  ;;  %v1123_v53 = vadd.f32 %v2732_v54, %v1052_v12  ;;  %v1018_v38 = vmul.f32 %v2721_v2, %v947_v13  ;;  %v1050_v57 = vmul.f32 %v2721_v2, %v979_v6 }
 0x13b   :  { %1603 = vst.msk [vmem:[%s2900_s4 + $0x68] sm:$0xf] %vm1576_vm2, %v1806_v21  ;;  %1635 = vst.msk [vmem:[%s2900_s4 + $0xe8] sm:$0xf] %vm1576_vm2, %v1838_v22  ;;  %v1280_v33 = vsel %vm1152_vm10, %v1088_v9, %v1216_v25  ;;  %vm1184_vm11 = vcmp.ge.f32.partialorder %v1120_v49, 0.0  ;;  %v1023_v35 = vmul.f32 %v2721_v2, %v952_v18  ;;  %v1055_v43 = vmul.f32 %v2721_v2, %v984_v36 }
 0x13c   :  { %v1248_v34 = vmul.f32 0.2, %v1120_v49  ;;  %v1804_v37 = vpack.c.bf16 %v1280_v33, %v1280_v33  ;;  %vm1155_vm12 = vcmp.ge.f32.partialorder %v1091_v26, 0.0  ;;  %v1219_v58 = vmul.f32 0.2, %v1091_v26 }
 0x13d   :  { %vm1187_vm13 = vcmp.ge.f32.partialorder %v1123_v53, 0.0  ;;  %v1251_v39 = vmul.f32 0.2, %v1123_v53  ;;  %v1089_v3 = vadd.f32 %v2732_v54, %v1018_v38  ;;  %v1121_v23 = vadd.f32 %v2732_v54, %v1050_v57 }
 0x13e   :  { %v1312_v40 = vsel %vm1184_vm11, %v1120_v49, %v1248_v34  ;;  %1601 = vst.msk [vmem:[%s2900_s4 + $0x60] sm:$0xf] %vm1576_vm2, %v1804_v37  ;;  %v1283_v24 = vsel %vm1155_vm12, %v1091_v26, %v1219_v58  ;;  %v1094_v15 = vadd.f32 %v2732_v54, %v1023_v35  ;;  %v1126_v20 = vadd.f32 %v2732_v54, %v1055_v43 }
 0x13f   :  { %v1836_v41 = vpack.c.bf16 %v1312_v40, %v1312_v40  ;;  %v1807_v42 = vpack.c.bf16 %v1283_v24, %v1283_v24  ;;  %v1315_v47 = vsel %vm1187_vm13, %v1123_v53, %v1251_v39  ;;  %vm1153_vm14 = vcmp.ge.f32.partialorder %v1089_v3, 0.0 }
 0x140   :  { %v1217_v50 = vmul.f32 0.2, %v1089_v3  ;;  %v1839_v51 = vpack.c.bf16 %v1315_v47, %v1315_v47  ;;  %vm1185_vm15 = vcmp.ge.f32.partialorder %v1121_v23, 0.0  ;;  %v1249_v63 = vmul.f32 0.2, %v1121_v23 }
 0x141   :  { %1633 = vst.msk [vmem:[%s2900_s4 + $0xe0] sm:$0xf] %vm1576_vm2, %v1836_v41  ;;  %vm1158_vm0 = vcmp.ge.f32.partialorder %v1094_v15, 0.0  ;;  %1604 = vst.msk [vmem:[%s2900_s4 + $0x6c] sm:$0xf] %vm1576_vm2, %v1807_v42  ;;  %v1021_v45 = vmul.f32 %v2721_v2, %v950_v61  ;;  %v1053_v56 = vmul.f32 %v2721_v2, %v982_v16  ;;  %v1024_v4 = vmul.f32 %v2721_v2, %v953_v27 }
 0x142   :  { %v1281_v19 = vsel %vm1153_vm14, %v1089_v3, %v1217_v50  ;;  %v1222_v44 = vmul.f32 0.2, %v1094_v15  ;;  %1636 = vst.msk [vmem:[%s2900_s4 + $0xec] sm:$0xf] %vm1576_vm2, %v1839_v51  ;;  %v1313_v55 = vsel %vm1185_vm15, %v1121_v23, %v1249_v63  ;;  %vm1190_vm1 = vcmp.ge.f32.partialorder %v1126_v20, 0.0 }
 0x143   :  { %v1805_v28 = vpack.c.bf16 %v1281_v19, %v1281_v19  ;;  %v1837_v31 = vpack.c.bf16 %v1313_v55, %v1313_v55  ;;  %v1254_v59 = vmul.f32 0.2, %v1126_v20  ;;  %v1092_v0 = vadd.f32 %v2732_v54, %v1021_v45 }
 0x144   :  { %v1286_v32 = vsel %vm1158_vm0, %v1094_v15, %v1222_v44  ;;  %v1124_v5 = vadd.f32 %v2732_v54, %v1053_v56  ;;  %v1095_v52 = vadd.f32 %v2732_v54, %v1024_v4  ;;  %v1056_v7 = vmul.f32 %v2721_v2, %v985_v46 }
 0x145   :  { %1602 = vst.msk [vmem:[%s2900_s4 + $0x64] sm:$0xf] %vm1576_vm2, %v1805_v28  ;;  %v1810_v60 = vpack.c.bf16 %v1286_v32, %v1286_v32  ;;  %1634 = vst.msk [vmem:[%s2900_s4 + $0xe4] sm:$0xf] %vm1576_vm2, %v1837_v31  ;;  %v1318_v30 = vsel %vm1190_vm1, %v1126_v20, %v1254_v59  ;;  %v1022_v8 = vmul.f32 %v2721_v2, %v951_v29  ;;  %vm1156_vm3 = vcmp.ge.f32.partialorder %v1092_v0, 0.0 }
 0x146   :  { %v1054_v9 = vmul.f32 %v2721_v2, %v983_v62  ;;  %v1842_v10 = vpack.c.bf16 %v1318_v30, %v1318_v30  ;;  %v1220_v48 = vmul.f32 0.2, %v1092_v0  ;;  %vm1188_vm4 = vcmp.ge.f32.partialorder %v1124_v5, 0.0 }
 0x147   :  { %1607 = vst.msk [vmem:[%s2900_s4 + $0x78] sm:$0xf] %vm1576_vm2, %v1810_v60  ;;  %v1252_v11 = vmul.f32 0.2, %v1124_v5  ;;  %vm1159_vm5 = vcmp.ge.f32.partialorder %v1095_v52, 0.0  ;;  %v1127_v13 = vadd.f32 %v2732_v54, %v1056_v7  ;;  %v1093_v6 = vadd.f32 %v2732_v54, %v1022_v8 }
 0x148   :  { %v1223_v12 = vmul.f32 0.2, %v1095_v52  ;;  %1639 = vst.msk [vmem:[%s2900_s4 + $0xf8] sm:$0xf] %vm1576_vm2, %v1842_v10  ;;  %v1284_v2 = vsel %vm1156_vm3, %v1092_v0, %v1220_v48  ;;  %v1125_v14 = vadd.f32 %v2732_v54, %v1054_v9 }
 0x149   :  { %v1808_v17 = vpack.c.bf16 %v1284_v2, %v1284_v2  ;;  %v1316_v1 = vsel %vm1188_vm4, %v1124_v5, %v1252_v11  ;;  %vm1191_vm6 = vcmp.ge.f32.partialorder %v1127_v13, 0.0  ;;  %v1255_v25 = vmul.f32 0.2, %v1127_v13 }
 0x14a   :  { %v1287_v18 = vsel %vm1159_vm5, %v1095_v52, %v1223_v12  ;;  %v1840_v21 = vpack.c.bf16 %v1316_v1, %v1316_v1  ;;  %vm1157_vm7 = vcmp.ge.f32.partialorder %v1093_v6, 0.0  ;;  %v1221_v49 = vmul.f32 0.2, %v1093_v6 }
 0x14b   :  { %v1811_v22 = vpack.c.bf16 %v1287_v18, %v1287_v18  ;;  %1605 = vst.msk [vmem:[%s2900_s4 + $0x70] sm:$0xf] %vm1576_vm2, %v1808_v17  ;;  %vm1189_vm8 = vcmp.ge.f32.partialorder %v1125_v14, 0.0  ;;  %v1253_v26 = vmul.f32 0.2, %v1125_v14  ;;  %v1319_v54 = vsel %vm1191_vm6, %v1127_v13, %v1255_v25 }
 0x14c   :  { %1637 = vst.msk [vmem:[%s2900_s4 + $0xf0] sm:$0xf] %vm1576_vm2, %v1840_v21  ;;  %v1843_v53 = vpack.c.bf16 %v1319_v54, %v1319_v54  ;;  %v1285_v38 = vsel %vm1157_vm7, %v1093_v6, %v1221_v49 }
 0x14d   :  { %1608 = vst.msk [vmem:[%s2900_s4 + $0x7c] sm:$0xf] %vm1576_vm2, %v1811_v22  ;;  %v1317_v57 = vsel %vm1189_vm8, %v1125_v14, %v1253_v26  ;;  %v1809_v33 = vpack.c.bf16 %v1285_v38, %v1285_v38 }
 0x14e   :  { %v1841_v34 = vpack.c.bf16 %v1317_v57, %v1317_v57  ;;  %1640 = vst.msk [vmem:[%s2900_s4 + $0xfc] sm:$0xf] %vm1576_vm2, %v1843_v53 }
 0x14f   :  { %1606 = vst.msk [vmem:[%s2900_s4 + $0x74] sm:$0xf] %vm1576_vm2, %v1809_v33 }
 0x150   :  { %1638 = vst.msk [vmem:[%s2900_s4 + $0xf4] sm:$0xf] %vm1576_vm2, %v1841_v34 }

// kernel: _lambda_.6
= control target key start
LH: loop header
LB: loop body
LE: loop exit
PB: predicated region body
PF: predicated region fallthrough
CT: control target
= control target key end

     0   :  { %s1760_s15 = smov 0   ;;  %s1762_s16 = smov 0   ;;  %s2029_s0 = inlined_call_operand.vmem [shape: bf16[128,1024], index: 0, kind: input, shape index: {}]   ;;  %s2030_s1 = inlined_call_operand.vmem [shape: bf16[1024,128], index: 1, kind: input, shape index: {}]   ;;  %s2031_s2 = inlined_call_operand.vmem [shape: f32[1,128], index: 2, kind: input, shape index: {}]   ;;  %s2032_s3 = inlined_call_operand.vmem [shape: f32[1,128], index: 3, kind: input, shape index: {}]   ;;  %s2033_s4 = inlined_call_operand.vmem [shape: bf16[128,128], index: 4, kind: output, shape index: {}]  }
   0x1   :  { %s1764_s17 = smov 0   ;;  %s1766_s18 = smov 0  }
   0x2   :  { %s1768_s19 = smov 0  }
   0x3 LB: > { %s23_s20 = sadd.s32 1, %s1728_s18  ;;  %p42_p1 = scmp.ne.s32.totalorder %s1720_s16, %s1716_s15  ;;  %s1732_s19 = sphi %s1768_s19, %s14_s19   ;;  %s1728_s18 = sphi %s1766_s18, %s2037_s18   ;;  %s1724_s17 = sphi %s1764_s17, %s2036_s17   ;;  %s1720_s16 = sphi %s1762_s16, %s2035_s16   ;;  %s1716_s15 = sphi %s1760_s15, %s2034_s15  }
   0x4   : > { %p24_p0 = scmp.ge.s32.totalorder %s23_s20, 2  ;;  %p43_p2 = scmp.eq.s32.totalorder %s1732_s19, 0 }
   0x5   : > { %s35_s22 = sadd.s32 1, %s1720_s16  ;;  %p1285_p5 = scmp.ge.s32.totalorder %s1732_s19, 2 }
   0x6   : > { %s2039_s20 = smov (%p24_p0, %s23_s20), 0  ;;  %p44_p3 = por %p43_p2, %p42_p1 }
   0x7   : > { %s31_s21 = ssub.s32 %s1728_s18, %s2039_s20  ;;  %166 = sbr.rel (%p1285_p5) target bundleno = 32 (0x20), region = 28 }
   0x8   : > { %p33_p4 = scmp.eq.s32.totalorder %s31_s21, 0 }
   0xa   : > { %s1795_s23 = scalar_select %p33_p4, %s1720_s16, %s35_s22  }
   0xc   : > { %169 = sbr.rel (!%p44_p3) target bundleno = 32 (0x20), region = 32  ;;  %s171_s24 = sand.u32 (%p44_p3), 1, %s1720_s16  }
   0xd   : > { %s1381_s25 = sshll.u32 (%p44_p3), %s1728_s18, 4  ;;  %s1286_s26 = sshll.u32 (%p44_p3), %s171_s24, 8 }
   0xe   : > { %s1803_s29 = scalar_lea.vmem (%p44_p3), %s2029_s0, %s1381_s25  ;;  %s1808_s30 = scalar_lea.vmem (%p44_p3), [#allocation3], %s1286_s26 }
   0xf   : > { %v192_v0 = vld [vmem:[%s1803_s29] sm:$0xff] (%p44_p3)  ;;  %v194_v1 = vld [vmem:[%s1803_s29 + $0x8] sm:$0xff] (%p44_p3) }
  0x10   : > { %v196_v2 = vld [vmem:[%s1803_s29 + $0x20] sm:$0xff] (%p44_p3)  ;;  %193 = vst [vmem:[%s1808_s30] sm:$0xff] (%p44_p3), %v192_v0  ;;  %195 = vst [vmem:[%s1808_s30 + $0x8] sm:$0xff] (%p44_p3), %v194_v1  ;;  %v198_v3 = vld [vmem:[%s1803_s29 + $0x28] sm:$0xff] (%p44_p3) }
  0x11   : > { %197 = vst [vmem:[%s1808_s30 + $0x10] sm:$0xff] %v196_v2  ;;  %v200_v4 = vld [vmem:[%s1803_s29 + $0x40] sm:$0xff]  ;;  %v202_v5 = vld [vmem:[%s1803_s29 + $0x48] sm:$0xff]  ;;  %199 = vst [vmem:[%s1808_s30 + $0x18] sm:$0xff] %v198_v3 }
  0x12   : > { %201 = vst [vmem:[%s1808_s30 + $0x20] sm:$0xff] %v200_v4  ;;  %203 = vst [vmem:[%s1808_s30 + $0x28] sm:$0xff] %v202_v5  ;;  %v204_v6 = vld [vmem:[%s1803_s29 + $0x60] sm:$0xff]  ;;  %v206_v7 = vld [vmem:[%s1803_s29 + $0x68] sm:$0xff] }
  0x13   : > { %v208_v8 = vld [vmem:[%s1803_s29 + $0x80] sm:$0xff]  ;;  %205 = vst [vmem:[%s1808_s30 + $0x30] sm:$0xff] %v204_v6  ;;  %207 = vst [vmem:[%s1808_s30 + $0x38] sm:$0xff] %v206_v7  ;;  %v210_v9 = vld [vmem:[%s1803_s29 + $0x88] sm:$0xff] }
  0x14   : > { %209 = vst [vmem:[%s1808_s30 + $0x40] sm:$0xff] %v208_v8  ;;  %v212_v10 = vld [vmem:[%s1803_s29 + $0xa0] sm:$0xff]  ;;  %v214_v11 = vld [vmem:[%s1803_s29 + $0xa8] sm:$0xff]  ;;  %211 = vst [vmem:[%s1808_s30 + $0x48] sm:$0xff] %v210_v9 }
  0x15   : > { %213 = vst [vmem:[%s1808_s30 + $0x50] sm:$0xff] %v212_v10  ;;  %215 = vst [vmem:[%s1808_s30 + $0x58] sm:$0xff] %v214_v11  ;;  %v216_v12 = vld [vmem:[%s1803_s29 + $0xc0] sm:$0xff]  ;;  %v218_v13 = vld [vmem:[%s1803_s29 + $0xc8] sm:$0xff] }
  0x16   : > { %v220_v14 = vld [vmem:[%s1803_s29 + $0xe0] sm:$0xff]  ;;  %217 = vst [vmem:[%s1808_s30 + $0x60] sm:$0xff] %v216_v12  ;;  %219 = vst [vmem:[%s1808_s30 + $0x68] sm:$0xff] %v218_v13  ;;  %v222_v15 = vld [vmem:[%s1803_s29 + $0xe8] sm:$0xff] }
  0x17   : > { %221 = vst [vmem:[%s1808_s30 + $0x70] sm:$0xff] %v220_v14  ;;  %v224_v16 = vld [vmem:[%s1803_s29 + $0x100] sm:$0xff]  ;;  %v226_v17 = vld [vmem:[%s1803_s29 + $0x108] sm:$0xff]  ;;  %223 = vst [vmem:[%s1808_s30 + $0x78] sm:$0xff] %v222_v15 }
  0x18   : > { %225 = vst [vmem:[%s1808_s30 + $0x80] sm:$0xff] %v224_v16  ;;  %227 = vst [vmem:[%s1808_s30 + $0x88] sm:$0xff] %v226_v17  ;;  %v228_v18 = vld [vmem:[%s1803_s29 + $0x120] sm:$0xff]  ;;  %v230_v19 = vld [vmem:[%s1803_s29 + $0x128] sm:$0xff] }
  0x19   : > { %v232_v20 = vld [vmem:[%s1803_s29 + $0x140] sm:$0xff]  ;;  %229 = vst [vmem:[%s1808_s30 + $0x90] sm:$0xff] %v228_v18  ;;  %231 = vst [vmem:[%s1808_s30 + $0x98] sm:$0xff] %v230_v19  ;;  %v234_v21 = vld [vmem:[%s1803_s29 + $0x148] sm:$0xff] }
  0x1a   : > { %233 = vst [vmem:[%s1808_s30 + $0xa0] sm:$0xff] %v232_v20  ;;  %v236_v22 = vld [vmem:[%s1803_s29 + $0x160] sm:$0xff]  ;;  %v238_v23 = vld [vmem:[%s1803_s29 + $0x168] sm:$0xff]  ;;  %235 = vst [vmem:[%s1808_s30 + $0xa8] sm:$0xff] %v234_v21 }
  0x1b   : > { %237 = vst [vmem:[%s1808_s30 + $0xb0] sm:$0xff] %v236_v22  ;;  %239 = vst [vmem:[%s1808_s30 + $0xb8] sm:$0xff] %v238_v23  ;;  %v240_v24 = vld [vmem:[%s1803_s29 + $0x180] sm:$0xff]  ;;  %v242_v25 = vld [vmem:[%s1803_s29 + $0x188] sm:$0xff] }
  0x1c   : > { %v244_v26 = vld [vmem:[%s1803_s29 + $0x1a0] sm:$0xff]  ;;  %241 = vst [vmem:[%s1808_s30 + $0xc0] sm:$0xff] %v240_v24  ;;  %243 = vst [vmem:[%s1808_s30 + $0xc8] sm:$0xff] %v242_v25  ;;  %v246_v27 = vld [vmem:[%s1803_s29 + $0x1a8] sm:$0xff] }
  0x1d   : > { %245 = vst [vmem:[%s1808_s30 + $0xd0] sm:$0xff] %v244_v26  ;;  %v248_v28 = vld [vmem:[%s1803_s29 + $0x1c0] sm:$0xff]  ;;  %v250_v29 = vld [vmem:[%s1803_s29 + $0x1c8] sm:$0xff]  ;;  %247 = vst [vmem:[%s1808_s30 + $0xd8] sm:$0xff] %v246_v27 }
  0x1e   : > { %249 = vst [vmem:[%s1808_s30 + $0xe0] sm:$0xff] %v248_v28  ;;  %251 = vst [vmem:[%s1808_s30 + $0xe8] sm:$0xff] %v250_v29  ;;  %v252_v30 = vld [vmem:[%s1803_s29 + $0x1e0] sm:$0xff]  ;;  %v254_v31 = vld [vmem:[%s1803_s29 + $0x1e8] sm:$0xff] }
  0x1f   : > { %253 = vst [vmem:[%s1808_s30 + $0xf0] sm:$0xff] %v252_v30  ;;  %255 = vst [vmem:[%s1808_s30 + $0xf8] sm:$0xff] %v254_v31 }
  0x20 PF: > { %p1289_p6 = scmp.ge.s32.totalorder %s1732_s19, 1  ;;  %p260_p7 = scmp.lt.s32.totalorder %s1732_s19, 3 }
  0x22   : > { %p261_p8 = pnand %p1289_p6, %p260_p7 }
  0x23   : > { %s267_s5 = sand.u32 (!%p261_p8), 1, %s1716_s15   ;;  %p1291_p9 = scmp.ne.s32.totalorder (!%p261_p8), %s1724_s17, 0 }
  0x24   : > { %264 = sbr.rel (%p261_p8) target bundleno = 386 (0x182), region = 55  ;;  %s1290_s6 = sshll.u32 (!%p261_p8), %s267_s5, 8 }
  0x25   : > { %s1874_s7 = scalar_lea.vmem (!%p261_p8), [#allocation3], %s1290_s6 }
  0x29   : > { %304 = sbr.rel (%p1291_p9) target bundleno = 55 (0x37), region = 63 }
  0x2e   : > { %v1734_v32 = vmov 0.0  }
  0x2f   : > { %305 = vst [vmem:[#allocation2 + $0x30] sm:$0xff] %v1734_v32  ;;  %306 = vst [vmem:[#allocation2] sm:$0xff] %v1734_v32 }
  0x30   : > { %307 = vst [vmem:[#allocation2 + $0x58] sm:$0xff] %v1734_v32  ;;  %308 = vst [vmem:[#allocation2 + $0x18] sm:$0xff] %v1734_v32 }
  0x31   : > { %309 = vst [vmem:[#allocation2 + $0x50] sm:$0xff] %v1734_v32  ;;  %310 = vst [vmem:[#allocation2 + $0x68] sm:$0xff] %v1734_v32 }
  0x32   : > { %311 = vst [vmem:[#allocation2 + $0x8] sm:$0xff] %v1734_v32  ;;  %312 = vst [vmem:[#allocation2 + $0x48] sm:$0xff] %v1734_v32 }
  0x33   : > { %313 = vst [vmem:[#allocation2 + $0x40] sm:$0xff] %v1734_v32  ;;  %314 = vst [vmem:[#allocation2 + $0x20] sm:$0xff] %v1734_v32 }
  0x34   : > { %315 = vst [vmem:[#allocation2 + $0x10] sm:$0xff] %v1734_v32  ;;  %316 = vst [vmem:[#allocation2 + $0x38] sm:$0xff] %v1734_v32 }
  0x35   : > { %317 = vst [vmem:[#allocation2 + $0x60] sm:$0xff] %v1734_v32  ;;  %318 = vst [vmem:[#allocation2 + $0x70] sm:$0xff] %v1734_v32 }
  0x36   : > { %319 = vst [vmem:[#allocation2 + $0x78] sm:$0xff] %v1734_v32  ;;  %320 = vst [vmem:[#allocation2 + $0x28] sm:$0xff] %v1734_v32 }
  0x37 PF: > { %s1292_s8 = sshll.u32 %s1724_s17, 9  ;;  %v1648_v33 = vld [vmem:[%s1874_s7 + $0x4] ss:$16 sps:$4 sm:$0xff]   ;;  %v1651_v34 = vld [vmem:[%s1874_s7 + $0xc] ss:$16 sps:$4 sm:$0xff]   ;;  %p1358_p10 = scmp.ne.s32.totalorder %s1724_s17, 1 }
  0x38   : > { %s370_s9 = sshra.s32 %s1292_s8, 3  ;;  %822 = vmatprep.mubr.bf16.mxu0 %v1648_v33  ;;  %919 = vmatprep.mubr.bf16.mxu1 %v1651_v34  ;;  %v1646_v1 = vld [vmem:[%s1874_s7] ss:$16 sps:$4 sm:$0xff]   ;;  %v1649_v4 = vld [vmem:[%s1874_s7 + $0x8] ss:$16 sps:$4 sm:$0xff]  }
  0x39   : > { %s1293_s10 = sshll.u32 %s370_s9, 2  ;;  %v1652_v5 = vld [vmem:[%s1874_s7 + $0x24] ss:$16 sps:$4 sm:$0xff]   ;;  %v1654_v6 = vld [vmem:[%s1874_s7 + $0x2c] ss:$16 sps:$4 sm:$0xff]  }
  0x3a   : > { %s1883_s13 = scalar_lea.vmem %s2030_s1, %s1293_s10  ;;  %v1656_v7 = vld [vmem:[%s1874_s7 + $0x20] ss:$16 sps:$4 sm:$0xff]   ;;  %v1657_v8 = vld [vmem:[%s1874_s7 + $0x28] ss:$16 sps:$4 sm:$0xff]   ;;  %v1658_v9 = vld [vmem:[%s1874_s7 + $0x44] ss:$16 sps:$4 sm:$0xff]  }
  0x3b   : > { %v1614_v35 = vld [vmem:[%s1883_s13 + $0x78] sm:$0xff]   ;;  %v1618_v39 = vld [vmem:[%s1883_s13 + $0x70] sm:$0xff]   ;;  %v1622_v43 = vld [vmem:[%s1883_s13 + $0x68] sm:$0xff]  }
  0x3c   : > { %v1615_v36 = vld [vmem:[%s1883_s13 + $0xf8] sm:$0xff]   ;;  %1445 = vmatprep.subr.bf16.mxu0 %v1614_v35  ;;  %v1619_v40 = vld [vmem:[%s1883_s13 + $0xf0] sm:$0xff]   ;;  %v1623_v44 = vld [vmem:[%s1883_s13 + $0xe8] sm:$0xff]  }
  0x3d   : > { %v1616_v37 = vld [vmem:[%s1883_s13 + $0x38] sm:$0xff]   ;;  %1509 = vmatprep.subr.bf16.mxu1 %v1615_v36  ;;  %v1620_v41 = vld [vmem:[%s1883_s13 + $0x30] sm:$0xff]   ;;  %v1624_v45 = vld [vmem:[%s1883_s13 + $0x28] sm:$0xff]  }
  0x3e   : > { %v1617_v38 = vld [vmem:[%s1883_s13 + $0xb8] sm:$0xff]   ;;  %1446 = vmatpush3.bf16.msra.mxu0 %v1616_v37  ;;  %v1621_v42 = vld [vmem:[%s1883_s13 + $0xb0] sm:$0xff]   ;;  %v1625_v46 = vld [vmem:[%s1883_s13 + $0xa8] sm:$0xff]  }
  0x3f   : > { %1510 = vmatpush3.bf16.msra.mxu1 %v1617_v38  ;;  %1447 = vmatprep.subr.bf16.mxu0 %v1618_v39  ;;  %v1626_v47 = vld [vmem:[%s1883_s13 + $0x60] sm:$0xff]   ;;  %v1630_v51 = vld [vmem:[%s1883_s13 + $0x58] sm:$0xff]   ;;  %v1634_v55 = vld [vmem:[%s1883_s13 + $0x50] sm:$0xff]  }
  0x40   : > { %1511 = vmatprep.subr.bf16.mxu1 %v1619_v40  ;;  %v1627_v48 = vld [vmem:[%s1883_s13 + $0xe0] sm:$0xff]   ;;  %v1631_v52 = vld [vmem:[%s1883_s13 + $0xd8] sm:$0xff]   ;;  %v1635_v56 = vld [vmem:[%s1883_s13 + $0xd0] sm:$0xff]  }
  0x41   : > { %v1628_v49 = vld [vmem:[%s1883_s13 + $0x20] sm:$0xff]   ;;  %v1632_v53 = vld [vmem:[%s1883_s13 + $0x18] sm:$0xff]   ;;  %v1636_v57 = vld [vmem:[%s1883_s13 + $0x10] sm:$0xff]  }
  0x42   : > { %1448 = vmatpush3.bf16.msra.mxu0 %v1620_v41  ;;  %v1629_v50 = vld [vmem:[%s1883_s13 + $0xa0] sm:$0xff]   ;;  %v1633_v54 = vld [vmem:[%s1883_s13 + $0x98] sm:$0xff]   ;;  %v1637_v58 = vld [vmem:[%s1883_s13 + $0x90] sm:$0xff]  }
  0x43   : > { %1512 = vmatpush3.bf16.msra.mxu1 %v1621_v42  ;;  %1449 = vmatprep.subr.bf16.mxu0 %v1622_v43  ;;  %v1638_v59 = vld [vmem:[%s1883_s13 + $0x48] sm:$0xff]   ;;  %v1642_v63 = vld [vmem:[%s1883_s13 + $0x40] sm:$0xff]   ;;  %v322_v40 = vld [vmem:[#allocation2 + $0x30] sm:$0xff] }
  0x44   : > { %1513 = vmatprep.subr.bf16.mxu1 %v1623_v44  ;;  %v1639_v60 = vld [vmem:[%s1883_s13 + $0xc8] sm:$0xff]   ;;  %v1643_v0 = vld [vmem:[%s1883_s13 + $0xc0] sm:$0xff]  }
  0x45   : > { %v1640_v61 = vld [vmem:[%s1883_s13 + $0x8] sm:$0xff]   ;;  %v1644_v2 = vld [vmem:[%s1883_s13] sm:$0xff]  }
  0x46   : > { %1450 = vmatpush3.bf16.msra.mxu0 %v1624_v45  ;;  %v1641_v62 = vld [vmem:[%s1883_s13 + $0x88] sm:$0xff]   ;;  %v1645_v3 = vld [vmem:[%s1883_s13 + $0x80] sm:$0xff]  }
  0x47   : > { %1514 = vmatpush3.bf16.msra.mxu1 %v1625_v46  ;;  %1451 = vmatprep.subr.bf16.mxu0 %v1626_v47  ;;  %v1660_v10 = vld [vmem:[%s1874_s7 + $0x4c] ss:$16 sps:$4 sm:$0xff]   ;;  %v1662_v11 = vld [vmem:[%s1874_s7 + $0x40] ss:$16 sps:$4 sm:$0xff]   ;;  %v1663_v12 = vld [vmem:[%s1874_s7 + $0x48] ss:$16 sps:$4 sm:$0xff]  }
  0x48   : > { %1515 = vmatprep.subr.bf16.mxu1 %v1627_v48  ;;  %v1664_v13 = vld [vmem:[%s1874_s7 + $0x64] ss:$16 sps:$4 sm:$0xff]   ;;  %v1666_v14 = vld [vmem:[%s1874_s7 + $0x6c] ss:$16 sps:$4 sm:$0xff]   ;;  %v1668_v15 = vld [vmem:[%s1874_s7 + $0x60] ss:$16 sps:$4 sm:$0xff]  }
  0x49   : > { %v1669_v16 = vld [vmem:[%s1874_s7 + $0x68] ss:$16 sps:$4 sm:$0xff]   ;;  %v1670_v17 = vld [vmem:[%s1874_s7 + $0x84] ss:$16 sps:$4 sm:$0xff]   ;;  %v1672_v18 = vld [vmem:[%s1874_s7 + $0x8c] ss:$16 sps:$4 sm:$0xff]  }
  0x4a   : > { %1452 = vmatpush3.bf16.msra.mxu0 %v1628_v49  ;;  %v1674_v19 = vld [vmem:[%s1874_s7 + $0x80] ss:$16 sps:$4 sm:$0xff]   ;;  %v1675_v20 = vld [vmem:[%s1874_s7 + $0x88] ss:$16 sps:$4 sm:$0xff]   ;;  %v1676_v21 = vld [vmem:[%s1874_s7 + $0xa4] ss:$16 sps:$4 sm:$0xff]  }
  0x4b   : > { %1516 = vmatpush3.bf16.msra.mxu1 %v1629_v50  ;;  %1453 = vmatprep.subr.bf16.mxu0 %v1630_v51  ;;  %v1678_v22 = vld [vmem:[%s1874_s7 + $0xac] ss:$16 sps:$4 sm:$0xff]   ;;  %v1680_v23 = vld [vmem:[%s1874_s7 + $0xa0] ss:$16 sps:$4 sm:$0xff]   ;;  %v1681_v24 = vld [vmem:[%s1874_s7 + $0xa8] ss:$16 sps:$4 sm:$0xff]  }
  0x4c   : > { %1517 = vmatprep.subr.bf16.mxu1 %v1631_v52  ;;  %v1682_v25 = vld [vmem:[%s1874_s7 + $0xc4] ss:$16 sps:$4 sm:$0xff]   ;;  %v1684_v26 = vld [vmem:[%s1874_s7 + $0xcc] ss:$16 sps:$4 sm:$0xff]   ;;  %v1686_v27 = vld [vmem:[%s1874_s7 + $0xc0] ss:$16 sps:$4 sm:$0xff]  }
  0x4d   : > { %v1687_v28 = vld [vmem:[%s1874_s7 + $0xc8] ss:$16 sps:$4 sm:$0xff]   ;;  %v1688_v29 = vld [vmem:[%s1874_s7 + $0xe4] ss:$16 sps:$4 sm:$0xff]   ;;  %v1690_v30 = vld [vmem:[%s1874_s7 + $0xec] ss:$16 sps:$4 sm:$0xff]  }
  0x4e   : > { %1454 = vmatpush3.bf16.msra.mxu0 %v1632_v53  ;;  %v1692_v31 = vld [vmem:[%s1874_s7 + $0xe0] ss:$16 sps:$4 sm:$0xff]   ;;  %v1693_v32 = vld [vmem:[%s1874_s7 + $0xe8] ss:$16 sps:$4 sm:$0xff]  }
  0x4f   : > { %1518 = vmatpush3.bf16.msra.mxu1 %v1633_v54  ;;  %1455 = vmatprep.subr.bf16.mxu0 %v1634_v55  ;;  %v323_v49 = vld [vmem:[#allocation2] sm:$0xff] }
  0x50   : > { %1519 = vmatprep.subr.bf16.mxu1 %v1635_v56 }
  0x52   : > { %1456 = vmatpush3.bf16.msra.mxu0 %v1636_v57 }
  0x53   : > { %1520 = vmatpush3.bf16.msra.mxu1 %v1637_v58  ;;  %1457 = vmatprep.subr.bf16.mxu0 %v1638_v59  ;;  %v324_v58 = vld [vmem:[#allocation2 + $0x58] sm:$0xff] }
  0x54   : > { %1521 = vmatprep.subr.bf16.mxu1 %v1639_v60 }
  0x56   : > { %1458 = vmatpush3.bf16.msra.mxu0 %v1640_v61 }
  0x57   : > { %1522 = vmatpush3.bf16.msra.mxu1 %v1641_v62  ;;  %1459 = vmatprep.subr.bf16.mxu0 %v1642_v63 }
  0x58   : > { %1523 = vmatprep.subr.bf16.mxu1 %v1643_v0 }
  0x5a   : > { %1460 = vmatpush3.bf16.msra.mxu0 %v1644_v2 }
  0x5b   : > { %1524 = vmatpush3.bf16.msra.mxu1 %v1645_v3  ;;  %v325_v3 = vld [vmem:[#allocation2 + $0x18] sm:$0xff] }
  0x5d   : > { %823 = vmatmul.mubr.bf16.vlgmr.msra.gmra.mxu0 %v1646_v1 }
  0x5e   : > { %920 = vmatmul.mubr.bf16.vlgmr.msra.gmra.mxu1 %v1649_v4  ;;  %830 = vmatprep.mubr.bf16.mxu0 %v1652_v5 }
  0x5f   : > { %927 = vmatprep.mubr.bf16.mxu1 %v1654_v6 }
  0x65   : > { %831 = vmatmul.mubr.bf16.gmra.mxu0 %v1656_v7 }
  0x66   : > { %928 = vmatmul.mubr.bf16.gmra.mxu1 %v1657_v8  ;;  %838 = vmatprep.mubr.bf16.mxu0 %v1658_v9 }
  0x67   : > { %935 = vmatprep.mubr.bf16.mxu1 %v1660_v10 }
  0x6d   : > { %839 = vmatmul.mubr.bf16.gmra.mxu0 %v1662_v11 }
  0x6e   : > { %936 = vmatmul.mubr.bf16.gmra.mxu1 %v1663_v12  ;;  %846 = vmatprep.mubr.bf16.mxu0 %v1664_v13  ;;  %v326_v12 = vld [vmem:[#allocation2 + $0x50] sm:$0xff] }
  0x6f   : > { %943 = vmatprep.mubr.bf16.mxu1 %v1666_v14 }
  0x75   : > { %847 = vmatmul.mubr.bf16.gmra.mxu0 %v1668_v15 }
  0x76   : > { %944 = vmatmul.mubr.bf16.gmra.mxu1 %v1669_v16  ;;  %854 = vmatprep.mubr.bf16.mxu0 %v1670_v17 }
  0x77   : > { %951 = vmatprep.mubr.bf16.mxu1 %v1672_v18 }
  0x7d   : > { %855 = vmatmul.mubr.bf16.gmra.mxu0 %v1674_v19 }
  0x7e   : > { %952 = vmatmul.mubr.bf16.gmra.mxu1 %v1675_v20  ;;  %862 = vmatprep.mubr.bf16.mxu0 %v1676_v21  ;;  %v327_v21 = vld [vmem:[#allocation2 + $0x68] sm:$0xff] }
  0x7f   : > { %959 = vmatprep.mubr.bf16.mxu1 %v1678_v22 }
  0x85   : > { %863 = vmatmul.mubr.bf16.gmra.mxu0 %v1680_v23 }
  0x86   : > { %960 = vmatmul.mubr.bf16.gmra.mxu1 %v1681_v24  ;;  %870 = vmatprep.mubr.bf16.mxu0 %v1682_v25 }
  0x87   : > { %967 = vmatprep.mubr.bf16.mxu1 %v1684_v26 }
  0x8d   : > { %871 = vmatmul.mubr.bf16.gmra.mxu0 %v1686_v27 }
  0x8e   : > { %968 = vmatmul.mubr.bf16.gmra.mxu1 %v1687_v28  ;;  %878 = vmatprep.mubr.bf16.mxu0 %v1688_v29 }
  0x8f   : > { %975 = vmatprep.mubr.bf16.mxu1 %v1690_v30  ;;  %v328_v30 = vld [vmem:[#allocation2 + $0x8] sm:$0xff] }
  0x95   : > { %879 = vmatmul.mubr.bf16.gmra.mxu0 %v1692_v31 }
  0x96   : > { %976 = vmatmul.mubr.bf16.gmra.mxu1 %v1693_v32 }
 0x11d   : > { %v1461_v33 = vpop.f32.mrf.mxu0 }
 0x11e   : > { %v1525_v34 = vpop.f32.mrf.mxu1 }
 0x11f   : > { %v1462_v35 = vpop.f32.mrf.mxu0 }
 0x120   : > { %v1463_v36 = vadd.f32 %v1462_v35, %v1461_v33  ;;  %v1526_v37 = vpop.f32.mrf.mxu1 }
 0x121   : > { %v1527_v38 = vadd.f32 %v1526_v37, %v1525_v34  ;;  %v1464_v39 = vpop.f32.mrf.mxu0 }
 0x122   : > { %v1528_v41 = vpop.f32.mrf.mxu1 }
 0x123   : > { %v922_v42 = vadd.f32 %v1527_v38, %v1463_v36  ;;  %v1465_v43 = vpop.f32.mrf.mxu0 }
 0x124   : > { %v1466_v44 = vadd.f32 %v1465_v43, %v1464_v39  ;;  %v1529_v45 = vpop.f32.mrf.mxu1  ;;  %v329_v39 = vld [vmem:[#allocation2 + $0x48] sm:$0xff] }
 0x125   : > { %v984_v46 = vadd.f32 %v922_v42, %v322_v40  ;;  %v1530_v47 = vadd.f32 %v1529_v45, %v1528_v41  ;;  %v1467_v48 = vpop.f32.mrf.mxu0 }
 0x126   : > { %v1531_v50 = vpop.f32.mrf.mxu1 }
 0x127   : > { %1000 = vst [vmem:[#allocation2 + $0x30] sm:$0xff] %v984_v46  ;;  %v925_v51 = vadd.f32 %v1530_v47, %v1466_v44  ;;  %v1468_v52 = vpop.f32.mrf.mxu0 }
 0x128   : > { %v1469_v53 = vadd.f32 %v1468_v52, %v1467_v48  ;;  %v1532_v54 = vpop.f32.mrf.mxu1  ;;  %v330_v48 = vld [vmem:[#allocation2 + $0x40] sm:$0xff] }
 0x129   : > { %v985_v55 = vadd.f32 %v925_v51, %v323_v49  ;;  %v1533_v56 = vadd.f32 %v1532_v54, %v1531_v50  ;;  %v1470_v57 = vpop.f32.mrf.mxu0 }
 0x12a   : > { %v1534_v59 = vpop.f32.mrf.mxu1 }
 0x12b   : > { %1001 = vst [vmem:[#allocation2] sm:$0xff] %v985_v55  ;;  %v930_v60 = vadd.f32 %v1533_v56, %v1469_v53  ;;  %v1471_v61 = vpop.f32.mrf.mxu0 }
 0x12c   : > { %v1472_v62 = vadd.f32 %v1471_v61, %v1470_v57  ;;  %v1535_v63 = vpop.f32.mrf.mxu1  ;;  %v331_v57 = vld [vmem:[#allocation2 + $0x20] sm:$0xff] }
 0x12d   : > { %v986_v0 = vadd.f32 %v930_v60, %v324_v58  ;;  %v1536_v1 = vadd.f32 %v1535_v63, %v1534_v59  ;;  %v1473_v2 = vpop.f32.mrf.mxu0 }
 0x12e   : > { %v1537_v4 = vpop.f32.mrf.mxu1 }
 0x12f   : > { %1002 = vst [vmem:[#allocation2 + $0x58] sm:$0xff] %v986_v0  ;;  %v933_v5 = vadd.f32 %v1536_v1, %v1472_v62  ;;  %v1474_v6 = vpop.f32.mrf.mxu0 }
 0x130   : > { %v1475_v7 = vadd.f32 %v1474_v6, %v1473_v2  ;;  %v1538_v8 = vpop.f32.mrf.mxu1  ;;  %v332_v2 = vld [vmem:[#allocation2 + $0x10] sm:$0xff] }
 0x131   : > { %v987_v9 = vadd.f32 %v933_v5, %v325_v3  ;;  %v1539_v10 = vadd.f32 %v1538_v8, %v1537_v4  ;;  %v1476_v11 = vpop.f32.mrf.mxu0 }
 0x132   : > { %v1540_v13 = vpop.f32.mrf.mxu1 }
 0x133   : > { %1003 = vst [vmem:[#allocation2 + $0x18] sm:$0xff] %v987_v9  ;;  %v938_v14 = vadd.f32 %v1539_v10, %v1475_v7  ;;  %v1477_v15 = vpop.f32.mrf.mxu0 }
 0x134   : > { %v1478_v16 = vadd.f32 %v1477_v15, %v1476_v11  ;;  %v1541_v17 = vpop.f32.mrf.mxu1  ;;  %v333_v11 = vld [vmem:[#allocation2 + $0x38] sm:$0xff] }
 0x135   : > { %v988_v18 = vadd.f32 %v938_v14, %v326_v12  ;;  %v1542_v19 = vadd.f32 %v1541_v17, %v1540_v13  ;;  %v1479_v20 = vpop.f32.mrf.mxu0 }
 0x136   : > { %v1543_v22 = vpop.f32.mrf.mxu1 }
 0x137   : > { %1004 = vst [vmem:[#allocation2 + $0x50] sm:$0xff] %v988_v18  ;;  %v941_v23 = vadd.f32 %v1542_v19, %v1478_v16  ;;  %v1480_v24 = vpop.f32.mrf.mxu0 }
 0x138   : > { %v1481_v25 = vadd.f32 %v1480_v24, %v1479_v20  ;;  %v1544_v26 = vpop.f32.mrf.mxu1  ;;  %v334_v20 = vld [vmem:[#allocation2 + $0x60] sm:$0xff] }
 0x139   : > { %v989_v27 = vadd.f32 %v941_v23, %v327_v21  ;;  %v1545_v28 = vadd.f32 %v1544_v26, %v1543_v22  ;;  %v1482_v29 = vpop.f32.mrf.mxu0 }
 0x13a   : > { %v1546_v31 = vpop.f32.mrf.mxu1 }
 0x13b   : > { %1005 = vst [vmem:[#allocation2 + $0x68] sm:$0xff] %v989_v27  ;;  %v946_v32 = vadd.f32 %v1545_v28, %v1481_v25  ;;  %v1483_v33 = vpop.f32.mrf.mxu0 }
 0x13c   : > { %v1484_v34 = vadd.f32 %v1483_v33, %v1482_v29  ;;  %v1547_v35 = vpop.f32.mrf.mxu1  ;;  %v335_v29 = vld [vmem:[#allocation2 + $0x70] sm:$0xff] }
 0x13d   : > { %v990_v36 = vadd.f32 %v946_v32, %v328_v30  ;;  %v1548_v37 = vadd.f32 %v1547_v35, %v1546_v31  ;;  %v1485_v38 = vpop.f32.mrf.mxu0 }
 0x13e   : > { %v1549_v40 = vpop.f32.mrf.mxu1 }
 0x13f   : > { %1006 = vst [vmem:[#allocation2 + $0x8] sm:$0xff] %v990_v36  ;;  %v949_v41 = vadd.f32 %v1548_v37, %v1484_v34  ;;  %v1486_v42 = vpop.f32.mrf.mxu0 }
 0x140   : > { %v1487_v43 = vadd.f32 %v1486_v42, %v1485_v38  ;;  %v1550_v44 = vpop.f32.mrf.mxu1  ;;  %v336_v38 = vld [vmem:[#allocation2 + $0x78] sm:$0xff] }
 0x141   : > { %v991_v45 = vadd.f32 %v949_v41, %v329_v39  ;;  %v1551_v46 = vadd.f32 %v1550_v44, %v1549_v40  ;;  %v1488_v47 = vpop.f32.mrf.mxu0 }
 0x142   : > { %v1552_v49 = vpop.f32.mrf.mxu1 }
 0x143   : > { %1007 = vst [vmem:[#allocation2 + $0x48] sm:$0xff] %v991_v45  ;;  %v954_v50 = vadd.f32 %v1551_v46, %v1487_v43  ;;  %v1489_v51 = vpop.f32.mrf.mxu0  ;;  %v337_v46 = vld [vmem:[#allocation2 + $0x28] sm:$0xff] }
 0x144   : > { %v1490_v52 = vadd.f32 %v1489_v51, %v1488_v47  ;;  %v1553_v53 = vpop.f32.mrf.mxu1 }
 0x145   : > { %v992_v54 = vadd.f32 %v954_v50, %v330_v48  ;;  %v1554_v55 = vadd.f32 %v1553_v53, %v1552_v49  ;;  %v1491_v56 = vpop.f32.mrf.mxu0 }
 0x146   : > { %v1555_v58 = vpop.f32.mrf.mxu1 }
 0x147   : > { %1008 = vst [vmem:[#allocation2 + $0x40] sm:$0xff] %v992_v54  ;;  %v957_v59 = vadd.f32 %v1554_v55, %v1490_v52  ;;  %v1492_v60 = vpop.f32.mrf.mxu0 }
 0x148   : > { %v1493_v61 = vadd.f32 %v1492_v60, %v1491_v56  ;;  %v1556_v62 = vpop.f32.mrf.mxu1 }
 0x149   : > { %v993_v63 = vadd.f32 %v957_v59, %v331_v57  ;;  %v1557_v0 = vadd.f32 %v1556_v62, %v1555_v58  ;;  %v1494_v1 = vpop.f32.mrf.mxu0 }
 0x14a   : > { %v1558_v3 = vpop.f32.mrf.mxu1 }
 0x14b   : > { %1009 = vst [vmem:[#allocation2 + $0x20] sm:$0xff] %v993_v63  ;;  %v962_v4 = vadd.f32 %v1557_v0, %v1493_v61  ;;  %v1495_v5 = vpop.f32.mrf.mxu0 }
 0x14c   : > { %v1496_v6 = vadd.f32 %v1495_v5, %v1494_v1  ;;  %v1559_v7 = vpop.f32.mrf.mxu1 }
 0x14d   : > { %v994_v8 = vadd.f32 %v962_v4, %v332_v2  ;;  %v1560_v9 = vadd.f32 %v1559_v7, %v1558_v3  ;;  %v1497_v10 = vpop.f32.mrf.mxu0 }
 0x14e   : > { %v1561_v12 = vpop.f32.mrf.mxu1 }
 0x14f   : > { %1010 = vst [vmem:[#allocation2 + $0x10] sm:$0xff] %v994_v8  ;;  %v965_v13 = vadd.f32 %v1560_v9, %v1496_v6  ;;  %v1498_v14 = vpop.f32.mrf.mxu0 }
 0x150   : > { %v1499_v15 = vadd.f32 %v1498_v14, %v1497_v10  ;;  %v1562_v16 = vpop.f32.mrf.mxu1 }
 0x151   : > { %v995_v17 = vadd.f32 %v965_v13, %v333_v11  ;;  %v1563_v18 = vadd.f32 %v1562_v16, %v1561_v12  ;;  %v1500_v19 = vpop.f32.mrf.mxu0 }
 0x152   : > { %v1564_v21 = vpop.f32.mrf.mxu1 }
 0x153   : > { %1011 = vst [vmem:[#allocation2 + $0x38] sm:$0xff] %v995_v17  ;;  %v970_v22 = vadd.f32 %v1563_v18, %v1499_v15  ;;  %v1501_v23 = vpop.f32.mrf.mxu0 }
 0x154   : > { %v1502_v24 = vadd.f32 %v1501_v23, %v1500_v19  ;;  %v1565_v25 = vpop.f32.mrf.mxu1 }
 0x155   : > { %v996_v26 = vadd.f32 %v970_v22, %v334_v20  ;;  %v1566_v27 = vadd.f32 %v1565_v25, %v1564_v21  ;;  %v1503_v28 = vpop.f32.mrf.mxu0 }
 0x156   : > { %v1567_v30 = vpop.f32.mrf.mxu1 }
 0x157   : > { %1012 = vst [vmem:[#allocation2 + $0x60] sm:$0xff] %v996_v26  ;;  %v973_v31 = vadd.f32 %v1566_v27, %v1502_v24  ;;  %v1504_v32 = vpop.f32.mrf.mxu0 }
 0x158   : > { %v1505_v33 = vadd.f32 %v1504_v32, %v1503_v28  ;;  %v1568_v34 = vpop.f32.mrf.mxu1 }
 0x159   : > { %v997_v35 = vadd.f32 %v973_v31, %v335_v29  ;;  %v1569_v36 = vadd.f32 %v1568_v34, %v1567_v30  ;;  %v1506_v37 = vpop.f32.mrf.mxu0 }
 0x15a   : > { %v1570_v39 = vpop.f32.mrf.mxu1 }
 0x15b   : > { %1013 = vst [vmem:[#allocation2 + $0x70] sm:$0xff] %v997_v35  ;;  %v978_v40 = vadd.f32 %v1569_v36, %v1505_v33  ;;  %v1507_v41 = vpop.f32.mrf.mxu0 }
 0x15c   : > { %v1508_v42 = vadd.f32 %v1507_v41, %v1506_v37  ;;  %v1571_v43 = vpop.f32.mrf.mxu1 }
 0x15d   : > { %v998_v44 = vadd.f32 %v978_v40, %v336_v38  ;;  %v1572_v45 = vadd.f32 %v1571_v43, %v1570_v39 }
 0x15f   : > { %1014 = vst [vmem:[#allocation2 + $0x78] sm:$0xff] %v998_v44  ;;  %v981_v47 = vadd.f32 %v1572_v45, %v1508_v42  ;;  %1019 = sbr.rel (%p1358_p10) target bundleno = 386 (0x182), region = 67 }
 0x161   : > { %v999_v48 = vadd.f32 %v981_v47, %v337_v46 }
 0x163   : > { %1015 = vst [vmem:[#allocation2 + $0x28] sm:$0xff] %v999_v48 }
 0x164   : > { %v1020_v49 = vld [vmem:[#allocation2 + $0x30] sm:$0xff]  ;;  %v1021_v50 = vld [vmem:[#allocation2] sm:$0xff]  ;;  %v1022_v55 = vld [vmem:[#allocation2 + $0x58] sm:$0xff] }
 0x165   : > { %v1951_v51 = vld [vmem:[%s2031_s2] ss:$0 sm:$0xff]  ;;  %v1023_v56 = vld [vmem:[#allocation2 + $0x18] sm:$0xff]  ;;  %v1024_v59 = vld [vmem:[#allocation2 + $0x50] sm:$0xff] }
 0x166   : > { %v1043_v52 = vmul.f32 %v1951_v51, %v1020_v49  ;;  %v1044_v53 = vmul.f32 %v1951_v51, %v1021_v50  ;;  %v1958_v54 = vld [vmem:[%s2032_s3] ss:$0 sm:$0xff]  ;;  %v1045_v57 = vmul.f32 %v1951_v51, %v1022_v55  ;;  %v1046_v58 = vmul.f32 %v1951_v51, %v1023_v56  ;;  %v1025_v60 = vld [vmem:[#allocation2 + $0x68] sm:$0xff]  ;;  %v1030_v21 = vld [vmem:[#allocation2 + $0x10] sm:$0xff] }
 0x167   : > { %v1026_v61 = vld [vmem:[#allocation2 + $0x8] sm:$0xff]  ;;  %v1047_v0 = vmul.f32 %v1951_v51, %v1024_v59  ;;  %v1048_v1 = vmul.f32 %v1951_v51, %v1025_v60  ;;  %v1028_v19 = vld [vmem:[#allocation2 + $0x40] sm:$0xff]  ;;  %v1031_v27 = vld [vmem:[#allocation2 + $0x38] sm:$0xff]  ;;  %v1053_v31 = vmul.f32 %v1951_v51, %v1030_v21 }
 0x168   : > { %v1066_v62 = vadd.f32 %v1958_v54, %v1043_v52  ;;  %v1067_v63 = vadd.f32 %v1958_v54, %v1044_v53  ;;  %v1027_v2 = vld [vmem:[#allocation2 + $0x48] sm:$0xff]  ;;  %v1068_v3 = vadd.f32 %v1958_v54, %v1045_v57  ;;  %v1069_v4 = vadd.f32 %v1958_v54, %v1046_v58  ;;  %v1029_v20 = vld [vmem:[#allocation2 + $0x20] sm:$0xff]  ;;  %v1033_v33 = vld [vmem:[#allocation2 + $0x70] sm:$0xff] }
 0x169   : > { %v1049_v5 = vmul.f32 %v1951_v51, %v1026_v61  ;;  %v1050_v6 = vmul.f32 %v1951_v51, %v1027_v2  ;;  %v1070_v13 = vadd.f32 %v1958_v54, %v1047_v0  ;;  %v1071_v14 = vadd.f32 %v1958_v54, %v1048_v1  ;;  %v1032_v32 = vld [vmem:[#allocation2 + $0x60] sm:$0xff]  ;;  %v1034_v45 = vld [vmem:[#allocation2 + $0x78] sm:$0xff] }
 0x16a   : > { %vm1082_vm0 = vcmp.ge.f32.partialorder %v1066_v62, 0.0  ;;  %vm1083_vm1 = vcmp.ge.f32.partialorder %v1067_v63, 0.0  ;;  %v1098_v7 = vmul.f32 0.2, %v1066_v62  ;;  %v1099_v8 = vmul.f32 0.2, %v1067_v63 }
 0x16b   : > { %vm1084_vm2 = vcmp.ge.f32.partialorder %v1068_v3, 0.0  ;;  %vm1085_vm3 = vcmp.ge.f32.partialorder %v1069_v4, 0.0  ;;  %v1100_v9 = vmul.f32 0.2, %v1068_v3  ;;  %v1101_v10 = vmul.f32 0.2, %v1069_v4 }
 0x16c   : > { %v1114_v11 = vsel %vm1082_vm0, %v1066_v62, %v1098_v7  ;;  %v1115_v12 = vsel %vm1083_vm1, %v1067_v63, %v1099_v8  ;;  %v1072_v18 = vadd.f32 %v1958_v54, %v1049_v5  ;;  %vm1086_vm4 = vcmp.ge.f32.partialorder %v1070_v13, 0.0  ;;  %v1035_v56 = vld [vmem:[#allocation2 + $0x28] sm:$0xff] }
 0x16d   : > { %v1401_v15 = vpack.c.bf16 %v1115_v12, %v1114_v11  ;;  %v1116_v16 = vsel %vm1084_vm2, %v1068_v3, %v1100_v9  ;;  %v1117_v17 = vsel %vm1085_vm3, %v1069_v4, %v1101_v10  ;;  %vm1087_vm5 = vcmp.ge.f32.partialorder %v1071_v14, 0.0 }
 0x16e   : > { %v1406_v22 = vpack.c.bf16 %v1117_v17, %v1116_v16  ;;  %v1102_v23 = vmul.f32 0.2, %v1070_v13  ;;  %v1103_v24 = vmul.f32 0.2, %v1071_v14  ;;  %v1073_v25 = vadd.f32 %v1958_v54, %v1050_v6 }
 0x16f   : > { %1402 = vst [vmem:[%s2033_s4] sm:$0xff] %v1401_v15   ;;  %vm1088_vm6 = vcmp.ge.f32.partialorder %v1072_v18, 0.0  ;;  %v1104_v26 = vmul.f32 0.2, %v1072_v18  ;;  %v1051_v29 = vmul.f32 %v1951_v51, %v1028_v19  ;;  %v1052_v30 = vmul.f32 %v1951_v51, %v1029_v20 }
 0x170   : > { %1438 = vst [vmem:[%s2033_s4 + $0x8] sm:$0xff] %v1406_v22   ;;  %v1118_v28 = vsel %vm1086_vm4, %v1070_v13, %v1102_v23  ;;  %v1119_v34 = vsel %vm1087_vm5, %v1071_v14, %v1103_v24  ;;  %vm1089_vm7 = vcmp.ge.f32.partialorder %v1073_v25, 0.0  ;;  %v1105_v35 = vmul.f32 0.2, %v1073_v25 }
 0x171   : > { %v1120_v36 = vsel %vm1088_vm6, %v1072_v18, %v1104_v26  ;;  %v1411_v37 = vpack.c.bf16 %v1119_v34, %v1118_v28  ;;  %v1074_v38 = vadd.f32 %v1958_v54, %v1051_v29  ;;  %v1075_v39 = vadd.f32 %v1958_v54, %v1052_v30 }
 0x172   : > { %v1054_v40 = vmul.f32 %v1951_v51, %v1031_v27  ;;  %v1121_v41 = vsel %vm1089_vm7, %v1073_v25, %v1105_v35  ;;  %v1076_v42 = vadd.f32 %v1958_v54, %v1053_v31  ;;  %v1055_v43 = vmul.f32 %v1951_v51, %v1032_v32 }
 0x173   : > { %v1056_v44 = vmul.f32 %v1951_v51, %v1033_v33  ;;  %1439 = vst [vmem:[%s2033_s4 + $0x10] sm:$0xff] %v1411_v37   ;;  %v1416_v46 = vpack.c.bf16 %v1121_v41, %v1120_v36  ;;  %vm1090_vm8 = vcmp.ge.f32.partialorder %v1074_v38, 0.0  ;;  %vm1091_vm9 = vcmp.ge.f32.partialorder %v1075_v39, 0.0 }
 0x174   : > { %v1106_v47 = vmul.f32 0.2, %v1074_v38  ;;  %v1107_v48 = vmul.f32 0.2, %v1075_v39  ;;  %v1077_v49 = vadd.f32 %v1958_v54, %v1054_v40  ;;  %vm1092_vm10 = vcmp.ge.f32.partialorder %v1076_v42, 0.0 }
 0x175   : > { %v1108_v50 = vmul.f32 0.2, %v1076_v42  ;;  %1440 = vst [vmem:[%s2033_s4 + $0x18] sm:$0xff] %v1416_v46   ;;  %v1078_v53 = vadd.f32 %v1958_v54, %v1055_v43  ;;  %v1079_v55 = vadd.f32 %v1958_v54, %v1056_v44  ;;  %v1057_v57 = vmul.f32 %v1951_v51, %v1034_v45 }
 0x176   : > { %v1122_v52 = vsel %vm1090_vm8, %v1074_v38, %v1106_v47  ;;  %v1123_v58 = vsel %vm1091_vm9, %v1075_v39, %v1107_v48  ;;  %vm1093_vm11 = vcmp.ge.f32.partialorder %v1077_v49, 0.0  ;;  %v1109_v59 = vmul.f32 0.2, %v1077_v49 }
 0x177   : > { %v1124_v60 = vsel %vm1092_vm10, %v1076_v42, %v1108_v50  ;;  %v1421_v61 = vpack.c.bf16 %v1123_v58, %v1122_v52  ;;  %vm1094_vm12 = vcmp.ge.f32.partialorder %v1078_v53, 0.0  ;;  %vm1095_vm13 = vcmp.ge.f32.partialorder %v1079_v55, 0.0 }
 0x178   : > { %v1110_v62 = vmul.f32 0.2, %v1078_v53  ;;  %v1125_v63 = vsel %vm1093_vm11, %v1077_v49, %v1109_v59  ;;  %v1111_v0 = vmul.f32 0.2, %v1079_v55  ;;  %v1058_v1 = vmul.f32 %v1951_v51, %v1035_v56 }
 0x179   : > { %v1080_v2 = vadd.f32 %v1958_v54, %v1057_v57  ;;  %1441 = vst [vmem:[%s2033_s4 + $0x20] sm:$0xff] %v1421_v61   ;;  %v1426_v3 = vpack.c.bf16 %v1125_v63, %v1124_v60 }
 0x17a   : > { %v1126_v4 = vsel %vm1094_vm12, %v1078_v53, %v1110_v62  ;;  %v1127_v5 = vsel %vm1095_vm13, %v1079_v55, %v1111_v0  ;;  %v1081_v6 = vadd.f32 %v1958_v54, %v1058_v1 }
 0x17b   : > { %vm1096_vm14 = vcmp.ge.f32.partialorder %v1080_v2, 0.0  ;;  %v1112_v7 = vmul.f32 0.2, %v1080_v2  ;;  %1442 = vst [vmem:[%s2033_s4 + $0x28] sm:$0xff] %v1426_v3   ;;  %v1431_v8 = vpack.c.bf16 %v1127_v5, %v1126_v4 }
 0x17c   : > { %vm1097_vm15 = vcmp.ge.f32.partialorder %v1081_v6, 0.0  ;;  %v1113_v51 = vmul.f32 0.2, %v1081_v6 }
 0x17d   : > { %v1128_v9 = vsel %vm1096_vm14, %v1080_v2, %v1112_v7  ;;  %1443 = vst [vmem:[%s2033_s4 + $0x30] sm:$0xff] %v1431_v8  }
 0x17e   : > { %v1129_v10 = vsel %vm1097_vm15, %v1081_v6, %v1113_v51 }
 0x17f   : > { %v1436_v11 = vpack.c.bf16 %v1129_v10, %v1128_v9 }
 0x181   : > { %1444 = vst [vmem:[%s2033_s4 + $0x38] sm:$0xff] %v1436_v11  }
 0x182 PF: > { %s14_s19 = sadd.s32 1, %s1732_s19   ;;  %s2034_s15 = smov %s1720_s16 }
 0x183   : > { %p11_p11 = scmp.ge.s32.totalorder %s14_s19, 4   ;;  %s2035_s16 = smov %s1795_s23 }
 0x184   : > { %s2036_s17 = smov %s1728_s18  ;;  %s2037_s18 = smov %s2039_s20 }
 0x185   :  { %13 = sbr.rel (!%p11_p11) target bundleno = 3 (0x3), region = 103 }

// kernel: _lambda_.7
= control target key start
LH: loop header
LB: loop body
LE: loop exit
PB: predicated region body
PF: predicated region fallthrough
CT: control target
= control target key end

     0   :  { %s1327_s15 = smov 0   ;;  %s1329_s16 = smov 0   ;;  %s1488_s0 = inlined_call_operand.vmem [shape: bf16[32,2048], index: 0, kind: input, shape index: {}]   ;;  %s1489_s1 = inlined_call_operand.vmem [shape: bf16[2048,256], index: 1, kind: input, shape index: {}]   ;;  %s1490_s2 = inlined_call_operand.vmem [shape: f32[1,256], index: 2, kind: input, shape index: {}]   ;;  %s1491_s3 = inlined_call_operand.vmem [shape: f32[1,256], index: 3, kind: input, shape index: {}]   ;;  %s1492_s4 = inlined_call_operand.vmem [shape: bf16[32,256], index: 4, kind: output, shape index: {}]  }
   0x1   :  { %s1331_s17 = smov 0   ;;  %s1333_s18 = smov 0  }
   0x2   :  { %s1335_s19 = smov 0  }
   0x3 LB: > { %s23_s20 = sadd.s32 1, %s1295_s18  ;;  %p42_p1 = scmp.ne.s32.totalorder %s1287_s16, %s1283_s15  ;;  %s1299_s19 = sphi %s1335_s19, %s14_s19   ;;  %s1295_s18 = sphi %s1333_s18, %s1496_s18   ;;  %s1291_s17 = sphi %s1331_s17, %s1495_s17   ;;  %s1287_s16 = sphi %s1329_s16, %s1494_s16   ;;  %s1283_s15 = sphi %s1327_s15, %s1493_s15  }
   0x4   : > { %p24_p0 = scmp.ge.s32.totalorder %s23_s20, 4  ;;  %p43_p2 = scmp.eq.s32.totalorder %s1299_s19, 0 }
   0x5   : > { %s35_s22 = sadd.s32 1, %s1287_s16  ;;  %p1015_p5 = scmp.ge.s32.totalorder %s1299_s19, 4 }
   0x6   : > { %s1498_s20 = smov (%p24_p0, %s23_s20), 0  ;;  %p44_p3 = por %p43_p2, %p42_p1 }
   0x7   : > { %s31_s21 = ssub.s32 %s1295_s18, %s1498_s20  ;;  %166 = sbr.rel (%p1015_p5) target bundleno = 20 (0x14), region = 28 }
   0x8   : > { %p33_p4 = scmp.eq.s32.totalorder %s31_s21, 0 }
   0xa   : > { %s1362_s23 = scalar_select %p33_p4, %s1287_s16, %s35_s22  }
   0xc   : > { %169 = sbr.rel (!%p44_p3) target bundleno = 20 (0x14), region = 32  ;;  %s171_s24 = sand.u32 (%p44_p3), 1, %s1287_s16  }
   0xd   : > { %s1106_s25 = sshll.u32 (%p44_p3), %s1295_s18, 4  ;;  %s1016_s26 = sshll.u32 (%p44_p3), %s171_s24, 6 }
   0xe   : > { %s179_s29 = scalar_lea.vmem (%p44_p3), %s1488_s0, %s1106_s25  ;;  %s173_s30 = scalar_lea.vmem (%p44_p3), [#allocation3], %s1016_s26 }
   0xf   : > { %v192_v0 = vld [vmem:[%s179_s29] sm:$0xff] (%p44_p3)  ;;  %v194_v1 = vld [vmem:[%s179_s29 + $0x8] sm:$0xff] (%p44_p3) }
  0x10   : > { %v196_v2 = vld [vmem:[%s179_s29 + $0x40] sm:$0xff] (%p44_p3)  ;;  %193 = vst [vmem:[%s173_s30] sm:$0xff] (%p44_p3), %v192_v0  ;;  %195 = vst [vmem:[%s173_s30 + $0x8] sm:$0xff] (%p44_p3), %v194_v1  ;;  %v198_v3 = vld [vmem:[%s179_s29 + $0x48] sm:$0xff] (%p44_p3) }
  0x11   : > { %197 = vst [vmem:[%s173_s30 + $0x10] sm:$0xff] %v196_v2  ;;  %v200_v4 = vld [vmem:[%s179_s29 + $0x80] sm:$0xff]  ;;  %v202_v5 = vld [vmem:[%s179_s29 + $0x88] sm:$0xff]  ;;  %199 = vst [vmem:[%s173_s30 + $0x18] sm:$0xff] %v198_v3 }
  0x12   : > { %201 = vst [vmem:[%s173_s30 + $0x20] sm:$0xff] %v200_v4  ;;  %203 = vst [vmem:[%s173_s30 + $0x28] sm:$0xff] %v202_v5  ;;  %v204_v6 = vld [vmem:[%s179_s29 + $0xc0] sm:$0xff]  ;;  %v206_v7 = vld [vmem:[%s179_s29 + $0xc8] sm:$0xff] }
  0x13   : > { %205 = vst [vmem:[%s173_s30 + $0x30] sm:$0xff] %v204_v6  ;;  %207 = vst [vmem:[%s173_s30 + $0x38] sm:$0xff] %v206_v7 }
  0x14 PF: > { %p1019_p6 = scmp.ge.s32.totalorder %s1299_s19, 1  ;;  %p212_p7 = scmp.lt.s32.totalorder %s1299_s19, 5 }
  0x16   : > { %p213_p8 = pnand %p1019_p6, %p212_p7 }
  0x17   : > { %s219_s5 = sand.u32 (!%p213_p8), 1, %s1283_s15   ;;  %p1021_p9 = scmp.ne.s32.totalorder (!%p213_p8), %s1291_s17, 0 }
  0x18   : > { %216 = sbr.rel (%p213_p8) target bundleno = 342 (0x156), region = 55  ;;  %s1020_s6 = sshll.u32 (!%p213_p8), %s219_s5, 6 }
  0x19   : > { %s1373_s7 = scalar_lea.vmem (!%p213_p8), [#allocation3], %s1020_s6 }
  0x1d   : > { %257 = sbr.rel (%p1021_p9) target bundleno = 39 (0x27), region = 63 }
  0x22   : > { %v1301_v8 = vmov 0.0  }
  0x23   : > { %258 = vst [vmem:[#allocation2 + $0x30] sm:$0xff] %v1301_v8  ;;  %259 = vst [vmem:[#allocation2] sm:$0xff] %v1301_v8 }
  0x24   : > { %260 = vst [vmem:[#allocation2 + $0x18] sm:$0xff] %v1301_v8  ;;  %261 = vst [vmem:[#allocation2 + $0x10] sm:$0xff] %v1301_v8 }
  0x25   : > { %262 = vst [vmem:[#allocation2 + $0x8] sm:$0xff] %v1301_v8  ;;  %263 = vst [vmem:[#allocation2 + $0x20] sm:$0xff] %v1301_v8 }
  0x26   : > { %264 = vst [vmem:[#allocation2 + $0x28] sm:$0xff] %v1301_v8  ;;  %265 = vst [vmem:[#allocation2 + $0x38] sm:$0xff] %v1301_v8 }
  0x27 PF: > { %s1022_s8 = sshll.u32 %s1291_s17, 9  ;;  %v1251_v9 = vld [vmem:[%s1373_s7 + $0x4] ss:$16 sps:$4 sm:$0xff]   ;;  %v1254_v57 = vld [vmem:[%s1373_s7 + $0xc] ss:$16 sps:$4 sm:$0xff]   ;;  %p1097_p10 = scmp.ne.s32.totalorder %s1291_s17, 3 }
  0x28   : > { %s1380_s11 = scalar_lea.vmem %s1489_s1, %s1022_s8  ;;  %744 = vmatprep.mubr.bf16.mxu0 %v1251_v9  ;;  %797 = vmatprep.mubr.bf16.mxu1 %v1254_v57 }
  0x29   : > { %v1153_v10 = vld [vmem:[%s1380_s11 + $0x74] ss:$8 sps:$4 sm:$0xff]   ;;  %v1157_v12 = vld [vmem:[%s1380_s11 + $0x70] ss:$8 sps:$4 sm:$0xff]   ;;  %v1159_v14 = vld [vmem:[%s1380_s11 + $0x64] ss:$8 sps:$4 sm:$0xff]  }
  0x2a   : > { %v1155_v11 = vld [vmem:[%s1380_s11 + $0x174] ss:$8 sps:$4 sm:$0xff]   ;;  %712 = vmatprep.subr.bf16.mxu0 %v1153_v10  ;;  %v1158_v13 = vld [vmem:[%s1380_s11 + $0x170] ss:$8 sps:$4 sm:$0xff]   ;;  %v1161_v15 = vld [vmem:[%s1380_s11 + $0x164] ss:$8 sps:$4 sm:$0xff]  }
  0x2b   : > { %765 = vmatprep.subr.bf16.mxu1 %v1155_v11  ;;  %713 = vmatpush1.bf16.msra.mxu0 %v1157_v12  ;;  %v1163_v16 = vld [vmem:[%s1380_s11 + $0x60] ss:$8 sps:$4 sm:$0xff]   ;;  %v1165_v18 = vld [vmem:[%s1380_s11 + $0x54] ss:$8 sps:$4 sm:$0xff]   ;;  %v1169_v20 = vld [vmem:[%s1380_s11 + $0x50] ss:$8 sps:$4 sm:$0xff]  }
  0x2c   : > { %766 = vmatpush1.bf16.msra.mxu1 %v1158_v13  ;;  %714 = vmatprep.subr.bf16.mxu0 %v1159_v14  ;;  %v1164_v17 = vld [vmem:[%s1380_s11 + $0x160] ss:$8 sps:$4 sm:$0xff]   ;;  %v1167_v19 = vld [vmem:[%s1380_s11 + $0x154] ss:$8 sps:$4 sm:$0xff]   ;;  %v1170_v21 = vld [vmem:[%s1380_s11 + $0x150] ss:$8 sps:$4 sm:$0xff]  }
  0x2d   : > { %767 = vmatprep.subr.bf16.mxu1 %v1161_v15  ;;  %v1171_v22 = vld [vmem:[%s1380_s11 + $0x44] ss:$8 sps:$4 sm:$0xff]   ;;  %v1175_v24 = vld [vmem:[%s1380_s11 + $0x40] ss:$8 sps:$4 sm:$0xff]   ;;  %v1177_v26 = vld [vmem:[%s1380_s11 + $0x34] ss:$8 sps:$4 sm:$0xff]  }
  0x2e   : > { %v1173_v23 = vld [vmem:[%s1380_s11 + $0x144] ss:$8 sps:$4 sm:$0xff]   ;;  %v1176_v25 = vld [vmem:[%s1380_s11 + $0x140] ss:$8 sps:$4 sm:$0xff]   ;;  %v1179_v27 = vld [vmem:[%s1380_s11 + $0x134] ss:$8 sps:$4 sm:$0xff]  }
  0x2f   : > { %715 = vmatpush1.bf16.msra.mxu0 %v1163_v16  ;;  %v1181_v28 = vld [vmem:[%s1380_s11 + $0x30] ss:$8 sps:$4 sm:$0xff]   ;;  %v1183_v30 = vld [vmem:[%s1380_s11 + $0x24] ss:$8 sps:$4 sm:$0xff]   ;;  %v1187_v32 = vld [vmem:[%s1380_s11 + $0x20] ss:$8 sps:$4 sm:$0xff]  }
  0x30   : > { %768 = vmatpush1.bf16.msra.mxu1 %v1164_v17  ;;  %716 = vmatprep.subr.bf16.mxu0 %v1165_v18  ;;  %v1182_v29 = vld [vmem:[%s1380_s11 + $0x130] ss:$8 sps:$4 sm:$0xff]   ;;  %v1185_v31 = vld [vmem:[%s1380_s11 + $0x124] ss:$8 sps:$4 sm:$0xff]   ;;  %v1188_v33 = vld [vmem:[%s1380_s11 + $0x120] ss:$8 sps:$4 sm:$0xff]  }
  0x31   : > { %769 = vmatprep.subr.bf16.mxu1 %v1167_v19  ;;  %v1189_v34 = vld [vmem:[%s1380_s11 + $0x14] ss:$8 sps:$4 sm:$0xff]   ;;  %v1193_v36 = vld [vmem:[%s1380_s11 + $0x10] ss:$8 sps:$4 sm:$0xff]   ;;  %v1195_v38 = vld [vmem:[%s1380_s11 + $0x4] ss:$8 sps:$4 sm:$0xff]  }
  0x32   : > { %v1191_v35 = vld [vmem:[%s1380_s11 + $0x114] ss:$8 sps:$4 sm:$0xff]   ;;  %v1194_v37 = vld [vmem:[%s1380_s11 + $0x110] ss:$8 sps:$4 sm:$0xff]   ;;  %v1197_v39 = vld [vmem:[%s1380_s11 + $0x104] ss:$8 sps:$4 sm:$0xff]  }
  0x33   : > { %717 = vmatpush1.bf16.msra.mxu0 %v1169_v20  ;;  %v1199_v40 = vld [vmem:[%s1380_s11] ss:$8 sps:$4 sm:$0xff]   ;;  %v1201_v42 = vld [vmem:[%s1380_s11 + $0xf4] ss:$8 sps:$4 sm:$0xff]   ;;  %v1205_v44 = vld [vmem:[%s1380_s11 + $0xf0] ss:$8 sps:$4 sm:$0xff]  }
  0x34   : > { %770 = vmatpush1.bf16.msra.mxu1 %v1170_v21  ;;  %718 = vmatprep.subr.bf16.mxu0 %v1171_v22  ;;  %v1200_v41 = vld [vmem:[%s1380_s11 + $0x100] ss:$8 sps:$4 sm:$0xff]   ;;  %v1203_v43 = vld [vmem:[%s1380_s11 + $0x1f4] ss:$8 sps:$4 sm:$0xff]   ;;  %v1206_v45 = vld [vmem:[%s1380_s11 + $0x1f0] ss:$8 sps:$4 sm:$0xff]  }
  0x35   : > { %771 = vmatprep.subr.bf16.mxu1 %v1173_v23  ;;  %v1207_v46 = vld [vmem:[%s1380_s11 + $0xe4] ss:$8 sps:$4 sm:$0xff]   ;;  %v1211_v48 = vld [vmem:[%s1380_s11 + $0xe0] ss:$8 sps:$4 sm:$0xff]   ;;  %v1213_v50 = vld [vmem:[%s1380_s11 + $0xd4] ss:$8 sps:$4 sm:$0xff]  }
  0x36   : > { %v1209_v47 = vld [vmem:[%s1380_s11 + $0x1e4] ss:$8 sps:$4 sm:$0xff]   ;;  %v1212_v49 = vld [vmem:[%s1380_s11 + $0x1e0] ss:$8 sps:$4 sm:$0xff]   ;;  %v1215_v51 = vld [vmem:[%s1380_s11 + $0x1d4] ss:$8 sps:$4 sm:$0xff]  }
  0x37   : > { %719 = vmatpush1.bf16.msra.mxu0 %v1175_v24  ;;  %v1217_v52 = vld [vmem:[%s1380_s11 + $0xd0] ss:$8 sps:$4 sm:$0xff]   ;;  %v1219_v54 = vld [vmem:[%s1380_s11 + $0xc4] ss:$8 sps:$4 sm:$0xff]   ;;  %v1223_v56 = vld [vmem:[%s1380_s11 + $0xc0] ss:$8 sps:$4 sm:$0xff]  }
  0x38   : > { %772 = vmatpush1.bf16.msra.mxu1 %v1176_v25  ;;  %720 = vmatprep.subr.bf16.mxu0 %v1177_v26  ;;  %v1218_v53 = vld [vmem:[%s1380_s11 + $0x1d0] ss:$8 sps:$4 sm:$0xff]   ;;  %v1221_v55 = vld [vmem:[%s1380_s11 + $0x1c4] ss:$8 sps:$4 sm:$0xff]   ;;  %v1224_v58 = vld [vmem:[%s1380_s11 + $0x1c0] ss:$8 sps:$4 sm:$0xff]  }
  0x39   : > { %773 = vmatprep.subr.bf16.mxu1 %v1179_v27  ;;  %v1225_v59 = vld [vmem:[%s1380_s11 + $0xb4] ss:$8 sps:$4 sm:$0xff]   ;;  %v1229_v61 = vld [vmem:[%s1380_s11 + $0xb0] ss:$8 sps:$4 sm:$0xff]   ;;  %v1231_v63 = vld [vmem:[%s1380_s11 + $0xa4] ss:$8 sps:$4 sm:$0xff]  }
  0x3a   : > { %v1227_v60 = vld [vmem:[%s1380_s11 + $0x1b4] ss:$8 sps:$4 sm:$0xff]   ;;  %v1230_v62 = vld [vmem:[%s1380_s11 + $0x1b0] ss:$8 sps:$4 sm:$0xff]   ;;  %v1233_v0 = vld [vmem:[%s1380_s11 + $0x1a4] ss:$8 sps:$4 sm:$0xff]  }
  0x3b   : > { %721 = vmatpush1.bf16.msra.mxu0 %v1181_v28  ;;  %v1235_v1 = vld [vmem:[%s1380_s11 + $0xa0] ss:$8 sps:$4 sm:$0xff]   ;;  %v1237_v3 = vld [vmem:[%s1380_s11 + $0x94] ss:$8 sps:$4 sm:$0xff]   ;;  %v1241_v5 = vld [vmem:[%s1380_s11 + $0x90] ss:$8 sps:$4 sm:$0xff]  }
  0x3c   : > { %774 = vmatpush1.bf16.msra.mxu1 %v1182_v29  ;;  %722 = vmatprep.subr.bf16.mxu0 %v1183_v30  ;;  %v1236_v2 = vld [vmem:[%s1380_s11 + $0x1a0] ss:$8 sps:$4 sm:$0xff]   ;;  %v1239_v4 = vld [vmem:[%s1380_s11 + $0x194] ss:$8 sps:$4 sm:$0xff]   ;;  %v1242_v6 = vld [vmem:[%s1380_s11 + $0x190] ss:$8 sps:$4 sm:$0xff]  }
  0x3d   : > { %775 = vmatprep.subr.bf16.mxu1 %v1185_v31  ;;  %v1243_v7 = vld [vmem:[%s1380_s11 + $0x84] ss:$8 sps:$4 sm:$0xff]   ;;  %v1247_v9 = vld [vmem:[%s1380_s11 + $0x80] ss:$8 sps:$4 sm:$0xff]   ;;  %v267_v18 = vld [vmem:[#allocation2 + $0x30] sm:$0xff] }
  0x3e   : > { %v1245_v8 = vld [vmem:[%s1380_s11 + $0x184] ss:$8 sps:$4 sm:$0xff]   ;;  %v1248_v10 = vld [vmem:[%s1380_s11 + $0x180] ss:$8 sps:$4 sm:$0xff]   ;;  %v269_v27 = vld [vmem:[#allocation2 + $0x18] sm:$0xff] }
  0x3f   : > { %723 = vmatpush1.bf16.msra.mxu0 %v1187_v32  ;;  %v1249_v11 = vld [vmem:[%s1373_s7] ss:$16 sps:$4 sm:$0xff]   ;;  %v1252_v12 = vld [vmem:[%s1373_s7 + $0x8] ss:$16 sps:$4 sm:$0xff]   ;;  %v1255_v13 = vld [vmem:[%s1373_s7 + $0x24] ss:$16 sps:$4 sm:$0xff]  }
  0x40   : > { %776 = vmatpush1.bf16.msra.mxu1 %v1188_v33  ;;  %724 = vmatprep.subr.bf16.mxu0 %v1189_v34  ;;  %v1257_v14 = vld [vmem:[%s1373_s7 + $0x2c] ss:$16 sps:$4 sm:$0xff]   ;;  %v1259_v15 = vld [vmem:[%s1373_s7 + $0x20] ss:$16 sps:$4 sm:$0xff]   ;;  %v1260_v16 = vld [vmem:[%s1373_s7 + $0x28] ss:$16 sps:$4 sm:$0xff]  }
  0x41   : > { %777 = vmatprep.subr.bf16.mxu1 %v1191_v35  ;;  %v268_v22 = vld [vmem:[#allocation2] sm:$0xff]  ;;  %v270_v32 = vld [vmem:[#allocation2 + $0x10] sm:$0xff] }
  0x43   : > { %725 = vmatpush1.bf16.msra.mxu0 %v1193_v36 }
  0x44   : > { %778 = vmatpush1.bf16.msra.mxu1 %v1194_v37  ;;  %726 = vmatprep.subr.bf16.mxu0 %v1195_v38  ;;  %v271_v37 = vld [vmem:[#allocation2 + $0x8] sm:$0xff] }
  0x45   : > { %779 = vmatprep.subr.bf16.mxu1 %v1197_v39 }
  0x47   : > { %727 = vmatpush1.bf16.msra.mxu0 %v1199_v40 }
  0x48   : > { %780 = vmatpush1.bf16.msra.mxu1 %v1200_v41  ;;  %728 = vmatprep.subr.bf16.mxu0 %v1201_v42  ;;  %v272_v42 = vld [vmem:[#allocation2 + $0x20] sm:$0xff] }
  0x49   : > { %781 = vmatprep.subr.bf16.mxu1 %v1203_v43 }
  0x4b   : > { %729 = vmatpush2.bf16.msra.mxu0 %v1205_v44 }
  0x4c   : > { %782 = vmatpush2.bf16.msra.mxu1 %v1206_v45  ;;  %730 = vmatprep.subr.bf16.mxu0 %v1207_v46 }
  0x4d   : > { %783 = vmatprep.subr.bf16.mxu1 %v1209_v47  ;;  %v273_v47 = vld [vmem:[#allocation2 + $0x28] sm:$0xff] }
  0x4f   : > { %731 = vmatpush2.bf16.msra.mxu0 %v1211_v48 }
  0x50   : > { %784 = vmatpush2.bf16.msra.mxu1 %v1212_v49  ;;  %732 = vmatprep.subr.bf16.mxu0 %v1213_v50 }
  0x51   : > { %785 = vmatprep.subr.bf16.mxu1 %v1215_v51 }
  0x53   : > { %733 = vmatpush2.bf16.msra.mxu0 %v1217_v52  ;;  %v274_v52 = vld [vmem:[#allocation2 + $0x38] sm:$0xff] }
  0x54   : > { %786 = vmatpush2.bf16.msra.mxu1 %v1218_v53  ;;  %734 = vmatprep.subr.bf16.mxu0 %v1219_v54 }
  0x55   : > { %787 = vmatprep.subr.bf16.mxu1 %v1221_v55 }
  0x57   : > { %735 = vmatpush2.bf16.msra.mxu0 %v1223_v56 }
  0x58   : > { %788 = vmatpush2.bf16.msra.mxu1 %v1224_v58  ;;  %736 = vmatprep.subr.bf16.mxu0 %v1225_v59 }
  0x59   : > { %789 = vmatprep.subr.bf16.mxu1 %v1227_v60 }
  0x5b   : > { %737 = vmatpush2.bf16.msra.mxu0 %v1229_v61 }
  0x5c   : > { %790 = vmatpush2.bf16.msra.mxu1 %v1230_v62  ;;  %738 = vmatprep.subr.bf16.mxu0 %v1231_v63 }
  0x5d   : > { %791 = vmatprep.subr.bf16.mxu1 %v1233_v0 }
  0x5f   : > { %739 = vmatpush2.bf16.msra.mxu0 %v1235_v1 }
  0x60   : > { %792 = vmatpush2.bf16.msra.mxu1 %v1236_v2  ;;  %740 = vmatprep.subr.bf16.mxu0 %v1237_v3 }
  0x61   : > { %793 = vmatprep.subr.bf16.mxu1 %v1239_v4 }
  0x63   : > { %741 = vmatpush2.bf16.msra.mxu0 %v1241_v5 }
  0x64   : > { %794 = vmatpush2.bf16.msra.mxu1 %v1242_v6  ;;  %742 = vmatprep.subr.bf16.mxu0 %v1243_v7 }
  0x65   : > { %795 = vmatprep.subr.bf16.mxu1 %v1245_v8 }
  0x67   : > { %743 = vmatpush2.bf16.msra.mxu0 %v1247_v9 }
  0x68   : > { %796 = vmatpush2.bf16.msra.mxu1 %v1248_v10 }
  0x6a   : > { %745 = vmatmul.mubr.bf16.vlgmr.msra.gmra.mxu0 %v1249_v11 }
  0x6b   : > { %798 = vmatmul.mubr.bf16.vlgmr.msra.gmra.mxu1 %v1252_v12  ;;  %754 = vmatprep.mubr.bf16.mxu0 %v1255_v13 }
  0x6c   : > { %807 = vmatprep.mubr.bf16.mxu1 %v1257_v14 }
  0x72   : > { %755 = vmatmul.mubr.bf16.gmra.mxu0 %v1259_v15 }
  0x73   : > { %808 = vmatmul.mubr.bf16.gmra.mxu1 %v1260_v16 }
 0x12a   : > { %v746_v17 = vpop.f32.mrf.mxu0 }
 0x12b   : > { %v799_v19 = vpop.f32.mrf.mxu1 }
 0x12c   : > { %v800_v20 = vadd.f32 %v799_v19, %v746_v17  ;;  %v748_v21 = vpop.f32.mrf.mxu0 }
 0x12d   : > { %v801_v23 = vpop.f32.mrf.mxu1 }
 0x12e   : > { %v818_v24 = vadd.f32 %v800_v20, %v267_v18  ;;  %v802_v25 = vadd.f32 %v801_v23, %v748_v21  ;;  %v750_v26 = vpop.f32.mrf.mxu0 }
 0x12f   : > { %v803_v28 = vpop.f32.mrf.mxu1 }
 0x130   : > { %826 = vst [vmem:[#allocation2 + $0x30] sm:$0xff] %v818_v24  ;;  %v819_v29 = vadd.f32 %v802_v25, %v268_v22  ;;  %v804_v30 = vadd.f32 %v803_v28, %v750_v26  ;;  %v752_v31 = vpop.f32.mrf.mxu0 }
 0x131   : > { %v805_v33 = vpop.f32.mrf.mxu1 }
 0x132   : > { %827 = vst [vmem:[#allocation2] sm:$0xff] %v819_v29  ;;  %v820_v34 = vadd.f32 %v804_v30, %v269_v27  ;;  %v806_v35 = vadd.f32 %v805_v33, %v752_v31  ;;  %v756_v36 = vpop.f32.mrf.mxu0 }
 0x133   : > { %v809_v38 = vpop.f32.mrf.mxu1 }
 0x134   : > { %828 = vst [vmem:[#allocation2 + $0x18] sm:$0xff] %v820_v34  ;;  %v821_v39 = vadd.f32 %v806_v35, %v270_v32  ;;  %v810_v40 = vadd.f32 %v809_v38, %v756_v36  ;;  %v758_v41 = vpop.f32.mrf.mxu0 }
 0x135   : > { %v811_v43 = vpop.f32.mrf.mxu1 }
 0x136   : > { %829 = vst [vmem:[#allocation2 + $0x10] sm:$0xff] %v821_v39  ;;  %v822_v44 = vadd.f32 %v810_v40, %v271_v37  ;;  %v812_v45 = vadd.f32 %v811_v43, %v758_v41  ;;  %v760_v46 = vpop.f32.mrf.mxu0 }
 0x137   : > { %v813_v48 = vpop.f32.mrf.mxu1 }
 0x138   : > { %830 = vst [vmem:[#allocation2 + $0x8] sm:$0xff] %v822_v44  ;;  %v823_v49 = vadd.f32 %v812_v45, %v272_v42  ;;  %v814_v50 = vadd.f32 %v813_v48, %v760_v46  ;;  %v762_v51 = vpop.f32.mrf.mxu0 }
 0x139   : > { %v815_v53 = vpop.f32.mrf.mxu1 }
 0x13a   : > { %831 = vst [vmem:[#allocation2 + $0x20] sm:$0xff] %v823_v49  ;;  %v824_v54 = vadd.f32 %v814_v50, %v273_v47  ;;  %v816_v55 = vadd.f32 %v815_v53, %v762_v51  ;;  %837 = sbr.rel (%p1097_p10) target bundleno = 342 (0x156), region = 67 }
 0x13c   : > { %832 = vst [vmem:[#allocation2 + $0x28] sm:$0xff] %v824_v54  ;;  %v825_v56 = vadd.f32 %v816_v55, %v274_v52 }
 0x13e   : > { %833 = vst [vmem:[#allocation2 + $0x38] sm:$0xff] %v825_v56 }
 0x13f   : > { %v848_v57 = vlaneseq  ;;  %v846_v59 = vld [vmem:[%s1490_s2] sm:$0x3]  ;;  %v838_v61 = vld [vmem:[#allocation2 + $0x30] sm:$0xff]  ;;  %v840_v1 = vld [vmem:[#allocation2 + $0x18] sm:$0xff] }
 0x140   : > { %v866_v60 = vld [vmem:[%s1491_s3] sm:$0x3]  ;;  %v841_v2 = vld [vmem:[#allocation2 + $0x10] sm:$0xff]  ;;  %v842_v3 = vld [vmem:[#allocation2 + $0x8] sm:$0xff] }
 0x141   : > { %v849_v58 = vshrl.u32 %v848_v57, 7  ;;  %v839_v62 = vld [vmem:[#allocation2] sm:$0xff] }
 0x142   : > { %v843_v8 = vld [vmem:[#allocation2 + $0x20] sm:$0xff] }
 0x143   : > { %v850_v63 = vsub.s32 0, %v849_v58  ;;  %v854_v0 = vsub.s32 1, %v849_v58  ;;  %v844_v9 = vld [vmem:[#allocation2 + $0x28] sm:$0xff] }
 0x145   : > { %v851_v4 = vrot.slane %v846_v59, %v850_v63  ;;  %v855_v5 = vrot.slane %v846_v59, %v854_v0  ;;  %v871_v6 = vrot.slane %v866_v60, %v850_v63  ;;  %v875_v7 = vrot.slane %v866_v60, %v854_v0  ;;  %v845_v10 = vld [vmem:[#allocation2 + $0x38] sm:$0xff] }
 0x147   : > { %v858_v11 = vmul.f32 %v851_v4, %v838_v61  ;;  %v859_v12 = vmul.f32 %v855_v5, %v839_v62  ;;  %v860_v13 = vmul.f32 %v851_v4, %v840_v1  ;;  %v861_v14 = vmul.f32 %v855_v5, %v841_v2 }
 0x148   : > { %v862_v15 = vmul.f32 %v851_v4, %v842_v3  ;;  %v863_v16 = vmul.f32 %v855_v5, %v843_v8  ;;  %v864_v17 = vmul.f32 %v851_v4, %v844_v9  ;;  %v865_v18 = vmul.f32 %v855_v5, %v845_v10 }
 0x149   : > { %v878_v19 = vadd.f32 %v871_v6, %v858_v11  ;;  %v879_v20 = vadd.f32 %v875_v7, %v859_v12  ;;  %v880_v21 = vadd.f32 %v871_v6, %v860_v13  ;;  %v881_v22 = vadd.f32 %v875_v7, %v861_v14 }
 0x14a   : > { %v882_v23 = vadd.f32 %v871_v6, %v862_v15  ;;  %v883_v24 = vadd.f32 %v875_v7, %v863_v16  ;;  %v884_v25 = vadd.f32 %v871_v6, %v864_v17  ;;  %v885_v26 = vadd.f32 %v875_v7, %v865_v18 }
 0x14b   : > { %vm886_vm0 = vcmp.ge.f32.partialorder %v878_v19, 0.0  ;;  %vm887_vm1 = vcmp.ge.f32.partialorder %v879_v20, 0.0  ;;  %v894_v27 = vmul.f32 0.2, %v878_v19  ;;  %v895_v28 = vmul.f32 0.2, %v879_v20 }
 0x14c   : > { %vm888_vm2 = vcmp.ge.f32.partialorder %v880_v21, 0.0  ;;  %vm889_vm3 = vcmp.ge.f32.partialorder %v881_v22, 0.0  ;;  %v896_v29 = vmul.f32 0.2, %v880_v21  ;;  %v897_v30 = vmul.f32 0.2, %v881_v22 }
 0x14d   : > { %v902_v31 = vsel %vm886_vm0, %v878_v19, %v894_v27  ;;  %v903_v32 = vsel %vm887_vm1, %v879_v20, %v895_v28  ;;  %vm890_vm4 = vcmp.ge.f32.partialorder %v882_v23, 0.0  ;;  %vm891_vm5 = vcmp.ge.f32.partialorder %v883_v24, 0.0 }
 0x14e   : > { %v1108_v33 = vpack.c.bf16 %v903_v32, %v902_v31  ;;  %v904_v34 = vsel %vm888_vm2, %v880_v21, %v896_v29  ;;  %v905_v35 = vsel %vm889_vm3, %v881_v22, %v897_v30  ;;  %v898_v36 = vmul.f32 0.2, %v882_v23 }
 0x14f   : > { %v1109_v37 = vpack.c.bf16 %v905_v35, %v904_v34  ;;  %v899_v38 = vmul.f32 0.2, %v883_v24  ;;  %vm892_vm6 = vcmp.ge.f32.partialorder %v884_v25, 0.0  ;;  %vm893_vm7 = vcmp.ge.f32.partialorder %v885_v26, 0.0 }
 0x150   : > { %934 = vst [vmem:[%s1492_s4] sm:$0xff] %v1108_v33  ;;  %v906_v39 = vsel %vm890_vm4, %v882_v23, %v898_v36  ;;  %v900_v40 = vmul.f32 0.2, %v884_v25  ;;  %v901_v41 = vmul.f32 0.2, %v885_v26 }
 0x151   : > { %935 = vst [vmem:[%s1492_s4 + $0x8] sm:$0xff] %v1109_v37  ;;  %v907_v42 = vsel %vm891_vm5, %v883_v24, %v899_v38 }
 0x152   : > { %v1110_v43 = vpack.c.bf16 %v907_v42, %v906_v39  ;;  %v908_v44 = vsel %vm892_vm6, %v884_v25, %v900_v40  ;;  %v909_v45 = vsel %vm893_vm7, %v885_v26, %v901_v41 }
 0x153   : > { %v1111_v46 = vpack.c.bf16 %v909_v45, %v908_v44 }
 0x154   : > { %936 = vst [vmem:[%s1492_s4 + $0x10] sm:$0xff] %v1110_v43 }
 0x155   : > { %937 = vst [vmem:[%s1492_s4 + $0x18] sm:$0xff] %v1111_v46 }
 0x156 PF: > { %s14_s19 = sadd.s32 1, %s1299_s19   ;;  %s1493_s15 = smov %s1287_s16 }
 0x157   : > { %p11_p11 = scmp.ge.s32.totalorder %s14_s19, 6   ;;  %s1494_s16 = smov %s1362_s23 }
 0x158   : > { %s1495_s17 = smov %s1295_s18  ;;  %s1496_s18 = smov %s1498_s20 }
 0x159   :  { %13 = sbr.rel (!%p11_p11) target bundleno = 3 (0x3), region = 103 }

// kernel: _lambda_.8
= control target key start
LH: loop header
LB: loop body
LE: loop exit
PB: predicated region body
PF: predicated region fallthrough
CT: control target
= control target key end

     0   :  { %s2037_s15 = smov 0   ;;  %s2039_s16 = smov 0   ;;  %s2309_s0 = inlined_call_operand.vmem [shape: bf16[18,4096], index: 0, kind: input, shape index: {}]   ;;  %s2310_s1 = inlined_call_operand.vmem [shape: bf16[4096,512], index: 1, kind: input, shape index: {}]   ;;  %s2311_s2 = inlined_call_operand.vmem [shape: f32[1,512], index: 2, kind: input, shape index: {}]   ;;  %s2312_s3 = inlined_call_operand.vmem [shape: f32[1,512], index: 3, kind: input, shape index: {}]   ;;  %s2313_s4 = inlined_call_operand.vmem [shape: bf16[18,512], index: 4, kind: output, shape index: {}]  }
   0x1   :  { %s2041_s17 = smov 0   ;;  %s2043_s18 = smov 0  }
   0x2   :  { %s2045_s19 = smov 0  }
   0x3 LB: > { %s23_s20 = sadd.s32 1, %s2005_s18  ;;  %p42_p1 = scmp.ne.s32.totalorder %s1997_s16, %s1993_s15  ;;  %s2009_s19 = sphi %s2045_s19, %s14_s19   ;;  %s2005_s18 = sphi %s2043_s18, %s2317_s18   ;;  %s2001_s17 = sphi %s2041_s17, %s2316_s17   ;;  %s1997_s16 = sphi %s2039_s16, %s2315_s16   ;;  %s1993_s15 = sphi %s2037_s15, %s2314_s15  }
   0x4   : > { %p24_p0 = scmp.ge.s32.totalorder %s23_s20, 8  ;;  %p43_p2 = scmp.eq.s32.totalorder %s2009_s19, 0 }
   0x5   : > { %s35_s22 = sadd.s32 1, %s1997_s16  ;;  %p1563_p5 = scmp.ge.s32.totalorder %s2009_s19, 8 }
   0x6   : > { %s2319_s20 = smov (%p24_p0, %s23_s20), 0  ;;  %p44_p3 = por %p43_p2, %p42_p1 }
   0x7   : > { %s31_s21 = ssub.s32 %s2005_s18, %s2319_s20  ;;  %166 = sbr.rel (%p1563_p5) target bundleno = 19 (0x13), region = 28 }
   0x8   : > { %p33_p4 = scmp.eq.s32.totalorder %s31_s21, 0 }
   0xa   : > { %s2072_s23 = scalar_select %p33_p4, %s1997_s16, %s35_s22  }
   0xc   : > { %169 = sbr.rel (!%p44_p3) target bundleno = 19 (0x13), region = 32  ;;  %s171_s24 = sand.u32 (%p44_p3), 1, %s1997_s16  }
   0xd   : > { %s1718_s25 = sshll.u32 (%p44_p3), %s2005_s18, 4  ;;  %s1726_s26 = smul.u32 (%p44_p3), 48, %s171_s24 }
   0xe   : > { %s179_s29 = scalar_lea.vmem (%p44_p3), %s2309_s0, %s1718_s25 }
   0xf   : > { %v192_v0 = vld [vmem:[%s179_s29] sm:$0xff] (%p44_p3)  ;;  %v194_v1 = vld [vmem:[%s179_s29 + $0x8] sm:$0xff] (%p44_p3)  ;;  %s173_s30 = scalar_lea.vmem (%p44_p3), [#allocation3], %s1726_s26 }
  0x10   : > { %v196_v2 = vld [vmem:[%s179_s29 + $0x80] sm:$0xff] (%p44_p3)  ;;  %v198_v3 = vld [vmem:[%s179_s29 + $0x88] sm:$0xff] (%p44_p3)  ;;  %193 = vst [vmem:[%s173_s30] sm:$0xff] (%p44_p3), %v192_v0  ;;  %195 = vst [vmem:[%s173_s30 + $0x8] sm:$0xff] (%p44_p3), %v194_v1 }
  0x11   : > { %v200_v4 = vld [vmem:[%s179_s29 + $0x100] sm:$0xff]  ;;  %v202_v5 = vld [vmem:[%s179_s29 + $0x108] sm:$0xff]  ;;  %197 = vst [vmem:[%s173_s30 + $0x10] sm:$0xff] %v196_v2  ;;  %199 = vst [vmem:[%s173_s30 + $0x18] sm:$0xff] %v198_v3 }
  0x12   : > { %201 = vst [vmem:[%s173_s30 + $0x20] sm:$0xff] %v200_v4  ;;  %203 = vst [vmem:[%s173_s30 + $0x28] sm:$0xff] %v202_v5 }
  0x13 PF: > { %p1566_p6 = scmp.ge.s32.totalorder %s2009_s19, 1  ;;  %p208_p7 = scmp.lt.s32.totalorder %s2009_s19, 9 }
  0x15   : > { %p209_p8 = pnand %p1566_p6, %p208_p7 }
  0x16   : > { %s215_s5 = sand.u32 (!%p209_p8), 1, %s1993_s15   ;;  %p1567_p9 = scmp.ne.s32.totalorder (!%p209_p8), %s2001_s17, 0 }
  0x17   : > { %212 = sbr.rel (%p209_p8) target bundleno = 411 (0x19b), region = 55 }
  0x18   : > { %s1727_s6 = smul.u32 (!%p209_p8), 48, %s215_s5 }
  0x1a   : > { %s2083_s7 = scalar_lea.vmem (!%p209_p8), [#allocation3], %s1727_s6 }
  0x1c   : > { %253 = sbr.rel (%p1567_p9) target bundleno = 40 (0x28), region = 63 }
  0x21   : > { %v2011_v6 = vmov 0.0  }
  0x22   : > { %254 = vst [vmem:[#allocation2 + $0x30] sm:$0xff] %v2011_v6  ;;  %255 = vst [vmem:[#allocation2] sm:$0xff] %v2011_v6 }
  0x23   : > { %256 = vst [vmem:[#allocation2 + $0x58] sm:$0xff] %v2011_v6  ;;  %257 = vst [vmem:[#allocation2 + $0x18] sm:$0xff] %v2011_v6 }
  0x24   : > { %258 = vst [vmem:[#allocation2 + $0x50] sm:$0xff] %v2011_v6  ;;  %259 = vst [vmem:[#allocation2 + $0x20] sm:$0xff] %v2011_v6 }
  0x25   : > { %260 = vst [vmem:[#allocation2 + $0x8] sm:$0xff] %v2011_v6  ;;  %261 = vst [vmem:[#allocation2 + $0x38] sm:$0xff] %v2011_v6 }
  0x26   : > { %262 = vst [vmem:[#allocation2 + $0x28] sm:$0x3] %v2011_v6  ;;  %263 = vst [vmem:[#allocation2 + $0x48] sm:$0x3] %v2011_v6 }
  0x27   : > { %264 = vst [vmem:[#allocation2 + $0x10] sm:$0x3] %v2011_v6  ;;  %265 = vst [vmem:[#allocation2 + $0x40] sm:$0x3] %v2011_v6 }
  0x28 PF: > { %s1568_s8 = sshll.u32 %s2001_s17, 9  ;;  %v2088_v7 = vld [vmem:[%s2083_s7 + $0x4] ss:$16 sps:$4 sm:$0xff]   ;;  %v2091_v8 = vld [vmem:[%s2083_s7 + $0xc] ss:$16 sps:$4 sm:$0xff]   ;;  %p1707_p10 = scmp.ne.s32.totalorder %s2001_s17, 7 }
  0x29   : > { %s285_s9 = sshra.s32 %s1568_s8, 3  ;;  %1124 = vmatprep.mubr.bf16.mxu0 %v2088_v7  ;;  %1175 = vmatprep.mubr.bf16.mxu1 %v2091_v8 }
  0x2a   : > { %s1719_s10 = sshll.u32 %s285_s9, 4 }
  0x2b   : > { %s2096_s13 = scalar_lea.vmem %s2310_s1, %s1719_s10 }
  0x2c   : > { %v1769_v9 = vld [vmem:[%s2096_s13 + $0xe4] ss:$16 sps:$4 sm:$0xff]   ;;  %v1773_v11 = vld [vmem:[%s2096_s13 + $0xe0] ss:$16 sps:$4 sm:$0xff]  }
  0x2d   : > { %v1771_v10 = vld [vmem:[%s2096_s13 + $0x2e4] ss:$16 sps:$4 sm:$0xff]   ;;  %1092 = vmatprep.subr.bf16.mxu0 %v1769_v9  ;;  %v1774_v12 = vld [vmem:[%s2096_s13 + $0x2e0] ss:$16 sps:$4 sm:$0xff]  }
  0x2e   : > { %1143 = vmatprep.subr.bf16.mxu1 %v1771_v10  ;;  %v1775_v13 = vld [vmem:[%s2096_s13 + $0xc4] ss:$16 sps:$4 sm:$0xff]   ;;  %1093 = vmatpush1.bf16.msra.mxu0 %v1773_v11  ;;  %v1779_v15 = vld [vmem:[%s2096_s13 + $0xc0] ss:$16 sps:$4 sm:$0xff]   ;;  %v1873_v11 = vld [vmem:[%s2096_s13 + $0xec] ss:$16 sps:$4 sm:$0xff]  }
  0x2f   : > { %1144 = vmatpush1.bf16.msra.mxu1 %v1774_v12  ;;  %v1777_v14 = vld [vmem:[%s2096_s13 + $0x2c4] ss:$16 sps:$4 sm:$0xff]   ;;  %1094 = vmatprep.subr.bf16.mxu0 %v1775_v13  ;;  %v1780_v16 = vld [vmem:[%s2096_s13 + $0x2c0] ss:$16 sps:$4 sm:$0xff]   ;;  %v2169_v13 = vld [vmem:[%s2083_s7 + $0x8] ss:$16 sps:$4 sm:$0xff]  }
  0x30   : > { %1145 = vmatprep.subr.bf16.mxu1 %v1777_v14  ;;  %v1781_v17 = vld [vmem:[%s2096_s13 + $0xa4] ss:$16 sps:$4 sm:$0xff]   ;;  %v1785_v19 = vld [vmem:[%s2096_s13 + $0xa0] ss:$16 sps:$4 sm:$0xff]   ;;  %v1876_v14 = vld [vmem:[%s2096_s13 + $0x2ec] ss:$16 sps:$4 sm:$0xff]  }
  0x31   : > { %v1783_v18 = vld [vmem:[%s2096_s13 + $0x2a4] ss:$16 sps:$4 sm:$0xff]   ;;  %v1786_v20 = vld [vmem:[%s2096_s13 + $0x2a0] ss:$16 sps:$4 sm:$0xff]  }
  0x32   : > { %1095 = vmatpush1.bf16.msra.mxu0 %v1779_v15  ;;  %v1787_v21 = vld [vmem:[%s2096_s13 + $0x84] ss:$16 sps:$4 sm:$0xff]   ;;  %v1791_v23 = vld [vmem:[%s2096_s13 + $0x80] ss:$16 sps:$4 sm:$0xff]  }
  0x33   : > { %1146 = vmatpush1.bf16.msra.mxu1 %v1780_v16  ;;  %1096 = vmatprep.subr.bf16.mxu0 %v1781_v17  ;;  %v1789_v22 = vld [vmem:[%s2096_s13 + $0x284] ss:$16 sps:$4 sm:$0xff]   ;;  %v1792_v24 = vld [vmem:[%s2096_s13 + $0x280] ss:$16 sps:$4 sm:$0xff]   ;;  %v284_v16 = vld [vmem:[%s2083_s7 + $0x28] sm:$0x11] }
  0x34   : > { %1147 = vmatprep.subr.bf16.mxu1 %v1783_v18  ;;  %v1793_v25 = vld [vmem:[%s2096_s13 + $0x64] ss:$16 sps:$4 sm:$0xff]   ;;  %v1797_v27 = vld [vmem:[%s2096_s13 + $0x60] ss:$16 sps:$4 sm:$0xff]   ;;  %v1871_v17 = vld [vmem:[%s2096_s13 + $0xe8] ss:$16 sps:$4 sm:$0xff]  }
  0x35   : > { %v1795_v26 = vld [vmem:[%s2096_s13 + $0x264] ss:$16 sps:$4 sm:$0xff]   ;;  %v1798_v28 = vld [vmem:[%s2096_s13 + $0x260] ss:$16 sps:$4 sm:$0xff]   ;;  %v1874_v18 = vld [vmem:[%s2096_s13 + $0x2e8] ss:$16 sps:$4 sm:$0xff]  }
  0x36   : > { %1097 = vmatpush1.bf16.msra.mxu0 %v1785_v19  ;;  %v1799_v29 = vld [vmem:[%s2096_s13 + $0x44] ss:$16 sps:$4 sm:$0xff]   ;;  %v1803_v31 = vld [vmem:[%s2096_s13 + $0x40] ss:$16 sps:$4 sm:$0xff]   ;;  %v1879_v19 = vld [vmem:[%s2096_s13 + $0xcc] ss:$16 sps:$4 sm:$0xff]  }
  0x37   : > { %1148 = vmatpush1.bf16.msra.mxu1 %v1786_v20  ;;  %1098 = vmatprep.subr.bf16.mxu0 %v1787_v21  ;;  %v1801_v30 = vld [vmem:[%s2096_s13 + $0x244] ss:$16 sps:$4 sm:$0xff]   ;;  %v1804_v32 = vld [vmem:[%s2096_s13 + $0x240] ss:$16 sps:$4 sm:$0xff]   ;;  %v1882_v20 = vld [vmem:[%s2096_s13 + $0x2cc] ss:$16 sps:$4 sm:$0xff]  }
  0x38   : > { %1149 = vmatprep.subr.bf16.mxu1 %v1789_v22  ;;  %v1805_v33 = vld [vmem:[%s2096_s13 + $0x24] ss:$16 sps:$4 sm:$0xff]   ;;  %v1809_v35 = vld [vmem:[%s2096_s13 + $0x20] ss:$16 sps:$4 sm:$0xff]   ;;  %v2180_v22 = vcombine.high %v284_v16, %v284_v16 }
  0x39   : > { %v1807_v34 = vld [vmem:[%s2096_s13 + $0x224] ss:$16 sps:$4 sm:$0xff]   ;;  %v1810_v36 = vld [vmem:[%s2096_s13 + $0x220] ss:$16 sps:$4 sm:$0xff]  }
  0x3a   : > { %1099 = vmatpush1.bf16.msra.mxu0 %v1791_v23  ;;  %v1811_v37 = vld [vmem:[%s2096_s13 + $0x4] ss:$16 sps:$4 sm:$0xff]   ;;  %v1815_v39 = vld [vmem:[%s2096_s13] ss:$16 sps:$4 sm:$0xff]   ;;  %v1877_v23 = vld [vmem:[%s2096_s13 + $0xc8] ss:$16 sps:$4 sm:$0xff]  }
  0x3b   : > { %1150 = vmatpush1.bf16.msra.mxu1 %v1792_v24  ;;  %1100 = vmatprep.subr.bf16.mxu0 %v1793_v25  ;;  %v1813_v38 = vld [vmem:[%s2096_s13 + $0x204] ss:$16 sps:$4 sm:$0xff]   ;;  %v1816_v40 = vld [vmem:[%s2096_s13 + $0x200] ss:$16 sps:$4 sm:$0xff]   ;;  %v1880_v24 = vld [vmem:[%s2096_s13 + $0x2c8] ss:$16 sps:$4 sm:$0xff]  }
  0x3c   : > { %1151 = vmatprep.subr.bf16.mxu1 %v1795_v26  ;;  %v1817_v41 = vld [vmem:[%s2096_s13 + $0x1e4] ss:$16 sps:$4 sm:$0xff]   ;;  %v1821_v43 = vld [vmem:[%s2096_s13 + $0x1e0] ss:$16 sps:$4 sm:$0xff]   ;;  %v1885_v25 = vld [vmem:[%s2096_s13 + $0xac] ss:$16 sps:$4 sm:$0xff]  }
  0x3d   : > { %v1819_v42 = vld [vmem:[%s2096_s13 + $0x3e4] ss:$16 sps:$4 sm:$0xff]   ;;  %v1822_v44 = vld [vmem:[%s2096_s13 + $0x3e0] ss:$16 sps:$4 sm:$0xff]   ;;  %v1888_v26 = vld [vmem:[%s2096_s13 + $0x2ac] ss:$16 sps:$4 sm:$0xff]  }
  0x3e   : > { %1101 = vmatpush1.bf16.msra.mxu0 %v1797_v27  ;;  %v1823_v45 = vld [vmem:[%s2096_s13 + $0x1c4] ss:$16 sps:$4 sm:$0xff]   ;;  %v1827_v47 = vld [vmem:[%s2096_s13 + $0x1c0] ss:$16 sps:$4 sm:$0xff]   ;;  %v1883_v27 = vld [vmem:[%s2096_s13 + $0xa8] ss:$16 sps:$4 sm:$0xff]  }
  0x3f   : > { %1152 = vmatpush1.bf16.msra.mxu1 %v1798_v28  ;;  %1102 = vmatprep.subr.bf16.mxu0 %v1799_v29  ;;  %v1825_v46 = vld [vmem:[%s2096_s13 + $0x3c4] ss:$16 sps:$4 sm:$0xff]   ;;  %v1828_v48 = vld [vmem:[%s2096_s13 + $0x3c0] ss:$16 sps:$4 sm:$0xff]   ;;  %v1886_v28 = vld [vmem:[%s2096_s13 + $0x2a8] ss:$16 sps:$4 sm:$0xff]  }
  0x40   : > { %1153 = vmatprep.subr.bf16.mxu1 %v1801_v30  ;;  %v1829_v49 = vld [vmem:[%s2096_s13 + $0x1a4] ss:$16 sps:$4 sm:$0xff]   ;;  %v1833_v51 = vld [vmem:[%s2096_s13 + $0x1a0] ss:$16 sps:$4 sm:$0xff]   ;;  %v2194_v30 = vcombine.low %v284_v16, %v284_v16  ;;  %v1962_v16 = vld [vmem:[%s2096_s13 + $0x328] ss:$16 sps:$4 sm:$0xff]  }
  0x41   : > { %v1831_v50 = vld [vmem:[%s2096_s13 + $0x3a4] ss:$16 sps:$4 sm:$0xff]   ;;  %v1834_v52 = vld [vmem:[%s2096_s13 + $0x3a0] ss:$16 sps:$4 sm:$0xff]  }
  0x42   : > { %1103 = vmatpush1.bf16.msra.mxu0 %v1803_v31  ;;  %v1835_v53 = vld [vmem:[%s2096_s13 + $0x184] ss:$16 sps:$4 sm:$0xff]   ;;  %v1839_v55 = vld [vmem:[%s2096_s13 + $0x180] ss:$16 sps:$4 sm:$0xff]   ;;  %v1891_v31 = vld [vmem:[%s2096_s13 + $0x8c] ss:$16 sps:$4 sm:$0xff]  }
  0x43   : > { %1154 = vmatpush1.bf16.msra.mxu1 %v1804_v32  ;;  %1104 = vmatprep.subr.bf16.mxu0 %v1805_v33  ;;  %v1837_v54 = vld [vmem:[%s2096_s13 + $0x384] ss:$16 sps:$4 sm:$0xff]   ;;  %v1840_v56 = vld [vmem:[%s2096_s13 + $0x380] ss:$16 sps:$4 sm:$0xff]   ;;  %v1894_v32 = vld [vmem:[%s2096_s13 + $0x28c] ss:$16 sps:$4 sm:$0xff]  }
  0x44   : > { %1155 = vmatprep.subr.bf16.mxu1 %v1807_v34  ;;  %v1841_v57 = vld [vmem:[%s2096_s13 + $0x164] ss:$16 sps:$4 sm:$0xff]   ;;  %v1845_v59 = vld [vmem:[%s2096_s13 + $0x160] ss:$16 sps:$4 sm:$0xff]   ;;  %v1889_v33 = vld [vmem:[%s2096_s13 + $0x88] ss:$16 sps:$4 sm:$0xff]  }
  0x45   : > { %v1843_v58 = vld [vmem:[%s2096_s13 + $0x364] ss:$16 sps:$4 sm:$0xff]   ;;  %v1846_v60 = vld [vmem:[%s2096_s13 + $0x360] ss:$16 sps:$4 sm:$0xff]   ;;  %v1892_v34 = vld [vmem:[%s2096_s13 + $0x288] ss:$16 sps:$4 sm:$0xff]  }
  0x46   : > { %1105 = vmatpush1.bf16.msra.mxu0 %v1809_v35  ;;  %v1847_v61 = vld [vmem:[%s2096_s13 + $0x144] ss:$16 sps:$4 sm:$0xff]   ;;  %v1851_v63 = vld [vmem:[%s2096_s13 + $0x140] ss:$16 sps:$4 sm:$0xff]   ;;  %v1897_v35 = vld [vmem:[%s2096_s13 + $0x6c] ss:$16 sps:$4 sm:$0xff]  }
  0x47   : > { %1156 = vmatpush1.bf16.msra.mxu1 %v1810_v36  ;;  %1106 = vmatprep.subr.bf16.mxu0 %v1811_v37  ;;  %v1849_v62 = vld [vmem:[%s2096_s13 + $0x344] ss:$16 sps:$4 sm:$0xff]   ;;  %v1852_v0 = vld [vmem:[%s2096_s13 + $0x340] ss:$16 sps:$4 sm:$0xff]   ;;  %v1900_v36 = vld [vmem:[%s2096_s13 + $0x26c] ss:$16 sps:$4 sm:$0xff]  }
  0x48   : > { %1157 = vmatprep.subr.bf16.mxu1 %v1813_v38  ;;  %v1853_v1 = vld [vmem:[%s2096_s13 + $0x124] ss:$16 sps:$4 sm:$0xff]   ;;  %v1857_v3 = vld [vmem:[%s2096_s13 + $0x120] ss:$16 sps:$4 sm:$0xff]   ;;  %v1895_v37 = vld [vmem:[%s2096_s13 + $0x68] ss:$16 sps:$4 sm:$0xff]  }
  0x49   : > { %v1855_v2 = vld [vmem:[%s2096_s13 + $0x324] ss:$16 sps:$4 sm:$0xff]   ;;  %v1858_v4 = vld [vmem:[%s2096_s13 + $0x320] ss:$16 sps:$4 sm:$0xff]   ;;  %v1898_v38 = vld [vmem:[%s2096_s13 + $0x268] ss:$16 sps:$4 sm:$0xff]  }
  0x4a   : > { %1107 = vmatpush1.bf16.msra.mxu0 %v1815_v39  ;;  %v1859_v5 = vld [vmem:[%s2096_s13 + $0x104] ss:$16 sps:$4 sm:$0xff]   ;;  %v1863_v9 = vld [vmem:[%s2096_s13 + $0x100] ss:$16 sps:$4 sm:$0xff]   ;;  %v1903_v39 = vld [vmem:[%s2096_s13 + $0x4c] ss:$16 sps:$4 sm:$0xff]  }
  0x4b   : > { %1158 = vmatpush1.bf16.msra.mxu1 %v1816_v40  ;;  %1108 = vmatprep.subr.bf16.mxu0 %v1817_v41  ;;  %v1861_v6 = vld [vmem:[%s2096_s13 + $0x304] ss:$16 sps:$4 sm:$0xff]   ;;  %v1864_v10 = vld [vmem:[%s2096_s13 + $0x300] ss:$16 sps:$4 sm:$0xff]   ;;  %v1906_v40 = vld [vmem:[%s2096_s13 + $0x24c] ss:$16 sps:$4 sm:$0xff]  }
  0x4c   : > { %1159 = vmatprep.subr.bf16.mxu1 %v1819_v42  ;;  %v2166_v12 = vld [vmem:[%s2083_s7] ss:$16 sps:$4 sm:$0xff]   ;;  %v1901_v41 = vld [vmem:[%s2096_s13 + $0x48] ss:$16 sps:$4 sm:$0xff]   ;;  %v1912_v42 = vld [vmem:[%s2096_s13 + $0x22c] ss:$16 sps:$4 sm:$0xff]  }
  0x4d   : > { %v283_v15 = vld [vmem:[%s2083_s7 + $0x20] sm:$0x11] }
  0x4e   : > { %1109 = vmatpush2.bf16.msra.mxu0 %v1821_v43  ;;  %v2178_v21 = vcombine.high %v283_v15, %v283_v15  ;;  %v2192_v29 = vcombine.low %v283_v15, %v283_v15  ;;  %v1907_v43 = vld [vmem:[%s2096_s13 + $0x28] ss:$16 sps:$4 sm:$0xff]  }
  0x4f   : > { %1160 = vmatpush2.bf16.msra.mxu1 %v1822_v44  ;;  %1110 = vmatprep.subr.bf16.mxu0 %v1823_v45  ;;  %v1910_v44 = vld [vmem:[%s2096_s13 + $0x228] ss:$16 sps:$4 sm:$0xff]   ;;  %v1915_v45 = vld [vmem:[%s2096_s13 + $0xc] ss:$16 sps:$4 sm:$0xff]  }
  0x50   : > { %1161 = vmatprep.subr.bf16.mxu1 %v1825_v46  ;;  %v1918_v46 = vld [vmem:[%s2096_s13 + $0x20c] ss:$16 sps:$4 sm:$0xff]   ;;  %v1959_v15 = vld [vmem:[%s2096_s13 + $0x128] ss:$16 sps:$4 sm:$0xff]  }
  0x52   : > { %1111 = vmatpush2.bf16.msra.mxu0 %v1827_v47  ;;  %v1913_v47 = vld [vmem:[%s2096_s13 + $0x8] ss:$16 sps:$4 sm:$0xff]  }
  0x53   : > { %1162 = vmatpush2.bf16.msra.mxu1 %v1828_v48  ;;  %1112 = vmatprep.subr.bf16.mxu0 %v1829_v49  ;;  %v1916_v48 = vld [vmem:[%s2096_s13 + $0x208] ss:$16 sps:$4 sm:$0xff]   ;;  %v1921_v49 = vld [vmem:[%s2096_s13 + $0x1ec] ss:$16 sps:$4 sm:$0xff]  }
  0x54   : > { %1163 = vmatprep.subr.bf16.mxu1 %v1831_v50  ;;  %v1924_v50 = vld [vmem:[%s2096_s13 + $0x3ec] ss:$16 sps:$4 sm:$0xff]  }
  0x56   : > { %1113 = vmatpush2.bf16.msra.mxu0 %v1833_v51  ;;  %v1919_v51 = vld [vmem:[%s2096_s13 + $0x1e8] ss:$16 sps:$4 sm:$0xff]  }
  0x57   : > { %1164 = vmatpush2.bf16.msra.mxu1 %v1834_v52  ;;  %1114 = vmatprep.subr.bf16.mxu0 %v1835_v53  ;;  %v1922_v52 = vld [vmem:[%s2096_s13 + $0x3e8] ss:$16 sps:$4 sm:$0xff]   ;;  %v1927_v53 = vld [vmem:[%s2096_s13 + $0x1cc] ss:$16 sps:$4 sm:$0xff]  }
  0x58   : > { %1165 = vmatprep.subr.bf16.mxu1 %v1837_v54  ;;  %v1930_v54 = vld [vmem:[%s2096_s13 + $0x3cc] ss:$16 sps:$4 sm:$0xff]  }
  0x5a   : > { %1115 = vmatpush2.bf16.msra.mxu0 %v1839_v55  ;;  %v1925_v55 = vld [vmem:[%s2096_s13 + $0x1c8] ss:$16 sps:$4 sm:$0xff]  }
  0x5b   : > { %1166 = vmatpush2.bf16.msra.mxu1 %v1840_v56  ;;  %1116 = vmatprep.subr.bf16.mxu0 %v1841_v57  ;;  %v1928_v56 = vld [vmem:[%s2096_s13 + $0x3c8] ss:$16 sps:$4 sm:$0xff]   ;;  %v1933_v57 = vld [vmem:[%s2096_s13 + $0x1ac] ss:$16 sps:$4 sm:$0xff]  }
  0x5c   : > { %1167 = vmatprep.subr.bf16.mxu1 %v1843_v58  ;;  %v1936_v58 = vld [vmem:[%s2096_s13 + $0x3ac] ss:$16 sps:$4 sm:$0xff]  }
  0x5e   : > { %1117 = vmatpush2.bf16.msra.mxu0 %v1845_v59  ;;  %v1931_v59 = vld [vmem:[%s2096_s13 + $0x1a8] ss:$16 sps:$4 sm:$0xff]  }
  0x5f   : > { %1168 = vmatpush2.bf16.msra.mxu1 %v1846_v60  ;;  %1118 = vmatprep.subr.bf16.mxu0 %v1847_v61  ;;  %v1934_v60 = vld [vmem:[%s2096_s13 + $0x3a8] ss:$16 sps:$4 sm:$0xff]   ;;  %v1939_v61 = vld [vmem:[%s2096_s13 + $0x18c] ss:$16 sps:$4 sm:$0xff]  }
  0x60   : > { %1169 = vmatprep.subr.bf16.mxu1 %v1849_v62  ;;  %v1942_v62 = vld [vmem:[%s2096_s13 + $0x38c] ss:$16 sps:$4 sm:$0xff]  }
  0x62   : > { %1119 = vmatpush2.bf16.msra.mxu0 %v1851_v63  ;;  %v1937_v63 = vld [vmem:[%s2096_s13 + $0x188] ss:$16 sps:$4 sm:$0xff]  }
  0x63   : > { %1170 = vmatpush2.bf16.msra.mxu1 %v1852_v0  ;;  %1120 = vmatprep.subr.bf16.mxu0 %v1853_v1  ;;  %v1940_v0 = vld [vmem:[%s2096_s13 + $0x388] ss:$16 sps:$4 sm:$0xff]   ;;  %v1945_v1 = vld [vmem:[%s2096_s13 + $0x16c] ss:$16 sps:$4 sm:$0xff]  }
  0x64   : > { %1171 = vmatprep.subr.bf16.mxu1 %v1855_v2  ;;  %v1948_v2 = vld [vmem:[%s2096_s13 + $0x36c] ss:$16 sps:$4 sm:$0xff]  }
  0x66   : > { %1121 = vmatpush2.bf16.msra.mxu0 %v1857_v3  ;;  %v1943_v3 = vld [vmem:[%s2096_s13 + $0x168] ss:$16 sps:$4 sm:$0xff]  }
  0x67   : > { %1172 = vmatpush2.bf16.msra.mxu1 %v1858_v4  ;;  %1122 = vmatprep.subr.bf16.mxu0 %v1859_v5  ;;  %v1946_v4 = vld [vmem:[%s2096_s13 + $0x368] ss:$16 sps:$4 sm:$0xff]   ;;  %v1955_v5 = vld [vmem:[%s2096_s13 + $0x14c] ss:$16 sps:$4 sm:$0xff]  }
  0x68   : > { %1173 = vmatprep.subr.bf16.mxu1 %v1861_v6  ;;  %v1958_v6 = vld [vmem:[%s2096_s13 + $0x34c] ss:$16 sps:$4 sm:$0xff]  }
  0x6a   : > { %1123 = vmatpush2.bf16.msra.mxu0 %v1863_v9  ;;  %v1953_v9 = vld [vmem:[%s2096_s13 + $0x148] ss:$16 sps:$4 sm:$0xff]  }
  0x6b   : > { %1174 = vmatpush2.bf16.msra.mxu1 %v1864_v10  ;;  %1194 = vmatprep.subr.bf16.mxu0 %v1873_v11  ;;  %v1956_v10 = vld [vmem:[%s2096_s13 + $0x348] ss:$16 sps:$4 sm:$0xff]   ;;  %v1961_v11 = vld [vmem:[%s2096_s13 + $0x12c] ss:$16 sps:$4 sm:$0xff]  }
  0x6c   : > { %1245 = vmatprep.subr.bf16.mxu1 %v1876_v14  ;;  %v1964_v14 = vld [vmem:[%s2096_s13 + $0x32c] ss:$16 sps:$4 sm:$0xff]  }
  0x6d   : > { %1125 = vmatmul.mubr.bf16.vlgmr.msra.gmra.mxu0 %v2166_v12 }
  0x6e   : > { %1176 = vmatmul.mubr.bf16.vlgmr.msra.gmra.mxu1 %v2169_v13  ;;  %1195 = vmatpush1.bf16.msra.mxu0 %v1871_v17  ;;  %v1967_v17 = vld [vmem:[%s2096_s13 + $0x10c] ss:$16 sps:$4 sm:$0xff]  }
  0x6f   : > { %1246 = vmatpush1.bf16.msra.mxu1 %v1874_v18  ;;  %1196 = vmatprep.subr.bf16.mxu0 %v1879_v19  ;;  %v1970_v18 = vld [vmem:[%s2096_s13 + $0x30c] ss:$16 sps:$4 sm:$0xff]   ;;  %v1965_v19 = vld [vmem:[%s2096_s13 + $0x108] ss:$16 sps:$4 sm:$0xff]  }
  0x70   : > { %1247 = vmatprep.subr.bf16.mxu1 %v1882_v20  ;;  %1134 = vmatprep.mubr.bf16.mxu0 %v2178_v21  ;;  %v1968_v20 = vld [vmem:[%s2096_s13 + $0x308] ss:$16 sps:$4 sm:$0xff]  }
  0x71   : > { %1185 = vmatprep.mubr.bf16.mxu1 %v2180_v22 }
  0x72   : > { %1197 = vmatpush1.bf16.msra.mxu0 %v1877_v23 }
  0x73   : > { %1248 = vmatpush1.bf16.msra.mxu1 %v1880_v24  ;;  %1198 = vmatprep.subr.bf16.mxu0 %v1885_v25  ;;  %v267_v24 = vld [vmem:[#allocation2 + $0x30] sm:$0xff] }
  0x74   : > { %1249 = vmatprep.subr.bf16.mxu1 %v1888_v26 }
  0x75   : > { %1135 = vmatmul.mubr.bf16.gmra.mxu0 %v2192_v29 }
  0x76   : > { %1186 = vmatmul.mubr.bf16.gmra.mxu1 %v2194_v30  ;;  %1199 = vmatpush1.bf16.msra.mxu0 %v1883_v27 }
  0x77   : > { %1250 = vmatpush1.bf16.msra.mxu1 %v1886_v28  ;;  %1200 = vmatprep.subr.bf16.mxu0 %v1891_v31  ;;  %v268_v28 = vld [vmem:[#allocation2] sm:$0xff] }
  0x78   : > { %1251 = vmatprep.subr.bf16.mxu1 %v1894_v32  ;;  %1226 = vmatprep.mubr.bf16.mxu0 %v2088_v7  ;;  %v1904_v7 = vld [vmem:[%s2096_s13 + $0x248] ss:$16 sps:$4 sm:$0xff]  }
  0x79   : > { %1277 = vmatprep.mubr.bf16.mxu1 %v2091_v8  ;;  %v1909_v8 = vld [vmem:[%s2096_s13 + $0x2c] ss:$16 sps:$4 sm:$0xff]  }
  0x7a   : > { %1201 = vmatpush1.bf16.msra.mxu0 %v1889_v33 }
  0x7b   : > { %1252 = vmatpush1.bf16.msra.mxu1 %v1892_v34  ;;  %1202 = vmatprep.subr.bf16.mxu0 %v1897_v35  ;;  %v271_v34 = vld [vmem:[#allocation2 + $0x50] sm:$0xff] }
  0x7c   : > { %1253 = vmatprep.subr.bf16.mxu1 %v1900_v36  ;;  %v272_v36 = vld [vmem:[#allocation2 + $0x20] sm:$0xff] }
  0x7e   : > { %1203 = vmatpush1.bf16.msra.mxu0 %v1895_v37 }
  0x7f   : > { %1254 = vmatpush1.bf16.msra.mxu1 %v1898_v38  ;;  %1204 = vmatprep.subr.bf16.mxu0 %v1903_v39  ;;  %v275_v39 = vld [vmem:[#allocation2 + $0x28] sm:$0x3] }
  0x80   : > { %1255 = vmatprep.subr.bf16.mxu1 %v1906_v40 }
  0x82   : > { %1205 = vmatpush1.bf16.msra.mxu0 %v1901_v41 }
  0x83   : > { %1256 = vmatpush1.bf16.msra.mxu1 %v1904_v7  ;;  %1206 = vmatprep.subr.bf16.mxu0 %v1909_v8 }
  0x84   : > { %1257 = vmatprep.subr.bf16.mxu1 %v1912_v42  ;;  %v276_v42 = vld [vmem:[#allocation2 + $0x48] sm:$0x3] }
  0x86   : > { %1207 = vmatpush1.bf16.msra.mxu0 %v1907_v43 }
  0x87   : > { %1258 = vmatpush1.bf16.msra.mxu1 %v1910_v44  ;;  %1208 = vmatprep.subr.bf16.mxu0 %v1915_v45 }
  0x88   : > { %1259 = vmatprep.subr.bf16.mxu1 %v1918_v46 }
  0x8a   : > { %1209 = vmatpush1.bf16.msra.mxu0 %v1913_v47 }
  0x8b   : > { %1260 = vmatpush1.bf16.msra.mxu1 %v1916_v48  ;;  %1210 = vmatprep.subr.bf16.mxu0 %v1921_v49 }
  0x8c   : > { %1261 = vmatprep.subr.bf16.mxu1 %v1924_v50 }
  0x8e   : > { %1211 = vmatpush2.bf16.msra.mxu0 %v1919_v51 }
  0x8f   : > { %1262 = vmatpush2.bf16.msra.mxu1 %v1922_v52  ;;  %1212 = vmatprep.subr.bf16.mxu0 %v1927_v53  ;;  %v269_v52 = vld [vmem:[#allocation2 + $0x58] sm:$0xff] }
  0x90   : > { %1263 = vmatprep.subr.bf16.mxu1 %v1930_v54 }
  0x92   : > { %1213 = vmatpush2.bf16.msra.mxu0 %v1925_v55 }
  0x93   : > { %1264 = vmatpush2.bf16.msra.mxu1 %v1928_v56  ;;  %1214 = vmatprep.subr.bf16.mxu0 %v1933_v57  ;;  %v270_v56 = vld [vmem:[#allocation2 + $0x18] sm:$0xff] }
  0x94   : > { %1265 = vmatprep.subr.bf16.mxu1 %v1936_v58 }
  0x96   : > { %1215 = vmatpush2.bf16.msra.mxu0 %v1931_v59 }
  0x97   : > { %1266 = vmatpush2.bf16.msra.mxu1 %v1934_v60  ;;  %1216 = vmatprep.subr.bf16.mxu0 %v1939_v61  ;;  %v273_v61 = vld [vmem:[#allocation2 + $0x8] sm:$0xff] }
  0x98   : > { %1267 = vmatprep.subr.bf16.mxu1 %v1942_v62 }
  0x9a   : > { %1217 = vmatpush2.bf16.msra.mxu0 %v1937_v63 }
  0x9b   : > { %1268 = vmatpush2.bf16.msra.mxu1 %v1940_v0  ;;  %1218 = vmatprep.subr.bf16.mxu0 %v1945_v1 }
  0x9c   : > { %1269 = vmatprep.subr.bf16.mxu1 %v1948_v2  ;;  %v274_v2 = vld [vmem:[#allocation2 + $0x38] sm:$0xff] }
  0x9e   : > { %1219 = vmatpush2.bf16.msra.mxu0 %v1943_v3 }
  0x9f   : > { %1270 = vmatpush2.bf16.msra.mxu1 %v1946_v4  ;;  %1220 = vmatprep.subr.bf16.mxu0 %v1955_v5 }
  0xa0   : > { %1271 = vmatprep.subr.bf16.mxu1 %v1958_v6 }
  0xa2   : > { %1221 = vmatpush2.bf16.msra.mxu0 %v1953_v9  ;;  %v277_v9 = vld [vmem:[#allocation2 + $0x10] sm:$0x3] }
  0xa3   : > { %1272 = vmatpush2.bf16.msra.mxu1 %v1956_v10  ;;  %1222 = vmatprep.subr.bf16.mxu0 %v1961_v11 }
  0xa4   : > { %1273 = vmatprep.subr.bf16.mxu1 %v1964_v14 }
  0xa6   : > { %1223 = vmatpush2.bf16.msra.mxu0 %v1959_v15 }
  0xa7   : > { %1274 = vmatpush2.bf16.msra.mxu1 %v1962_v16  ;;  %1224 = vmatprep.subr.bf16.mxu0 %v1967_v17  ;;  %v278_v16 = vld [vmem:[#allocation2 + $0x40] sm:$0x3] }
  0xa8   : > { %1275 = vmatprep.subr.bf16.mxu1 %v1970_v18 }
  0xaa   : > { %1225 = vmatpush2.bf16.msra.mxu0 %v1965_v19 }
  0xab   : > { %1276 = vmatpush2.bf16.msra.mxu1 %v1968_v20 }
  0xad   : > { %1227 = vmatmul.mubr.bf16.vlgmr.msra.gmra.mxu0 %v2166_v12 }
  0xae   : > { %1278 = vmatmul.mubr.bf16.vlgmr.msra.gmra.mxu1 %v2169_v13  ;;  %1236 = vmatprep.mubr.bf16.mxu0 %v2178_v21 }
  0xaf   : > { %1287 = vmatprep.mubr.bf16.mxu1 %v2180_v22 }
  0xb5   : > { %1237 = vmatmul.mubr.bf16.gmra.mxu0 %v2192_v29 }
  0xb6   : > { %1288 = vmatmul.mubr.bf16.gmra.mxu1 %v2194_v30 }
 0x12d   : > { %v1126_v23 = vpop.f32.mrf.mxu0 }
 0x12e   : > { %v1177_v25 = vpop.f32.mrf.mxu1 }
 0x12f   : > { %v1178_v26 = vadd.f32 %v1177_v25, %v1126_v23  ;;  %v1128_v27 = vpop.f32.mrf.mxu0 }
 0x130   : > { %v1179_v31 = vpop.f32.mrf.mxu1 }
 0x131   : > { %v1296_v32 = vadd.f32 %v1178_v26, %v267_v24  ;;  %v1180_v33 = vadd.f32 %v1179_v31, %v1128_v27  ;;  %v1130_v12 = vpop.f32.mrf.mxu0 }
 0x132   : > { %v1181_v13 = vpop.f32.mrf.mxu1 }
 0x133   : > { %1308 = vst [vmem:[#allocation2 + $0x30] sm:$0xff] %v1296_v32  ;;  %v1297_v21 = vadd.f32 %v1180_v33, %v268_v28  ;;  %v1182_v35 = vadd.f32 %v1181_v13, %v1130_v12  ;;  %v1132_v22 = vpop.f32.mrf.mxu0 }
 0x134   : > { %v1183_v29 = vpop.f32.mrf.mxu1 }
 0x135   : > { %1309 = vst [vmem:[#allocation2] sm:$0xff] %v1297_v21  ;;  %v1300_v30 = vadd.f32 %v1182_v35, %v271_v34  ;;  %v1184_v37 = vadd.f32 %v1183_v29, %v1132_v22  ;;  %v1136_v38 = vpop.f32.mrf.mxu0 }
 0x136   : > { %v1187_v40 = vpop.f32.mrf.mxu1 }
 0x137   : > { %1312 = vst [vmem:[#allocation2 + $0x50] sm:$0xff] %v1300_v30  ;;  %v1301_v41 = vadd.f32 %v1184_v37, %v272_v36  ;;  %v1188_v7 = vadd.f32 %v1187_v40, %v1136_v38  ;;  %v1138_v8 = vpop.f32.mrf.mxu0 }
 0x138   : > { %v1189_v43 = vpop.f32.mrf.mxu1 }
 0x139   : > { %1313 = vst [vmem:[#allocation2 + $0x20] sm:$0xff] %v1301_v41  ;;  %v1304_v44 = vadd.f32 %v1188_v7, %v275_v39  ;;  %v1190_v45 = vadd.f32 %v1189_v43, %v1138_v8  ;;  %v1140_v46 = vpop.f32.mrf.mxu0 }
 0x13a   : > { %v1191_v47 = vpop.f32.mrf.mxu1 }
 0x13b   : > { %1316 = vst [vmem:[#allocation2 + $0x28] sm:$0x3] %v1304_v44  ;;  %v1305_v48 = vadd.f32 %v1190_v45, %v276_v42  ;;  %v1141_v49 = vpop.f32.mrf.mxu0 }
 0x13c   : > { %v1192_v50 = vpop.f32.mrf.mxu1 }
 0x13d   : > { %1317 = vst [vmem:[#allocation2 + $0x48] sm:$0x3] %v1305_v48 }
 0x16d   : > { %v1228_v51 = vpop.f32.mrf.mxu0 }
 0x16e   : > { %v1279_v53 = vpop.f32.mrf.mxu1 }
 0x16f   : > { %v1280_v54 = vadd.f32 %v1279_v53, %v1228_v51  ;;  %v1230_v55 = vpop.f32.mrf.mxu0 }
 0x170   : > { %v1281_v57 = vpop.f32.mrf.mxu1 }
 0x171   : > { %v1298_v58 = vadd.f32 %v1280_v54, %v269_v52  ;;  %v1282_v59 = vadd.f32 %v1281_v57, %v1230_v55  ;;  %v1232_v60 = vpop.f32.mrf.mxu0 }
 0x172   : > { %v1283_v62 = vpop.f32.mrf.mxu1 }
 0x173   : > { %1310 = vst [vmem:[#allocation2 + $0x58] sm:$0xff] %v1298_v58  ;;  %v1299_v63 = vadd.f32 %v1282_v59, %v270_v56  ;;  %v1284_v0 = vadd.f32 %v1283_v62, %v1232_v60  ;;  %v1234_v1 = vpop.f32.mrf.mxu0 }
 0x174   : > { %v1285_v3 = vpop.f32.mrf.mxu1 }
 0x175   : > { %1311 = vst [vmem:[#allocation2 + $0x18] sm:$0xff] %v1299_v63  ;;  %v1302_v4 = vadd.f32 %v1284_v0, %v273_v61  ;;  %v1286_v5 = vadd.f32 %v1285_v3, %v1234_v1  ;;  %v1238_v6 = vpop.f32.mrf.mxu0 }
 0x176   : > { %v1289_v10 = vpop.f32.mrf.mxu1 }
 0x177   : > { %1314 = vst [vmem:[#allocation2 + $0x8] sm:$0xff] %v1302_v4  ;;  %v1303_v11 = vadd.f32 %v1286_v5, %v274_v2  ;;  %v1290_v14 = vadd.f32 %v1289_v10, %v1238_v6  ;;  %v1240_v15 = vpop.f32.mrf.mxu0 }
 0x178   : > { %v1291_v17 = vpop.f32.mrf.mxu1 }
 0x179   : > { %1315 = vst [vmem:[#allocation2 + $0x38] sm:$0xff] %v1303_v11  ;;  %v1306_v18 = vadd.f32 %v1290_v14, %v277_v9  ;;  %v1292_v19 = vadd.f32 %v1291_v17, %v1240_v15  ;;  %v1242_v20 = vpop.f32.mrf.mxu0  ;;  %1323 = sbr.rel (%p1707_p10) target bundleno = 411 (0x19b), region = 67 }
 0x17a   : > { %v1293_v23 = vpop.f32.mrf.mxu1 }
 0x17b   : > { %1318 = vst [vmem:[#allocation2 + $0x10] sm:$0x3] %v1306_v18  ;;  %v1307_v24 = vadd.f32 %v1292_v19, %v278_v16  ;;  %v1243_v25 = vpop.f32.mrf.mxu0 }
 0x17c   : > { %v1294_v26 = vpop.f32.mrf.mxu1 }
 0x17d   : > { %1319 = vst [vmem:[#allocation2 + $0x40] sm:$0x3] %v1307_v24 }
 0x17e   : > { %v1338_v27 = vlaneseq  ;;  %v1336_v31 = vld [vmem:[%s2311_s2] sm:$0xf]  ;;  %v1324_v33 = vld [vmem:[#allocation2 + $0x30] sm:$0xff]  ;;  %v1326_v22 = vld [vmem:[#allocation2 + $0x58] sm:$0xff] }
 0x17f   : > { %v1370_v32 = vld [vmem:[%s2312_s3] sm:$0xf]  ;;  %v1328_v36 = vld [vmem:[#allocation2 + $0x50] sm:$0xff]  ;;  %v1327_v40 = vld [vmem:[#allocation2 + $0x18] sm:$0xff] }
 0x180   : > { %v1339_v28 = vshrl.u32 %v1338_v27, 7  ;;  %v1325_v12 = vld [vmem:[#allocation2] sm:$0xff]  ;;  %v1330_v41 = vld [vmem:[#allocation2 + $0x8] sm:$0xff]  ;;  %v1331_v7 = vld [vmem:[#allocation2 + $0x38] sm:$0xff] }
 0x181   : > { %v1329_v29 = vld [vmem:[#allocation2 + $0x20] sm:$0xff]  ;;  %v1332_v3 = vld [vmem:[#allocation2 + $0x28] sm:$0x3] }
 0x182   : > { %v1340_v34 = vsub.s32 0, %v1339_v28  ;;  %v1344_v13 = vsub.s32 1, %v1339_v28  ;;  %v1348_v21 = vsub.s32 2, %v1339_v28  ;;  %v1352_v35 = vsub.s32 3, %v1339_v28  ;;  %v1333_v4 = vld [vmem:[#allocation2 + $0x48] sm:$0x3] }
 0x183   : > { %v1334_v11 = vld [vmem:[#allocation2 + $0x10] sm:$0x3] }
 0x184   : > { %v1341_v30 = vrot.slane %v1336_v31, %v1340_v34  ;;  %v1345_v37 = vrot.slane %v1336_v31, %v1344_v13  ;;  %v2265_v38 = vrot.slane %v1370_v32, %v1340_v34  ;;  %v2267_v39 = vrot.slane %v1370_v32, %v1344_v13  ;;  %v1335_v14 = vld [vmem:[#allocation2 + $0x40] sm:$0x3] }
 0x185   : > { %v1349_v8 = vrot.slane %v1336_v31, %v1348_v21  ;;  %v1353_v42 = vrot.slane %v1336_v31, %v1352_v35  ;;  %v1383_v43 = vrot.slane %v1370_v32, %v1348_v21  ;;  %v1387_v44 = vrot.slane %v1370_v32, %v1352_v35 }
 0x186   : > { %v1358_v45 = vmul.f32 %v1341_v30, %v1324_v33  ;;  %v1359_v46 = vmul.f32 %v1345_v37, %v1325_v12  ;;  %v1362_v47 = vmul.f32 %v1341_v30, %v1328_v36  ;;  %v1363_v48 = vmul.f32 %v1345_v37, %v1329_v29 }
 0x187   : > { %v1360_v49 = vmul.f32 %v1349_v8, %v1326_v22  ;;  %v1361_v50 = vmul.f32 %v1353_v42, %v1327_v40  ;;  %v1364_v51 = vmul.f32 %v1349_v8, %v1330_v41  ;;  %v1365_v52 = vmul.f32 %v1353_v42, %v1331_v7 }
 0x188   : > { %v1392_v53 = vadd.f32 %v2265_v38, %v1358_v45  ;;  %v1393_v54 = vadd.f32 %v2267_v39, %v1359_v46  ;;  %v1396_v55 = vadd.f32 %v2265_v38, %v1362_v47  ;;  %v1397_v56 = vadd.f32 %v2267_v39, %v1363_v48 }
 0x189   : > { %v1394_v57 = vadd.f32 %v1383_v43, %v1360_v49  ;;  %v1395_v58 = vadd.f32 %v1387_v44, %v1361_v50  ;;  %v1398_v59 = vadd.f32 %v1383_v43, %v1364_v51  ;;  %v1399_v60 = vadd.f32 %v1387_v44, %v1365_v52 }
 0x18a   : > { %vm1404_vm0 = vcmp.ge.f32.partialorder %v1392_v53, 0.0  ;;  %vm1405_vm1 = vcmp.ge.f32.partialorder %v1393_v54, 0.0  ;;  %v1416_v61 = vmul.f32 0.2, %v1392_v53  ;;  %v1417_v62 = vmul.f32 0.2, %v1393_v54 }
 0x18b   : > { %vm1406_vm2 = vcmp.ge.f32.partialorder %v1394_v57, 0.0  ;;  %vm1407_vm3 = vcmp.ge.f32.partialorder %v1395_v58, 0.0  ;;  %v1418_v63 = vmul.f32 0.2, %v1394_v57  ;;  %v1419_v0 = vmul.f32 0.2, %v1395_v58 }
 0x18c   : > { %v1428_v1 = vsel %vm1404_vm0, %v1392_v53, %v1416_v61  ;;  %v1429_v2 = vsel %vm1405_vm1, %v1393_v54, %v1417_v62  ;;  %vm1408_vm4 = vcmp.ge.f32.partialorder %v1396_v55, 0.0  ;;  %vm1409_vm5 = vcmp.ge.f32.partialorder %v1397_v56, 0.0 }
 0x18d   : > { %v1720_v5 = vpack.c.bf16 %v1429_v2, %v1428_v1  ;;  %v1430_v6 = vsel %vm1406_vm2, %v1394_v57, %v1418_v63  ;;  %v1431_v9 = vsel %vm1407_vm3, %v1395_v58, %v1419_v0  ;;  %v1420_v10 = vmul.f32 0.2, %v1396_v55 }
 0x18e   : > { %v1721_v15 = vpack.c.bf16 %v1431_v9, %v1430_v6  ;;  %v1421_v16 = vmul.f32 0.2, %v1397_v56  ;;  %vm1410_vm6 = vcmp.ge.f32.partialorder %v1398_v59, 0.0  ;;  %vm1411_vm7 = vcmp.ge.f32.partialorder %v1399_v60, 0.0 }
 0x18f   : > { %1480 = vst [vmem:[%s2313_s4] sm:$0xff] %v1720_v5  ;;  %v1432_v17 = vsel %vm1408_vm4, %v1396_v55, %v1420_v10  ;;  %v1422_v18 = vmul.f32 0.2, %v1398_v59  ;;  %v1423_v19 = vmul.f32 0.2, %v1399_v60  ;;  %v1366_v20 = vmul.f32 %v1341_v30, %v1332_v3 }
 0x190   : > { %1481 = vst [vmem:[%s2313_s4 + $0x8] sm:$0xff] %v1721_v15  ;;  %v1433_v23 = vsel %vm1409_vm5, %v1397_v56, %v1421_v16  ;;  %v1367_v24 = vmul.f32 %v1345_v37, %v1333_v4  ;;  %v1368_v25 = vmul.f32 %v1349_v8, %v1334_v11  ;;  %v1369_v26 = vmul.f32 %v1353_v42, %v1335_v14 }
 0x191   : > { %v1722_v27 = vpack.c.bf16 %v1433_v23, %v1432_v17  ;;  %v1434_v28 = vsel %vm1410_vm6, %v1398_v59, %v1422_v18  ;;  %v1435_v31 = vsel %vm1411_vm7, %v1399_v60, %v1423_v19  ;;  %v1400_v32 = vadd.f32 %v2265_v38, %v1366_v20 }
 0x192   : > { %v1723_v33 = vpack.c.bf16 %v1435_v31, %v1434_v28  ;;  %v1401_v12 = vadd.f32 %v2267_v39, %v1367_v24  ;;  %v1402_v34 = vadd.f32 %v1383_v43, %v1368_v25  ;;  %v1403_v13 = vadd.f32 %v1387_v44, %v1369_v26 }
 0x193   : > { %1482 = vst [vmem:[%s2313_s4 + $0x10] sm:$0xff] %v1722_v27  ;;  %vm1412_vm8 = vcmp.ge.f32.partialorder %v1400_v32, 0.0  ;;  %v1424_v21 = vmul.f32 0.2, %v1400_v32 }
 0x194   : > { %1483 = vst [vmem:[%s2313_s4 + $0x18] sm:$0xff] %v1723_v33  ;;  %vm1413_vm9 = vcmp.ge.f32.partialorder %v1401_v12, 0.0  ;;  %v1425_v35 = vmul.f32 0.2, %v1401_v12  ;;  %vm1414_vm10 = vcmp.ge.f32.partialorder %v1402_v34, 0.0  ;;  %vm1415_vm11 = vcmp.ge.f32.partialorder %v1403_v13, 0.0 }
 0x195   : > { %v1436_v22 = vsel %vm1412_vm8, %v1400_v32, %v1424_v21  ;;  %v1426_v36 = vmul.f32 0.2, %v1402_v34  ;;  %v1427_v29 = vmul.f32 0.2, %v1403_v13 }
 0x196   : > { %v1437_v30 = vsel %vm1413_vm9, %v1401_v12, %v1425_v35 }
 0x197   : > { %v1724_v37 = vpack.c.bf16 %v1437_v30, %v1436_v22  ;;  %v1438_v38 = vsel %vm1414_vm10, %v1402_v34, %v1426_v36  ;;  %v1439_v39 = vsel %vm1415_vm11, %v1403_v13, %v1427_v29 }
 0x198   : > { %v1725_v40 = vpack.c.bf16 %v1439_v39, %v1438_v38 }
 0x199   : > { %1484 = vst [vmem:[%s2313_s4 + $0x20] sm:$0x11] %v1724_v37 }
 0x19a   : > { %1485 = vst [vmem:[%s2313_s4 + $0x28] sm:$0x11] %v1725_v40 }
 0x19b PF: > { %s14_s19 = sadd.s32 1, %s2009_s19   ;;  %s2314_s15 = smov %s1997_s16 }
 0x19c   : > { %p11_p11 = scmp.ge.s32.totalorder %s14_s19, 10   ;;  %s2315_s16 = smov %s2072_s23 }
 0x19d   : > { %s2316_s17 = smov %s2005_s18  ;;  %s2317_s18 = smov %s2319_s20 }
 0x19e   :  { %13 = sbr.rel (!%p11_p11) target bundleno = 3 (0x3), region = 103 }

// kernel: _lambda_.9
= control target key start
LH: loop header
LB: loop body
LE: loop exit
PB: predicated region body
PF: predicated region fallthrough
CT: control target
= control target key end

     0   :  { %s448_s14 = smov 0   ;;  %s450_s15 = smov 0   ;;  %s499_s0 = inlined_call_operand.vmem [shape: bf16[8,8192], index: 0, kind: input, shape index: {}]   ;;  %s500_s1 = inlined_call_operand.vmem [shape: f32[1,8192], index: 1, kind: input, shape index: {}]   ;;  %s501_s2 = inlined_call_operand.<no memory space> [shape: f32[1,1], index: 2, kind: input, shape index: {}]   ;;  %s502_s3 = inlined_call_operand.vmem [shape: f32[8,1], index: 3, kind: output, shape index: {}]  }
   0x1   :  { %v8_v0 = vstv %s501_s2  ;;  %s452_s16 = smov 0  }
   0x2   :  { %9 = vst [vmem:[#allocation3] sm:$0x1] %v8_v0 }
   0x3 LB: > { %s24_s2 = sadd.s32 1, %s418_s15  ;;  %p361_p0 = scmp.ge.s32.totalorder %s422_s16, 1  ;;  %s422_s16 = sphi %s452_s16, %s15_s16   ;;  %s418_s15 = sphi %s450_s15, %s504_s15   ;;  %s414_s14 = sphi %s448_s14, %s503_s14  }
   0x4   : > { %p25_p1 = scmp.ge.s32.totalorder %s24_s2, 16  ;;  %p158_p2 = scmp.lt.s32.totalorder %s422_s16, 17 }
   0x6   : > { %s506_s2 = smov (%p25_p1, %s24_s2), 0  ;;  %p159_p3 = pnand %p361_p0, %p158_p2 }
   0x7   : > { %s362_s17 = sshll.u32 (!%p159_p3), %s414_s14, 2  ;;  %p364_p5 = scmp.ne.s32.totalorder (!%p159_p3), %s414_s14, 0 }
   0x8   : > { %162 = sbr.rel (%p159_p3) target bundleno = 184 (0xb8), region = 32  ;;  %p188_p4 = scmp.lt.s32.totalorder (!%p159_p3), %s362_s17, 63 }
   0xd   : > { %s508_s17 = smov (!%p188_p4, %s362_s17), 63  ;;  %202 = sbr.rel (%p364_p5) target bundleno = 20 (0x14), region = 36 }
   0xe   : > { %s363_s18 = sshll.u32 %s508_s17, 2 }
   0xf   : > { %s193_s21 = scalar_lea.vmem %s499_s0, %s363_s18 }
  0x12   : > { %v424_v1 = vmov 0.0  }
  0x13   : > { %203 = vst [vmem:[#allocation2] sm:$0xff] %v424_v1 }
  0x14 PF: > { %s365_s22 = sshll.u32 %s414_s14, 9  ;;  %v205_v2 = vld [vmem:[%s193_s21] sm:$0xff]   ;;  %v239_v3 = vld [vmem:[%s193_s21 + $0x8] sm:$0xff]   ;;  %p370_p6 = scmp.ne.s32.totalorder %s414_s14, 15 }
  0x15   : > { %v206_v4 = vunpack.c.l.bf16 %v205_v2  ;;  %s208_s23 = sshra.s32 %s365_s22, 7  ;;  %s221_s24 = sadd.s32 128, %s365_s22  ;;  %v223_v5 = vunpack.c.h.bf16 %v205_v2  ;;  %v240_v8 = vunpack.c.l.bf16 %v239_v3  ;;  %v257_v11 = vunpack.c.h.bf16 %v239_v3 }
  0x16   : > { %s210_s27 = scalar_lea.vmem %s500_s1, %s208_s23  ;;  %s225_s28 = sshra.s32 %s221_s24, 7 }
  0x17   : > { %v366_v7 = vld [vmem:[%s210_s27] ss:$0 sm:$0xff]  ;;  %s227_s4 = scalar_lea.vmem %s500_s1, %s225_s28  ;;  %s238_s5 = sadd.s32 256, %s365_s22 }
  0x18   : > { %v218_v9 = vmul.f32 %v366_v7, %v206_v4  ;;  %v367_v10 = vld [vmem:[%s227_s4] ss:$0 sm:$0xff]  ;;  %s242_s6 = sshra.s32 %s238_s5, 7  ;;  %s255_s7 = sadd.s32 384, %s365_s22 }
  0x19   : > { %v235_v12 = vmul.f32 %v367_v10, %v223_v5  ;;  %s244_s10 = scalar_lea.vmem %s500_s1, %s242_s6  ;;  %s259_s11 = sshra.s32 %s255_s7, 7 }
  0x1a   : > { %v207_v6 = vld [vmem:[#allocation2] sm:$0xff]  ;;  %s261_s17 = scalar_lea.vmem %s500_s1, %s259_s11 }
  0x1b   : > { %v219_v13 = vadd.f32 %v218_v9, %v207_v6  ;;  %v368_v14 = vld [vmem:[%s244_s10] ss:$0 sm:$0xff] }
  0x1c   : > { %v252_v15 = vmul.f32 %v368_v14, %v240_v8  ;;  %v369_v16 = vld [vmem:[%s261_s17] ss:$0 sm:$0xff] }
  0x1d   : > { %v236_v17 = vadd.f32 %v235_v12, %v219_v13  ;;  %v269_v18 = vmul.f32 %v369_v16, %v257_v11 }
  0x1f   : > { %v253_v19 = vadd.f32 %v252_v15, %v236_v17  ;;  %275 = sbr.rel (%p370_p6) target bundleno = 184 (0xb8), region = 40 }
  0x21   : > { %v270_v20 = vadd.f32 %v269_v18, %v253_v19 }
  0x23   : > { %271 = vst [vmem:[#allocation2] sm:$0xff] %v270_v20 }
  0x24   : > { %v371_v22 = vld [vmem:[#allocation3] ss:$0 sm:$0xff]  ;;  %vm287_vm0 = vcmask 7168  }
  0x2a   : > { %v276_v21 = vld [vmem:[#allocation2] sm:$0xff] }
  0x2b   : > { %277 = vadd.xlane.f32.xlu0 %v276_v21 }
  0xb4   : > { %v278_v23 = vpop.xlane.xlu0 %277 }
  0xb5   : > { %v286_v24 = vadd.f32 %v371_v22, %v278_v23 }
  0xb7   : > { %288 = vst.msk [vmem:[%s502_s3] sm:$0xff] %vm287_vm0, %v286_v24 }
  0xb8 PF: > { %s15_s16 = sadd.s32 1, %s422_s16   ;;  %s503_s14 = smov %s418_s15 }
  0xb9   : > { %p12_p7 = scmp.ge.s32.totalorder %s15_s16, 18   ;;  %s504_s15 = smov %s506_s2 }
  0xbb   :  { %14 = sbr.rel (!%p12_p7) target bundleno = 3 (0x3), region = 74 }

</bundles_post_ra>
